<compile_context>
chip_gen: v7x
topology: tpu7x:2x2x1
jax: 0.10.0
libtpu: 0.0.40
codegen_flags: <defaults>
</compile_context>

<pallas_src>
import jax
import jax.numpy as jnp
from jax.experimental import pallas as pl
from jax.experimental.pallas import tpu as pltpu


# ------------------------- model hyper-parameters ---------------------------
PIXEL_MEAN = (0.485, 0.456, 0.406)
PIXEL_STD = (0.229, 0.224, 0.225)
CH = 3           # RGB channels
HIDDEN = 32      # 1x1-conv stem channels
FEAT_DIM = 128   # output embedding dim (synthetic stand-in for OSNet's 512)
TB = 16          # batch rows per grid step (sublane-aligned for bf16 loads)


# ------------------------------- kernel -------------------------------------
def _reid_embed_kernel(x_ref, w1f_ref, b1f_ref, w2t_ref, b2_ref, o_ref):
    """One batch tile.

    x_ref   : (CH, TB, HW) bf16   channel planes; batch on sublanes, HW on lanes
    w1f_ref : (HIDDEN*CH,) f32    SMEM, normalization-folded stem weights
    b1f_ref : (HIDDEN,)    f32    SMEM, normalization-folded stem bias
    w2t_ref : (HIDDEN, FEAT_DIM)  f32 head weight (pre-transposed, 1/HW folded)
    b2_ref  : (1, FEAT_DIM) f32
    o_ref   : (TB, FEAT_DIM) f32
    """
    # Load each channel plane once, upcast bf16 -> f32 (VPU).
    xs = [x_ref[c].astype(jnp.float32) for c in range(CH)]        # (TB, HW) each

    # 1x1-conv stem (K == CH == 3): unrolled scalar*vector FMAs on the VPU,
    # fused with ReLU and the spatial sum -> no (HIDDEN, TB, HW) intermediate.
    cols = []
    for o in range(HIDDEN):
        acc = xs[0] * w1f_ref[o * CH]
        for c in range(1, CH):
            acc = acc + xs[c] * w1f_ref[o * CH + c]
        acc = jnp.maximum(acc + b1f_ref[o], 0.0)                  # ReLU
        cols.append(jnp.sum(acc, axis=-1, keepdims=True))         # (TB, 1) spatial sum

    pooled = jnp.concatenate(cols, axis=-1)                       # (TB, HIDDEN)

    # Lane-dense FC head on the MXU (GAP's 1/HW already folded into w2t).
    feat = jnp.dot(pooled, w2t_ref[...], preferred_element_type=jnp.float32)
    o_ref[...] = feat + b2_ref[...]                               # (TB, FEAT_DIM)


# ------------------------------ wrapper --------------------------------------
def reid_forward(images_nchw, params):
    """images_nchw: (B, 3, H, W) float in [0,1] (post Resize + ToTensor).
    Returns (B, FEAT_DIM) float32 embeddings."""
    B, C, H, W = images_nchw.shape
    assert C == CH
    HW = H * W

    w1, b1, w2, b2 = params   # (HIDDEN,CH), (HIDDEN,), (FEAT_DIM,HIDDEN), (FEAT_DIM,)

    # ---- fold Normalize(mean, std) into the linear stem -----------------------
    mean = jnp.asarray(PIXEL_MEAN, jnp.float32)
    inv_std = 1.0 / jnp.asarray(PIXEL_STD, jnp.float32)
    w1f = (w1 * inv_std[None, :]).reshape(HIDDEN * CH).astype(jnp.float32)
    b1f = (b1 - jnp.sum(w1 * (mean * inv_std)[None, :], axis=1)).astype(jnp.float32)

    # ---- fold global-average-pool's 1/HW into the (transposed) head weight ----
    w2t = (w2.T / float(HW)).astype(jnp.float32)                  # (HIDDEN, FEAT_DIM)
    b2r = b2.reshape(1, FEAT_DIM).astype(jnp.float32)

    # ---- layout: (B,C,H,W) -> (C, B, HW) channel planes, bf16 over HBM --------
    x = images_nchw.reshape(B, C, HW).transpose(1, 0, 2)
    B_pad = ((B + TB - 1) // TB) * TB
    if B_pad != B:
        x = jnp.pad(x, ((0, 0), (0, B_pad - B), (0, 0)))
    x = x.astype(jnp.bfloat16)

    grid_spec = pltpu.PrefetchScalarGridSpec(
        num_scalar_prefetch=0,
        grid=(B_pad // TB,),
        in_specs=[
            pl.BlockSpec((CH, TB, HW), lambda i: (0, i, 0)),        # image slab
            pl.BlockSpec(memory_space=pltpu.MemorySpace.SMEM),      # folded w1
            pl.BlockSpec(memory_space=pltpu.MemorySpace.SMEM),      # folded b1
            pl.BlockSpec((HIDDEN, FEAT_DIM), lambda i: (0, 0)),     # head weight^T
            pl.BlockSpec((1, FEAT_DIM), lambda i: (0, 0)),          # head bias
        ],
        out_specs=pl.BlockSpec((TB, FEAT_DIM), lambda i: (i, 0)),
    )

    out = pl.pallas_call(
        _reid_embed_kernel,
        out_shape=jax.ShapeDtypeStruct((B_pad, FEAT_DIM), jnp.float32),
        grid_spec=grid_spec,
        compiler_params=pltpu.CompilerParams(
            dimension_semantics=("parallel",)),   # batch tiles split across TCs
    )(x, w1f, b1f, w2t, b2r)

    return out[:B]


# ----------------------------- pure-JAX reference ----------------------------
def reid_reference(images_nchw, params):
    w1, b1, w2, b2 = params
    x = images_nchw.astype(jnp.float32)
    mean = jnp.asarray(PIXEL_MEAN, jnp.float32).reshape(1, CH, 1, 1)
    std = jnp.asarray(PIXEL_STD, jnp.float32).reshape(1, CH, 1, 1)
    xn = (x - mean) / std                                         # Normalize
    h = jnp.einsum('oc,bchw->bohw', w1, xn) + b1[None, :, None, None]
    h = jnp.maximum(h, 0.0)                                       # ReLU
    pooled = h.mean(axis=(2, 3))                                  # GAP -> (B, HIDDEN)
    return pooled @ w2.T + b2[None, :]                            # (B, FEAT_DIM)


def init_params(key):
    k1, k2, k3, k4 = jax.random.split(key, 4)
    w1 = jax.random.normal(k1, (HIDDEN, CH), jnp.float32) * (1.0 / CH ** 0.5)
    b1 = jax.random.normal(k2, (HIDDEN,), jnp.float32) * 0.01
    w2 = jax.random.normal(k3, (FEAT_DIM, HIDDEN), jnp.float32) * (1.0 / HIDDEN ** 0.5)
    b2 = jax.random.normal(k4, (FEAT_DIM,), jnp.float32) * 0.01
    return w1, b1, w2, b2


# --------------------------------- main ---------------------------------------
if __name__ == "__main__":
    key = jax.random.PRNGKey(0)
    k_img, k_par = jax.random.split(key)

    # Small analog of the (256, 128) ReID crop: B=32 (2 batch tiles of 16),
    # 3 channels, 32x16 spatial (HW=512, a multiple of 128).
    B, H, W = 32, 32, 16
    images = jax.random.uniform(k_img, (B, CH, H, W), jnp.float32)  # [0,1], NCHW
    params = init_params(k_par)

    feats = reid_forward(images, params)
    feats = jax.block_until_ready(feats)

    assert feats.shape == (B, FEAT_DIM)
    assert feats.dtype == jnp.float32
    assert bool(jnp.all(jnp.isfinite(feats)))

    # Numerical check vs. the pure-f32 reference (bf16 image transport + op
    # reordering only -> loose tolerance).
    ref = reid_reference(images, params)
    max_err = float(jnp.max(jnp.abs(feats - ref)))
    assert max_err < 5e-2, f"max abs err {max_err}"

    print("KERNEL_OK")
</pallas_src>

<mosaic_0001>
module attributes {stable_mosaic.version = 11 : i64} {
  func.func @_reid_embed_kernel(%arg0: i32, %arg1: memref<3x16x512xbf16, #tpu.memory_space<vmem>>, %arg2: memref<96xf32, #tpu.memory_space<smem>>, %arg3: memref<32xf32, #tpu.memory_space<smem>>, %arg4: memref<32x128xf32, #tpu.memory_space<vmem>>, %arg5: memref<1x128xf32, #tpu.memory_space<vmem>>, %arg6: memref<16x128xf32, #tpu.memory_space<vmem>>) attributes {dimension_semantics = [#tpu.dimension_semantics<parallel>], iteration_bounds = array<i64: 2>, scalar_prefetch = 0 : i64, scratch_operands = 0 : i64, tpu.core_type = #tpu.core_type<tc>, window_params = [{transform_indices = @transform_0, window_bounds = array<i64: 3, 16, 512>}, {transform_indices = @transform_1, window_bounds = array<i64: 96>}, {transform_indices = @transform_2, window_bounds = array<i64: 32>}, {pipeline_mode = #tpu.pipeline_mode<synchronous>, transform_indices = @transform_3, window_bounds = array<i64: 32, 128>}, {pipeline_mode = #tpu.pipeline_mode<synchronous>, transform_indices = @transform_4, window_bounds = array<i64: 1, 128>}, {transform_indices = @transform_5, window_bounds = array<i64: 16, 128>}]} {
    %c0 = arith.constant 0 : index
    %c0_0 = arith.constant 0 : index
    %c0_1 = arith.constant 0 : index
    %0 = vector.load %arg1[%c0, %c0_0, %c0_1] : memref<3x16x512xbf16, #tpu.memory_space<vmem>>, vector<1x16x512xbf16>
    %1 = vector.shape_cast %0 : vector<1x16x512xbf16> to vector<16x512xbf16>
    %2 = arith.extf %1 : vector<16x512xbf16> to vector<16x512xf32>
    %c1 = arith.constant 1 : index
    %c0_2 = arith.constant 0 : index
    %c0_3 = arith.constant 0 : index
    %3 = vector.load %arg1[%c1, %c0_2, %c0_3] : memref<3x16x512xbf16, #tpu.memory_space<vmem>>, vector<1x16x512xbf16>
    %4 = vector.shape_cast %3 : vector<1x16x512xbf16> to vector<16x512xbf16>
    %5 = arith.extf %4 : vector<16x512xbf16> to vector<16x512xf32>
    %c2 = arith.constant 2 : index
    %c0_4 = arith.constant 0 : index
    %c0_5 = arith.constant 0 : index
    %6 = vector.load %arg1[%c2, %c0_4, %c0_5] : memref<3x16x512xbf16, #tpu.memory_space<vmem>>, vector<1x16x512xbf16>
    %7 = vector.shape_cast %6 : vector<1x16x512xbf16> to vector<16x512xbf16>
    %8 = arith.extf %7 : vector<16x512xbf16> to vector<16x512xf32>
    %c0_6 = arith.constant 0 : index
    %9 = memref.load %arg2[%c0_6] : memref<96xf32, #tpu.memory_space<smem>>
    %10 = vector.broadcast %9 : f32 to vector<16x512xf32>
    %11 = arith.mulf %2, %10 : vector<16x512xf32>
    %c1_7 = arith.constant 1 : index
    %12 = memref.load %arg2[%c1_7] : memref<96xf32, #tpu.memory_space<smem>>
    %13 = vector.broadcast %12 : f32 to vector<16x512xf32>
    %14 = arith.mulf %5, %13 : vector<16x512xf32>
    %15 = arith.addf %11, %14 : vector<16x512xf32>
    %c2_8 = arith.constant 2 : index
    %16 = memref.load %arg2[%c2_8] : memref<96xf32, #tpu.memory_space<smem>>
    %17 = vector.broadcast %16 : f32 to vector<16x512xf32>
    %18 = arith.mulf %8, %17 : vector<16x512xf32>
    %19 = arith.addf %15, %18 : vector<16x512xf32>
    %c0_9 = arith.constant 0 : index
    %20 = memref.load %arg3[%c0_9] : memref<32xf32, #tpu.memory_space<smem>>
    %21 = vector.broadcast %20 : f32 to vector<16x512xf32>
    %22 = arith.addf %19, %21 : vector<16x512xf32>
    %cst = arith.constant 0.000000e+00 : f32
    %23 = vector.broadcast %cst : f32 to vector<16x512xf32>
    %24 = arith.maximumf %22, %23 : vector<16x512xf32>
    %cst_10 = arith.constant dense<0.000000e+00> : vector<16xf32>
    %25 = vector.multi_reduction <add>, %24, %cst_10 [1] : vector<16x512xf32> to vector<16xf32>
    %26 = vector.shape_cast %25 : vector<16xf32> to vector<16x1xf32>
    %c3 = arith.constant 3 : index
    %27 = memref.load %arg2[%c3] : memref<96xf32, #tpu.memory_space<smem>>
    %28 = vector.broadcast %27 : f32 to vector<16x512xf32>
    %29 = arith.mulf %2, %28 : vector<16x512xf32>
    %c4 = arith.constant 4 : index
    %30 = memref.load %arg2[%c4] : memref<96xf32, #tpu.memory_space<smem>>
    %31 = vector.broadcast %30 : f32 to vector<16x512xf32>
    %32 = arith.mulf %5, %31 : vector<16x512xf32>
    %33 = arith.addf %29, %32 : vector<16x512xf32>
    %c5 = arith.constant 5 : index
    %34 = memref.load %arg2[%c5] : memref<96xf32, #tpu.memory_space<smem>>
    %35 = vector.broadcast %34 : f32 to vector<16x512xf32>
    %36 = arith.mulf %8, %35 : vector<16x512xf32>
    %37 = arith.addf %33, %36 : vector<16x512xf32>
    %c1_11 = arith.constant 1 : index
    %38 = memref.load %arg3[%c1_11] : memref<32xf32, #tpu.memory_space<smem>>
    %39 = vector.broadcast %38 : f32 to vector<16x512xf32>
    %40 = arith.addf %37, %39 : vector<16x512xf32>
    %cst_12 = arith.constant 0.000000e+00 : f32
    %41 = vector.broadcast %cst_12 : f32 to vector<16x512xf32>
    %42 = arith.maximumf %40, %41 : vector<16x512xf32>
    %cst_13 = arith.constant dense<0.000000e+00> : vector<16xf32>
    %43 = vector.multi_reduction <add>, %42, %cst_13 [1] : vector<16x512xf32> to vector<16xf32>
    %44 = vector.shape_cast %43 : vector<16xf32> to vector<16x1xf32>
    %c6 = arith.constant 6 : index
    %45 = memref.load %arg2[%c6] : memref<96xf32, #tpu.memory_space<smem>>
    %46 = vector.broadcast %45 : f32 to vector<16x512xf32>
    %47 = arith.mulf %2, %46 : vector<16x512xf32>
    %c7 = arith.constant 7 : index
    %48 = memref.load %arg2[%c7] : memref<96xf32, #tpu.memory_space<smem>>
    %49 = vector.broadcast %48 : f32 to vector<16x512xf32>
    %50 = arith.mulf %5, %49 : vector<16x512xf32>
    %51 = arith.addf %47, %50 : vector<16x512xf32>
    %c8 = arith.constant 8 : index
    %52 = memref.load %arg2[%c8] : memref<96xf32, #tpu.memory_space<smem>>
    %53 = vector.broadcast %52 : f32 to vector<16x512xf32>
    %54 = arith.mulf %8, %53 : vector<16x512xf32>
    %55 = arith.addf %51, %54 : vector<16x512xf32>
    %c2_14 = arith.constant 2 : index
    %56 = memref.load %arg3[%c2_14] : memref<32xf32, #tpu.memory_space<smem>>
    %57 = vector.broadcast %56 : f32 to vector<16x512xf32>
    %58 = arith.addf %55, %57 : vector<16x512xf32>
    %cst_15 = arith.constant 0.000000e+00 : f32
    %59 = vector.broadcast %cst_15 : f32 to vector<16x512xf32>
    %60 = arith.maximumf %58, %59 : vector<16x512xf32>
    %cst_16 = arith.constant dense<0.000000e+00> : vector<16xf32>
    %61 = vector.multi_reduction <add>, %60, %cst_16 [1] : vector<16x512xf32> to vector<16xf32>
    %62 = vector.shape_cast %61 : vector<16xf32> to vector<16x1xf32>
    %c9 = arith.constant 9 : index
    %63 = memref.load %arg2[%c9] : memref<96xf32, #tpu.memory_space<smem>>
    %64 = vector.broadcast %63 : f32 to vector<16x512xf32>
    %65 = arith.mulf %2, %64 : vector<16x512xf32>
    %c10 = arith.constant 10 : index
    %66 = memref.load %arg2[%c10] : memref<96xf32, #tpu.memory_space<smem>>
    %67 = vector.broadcast %66 : f32 to vector<16x512xf32>
    %68 = arith.mulf %5, %67 : vector<16x512xf32>
    %69 = arith.addf %65, %68 : vector<16x512xf32>
    %c11 = arith.constant 11 : index
    %70 = memref.load %arg2[%c11] : memref<96xf32, #tpu.memory_space<smem>>
    %71 = vector.broadcast %70 : f32 to vector<16x512xf32>
    %72 = arith.mulf %8, %71 : vector<16x512xf32>
    %73 = arith.addf %69, %72 : vector<16x512xf32>
    %c3_17 = arith.constant 3 : index
    %74 = memref.load %arg3[%c3_17] : memref<32xf32, #tpu.memory_space<smem>>
    %75 = vector.broadcast %74 : f32 to vector<16x512xf32>
    %76 = arith.addf %73, %75 : vector<16x512xf32>
    %cst_18 = arith.constant 0.000000e+00 : f32
    %77 = vector.broadcast %cst_18 : f32 to vector<16x512xf32>
    %78 = arith.maximumf %76, %77 : vector<16x512xf32>
    %cst_19 = arith.constant dense<0.000000e+00> : vector<16xf32>
    %79 = vector.multi_reduction <add>, %78, %cst_19 [1] : vector<16x512xf32> to vector<16xf32>
    %80 = vector.shape_cast %79 : vector<16xf32> to vector<16x1xf32>
    %c12 = arith.constant 12 : index
    %81 = memref.load %arg2[%c12] : memref<96xf32, #tpu.memory_space<smem>>
    %82 = vector.broadcast %81 : f32 to vector<16x512xf32>
    %83 = arith.mulf %2, %82 : vector<16x512xf32>
    %c13 = arith.constant 13 : index
    %84 = memref.load %arg2[%c13] : memref<96xf32, #tpu.memory_space<smem>>
    %85 = vector.broadcast %84 : f32 to vector<16x512xf32>
    %86 = arith.mulf %5, %85 : vector<16x512xf32>
    %87 = arith.addf %83, %86 : vector<16x512xf32>
    %c14 = arith.constant 14 : index
    %88 = memref.load %arg2[%c14] : memref<96xf32, #tpu.memory_space<smem>>
    %89 = vector.broadcast %88 : f32 to vector<16x512xf32>
    %90 = arith.mulf %8, %89 : vector<16x512xf32>
    %91 = arith.addf %87, %90 : vector<16x512xf32>
    %c4_20 = arith.constant 4 : index
    %92 = memref.load %arg3[%c4_20] : memref<32xf32, #tpu.memory_space<smem>>
    %93 = vector.broadcast %92 : f32 to vector<16x512xf32>
    %94 = arith.addf %91, %93 : vector<16x512xf32>
    %cst_21 = arith.constant 0.000000e+00 : f32
    %95 = vector.broadcast %cst_21 : f32 to vector<16x512xf32>
    %96 = arith.maximumf %94, %95 : vector<16x512xf32>
    %cst_22 = arith.constant dense<0.000000e+00> : vector<16xf32>
    %97 = vector.multi_reduction <add>, %96, %cst_22 [1] : vector<16x512xf32> to vector<16xf32>
    %98 = vector.shape_cast %97 : vector<16xf32> to vector<16x1xf32>
    %c15 = arith.constant 15 : index
    %99 = memref.load %arg2[%c15] : memref<96xf32, #tpu.memory_space<smem>>
    %100 = vector.broadcast %99 : f32 to vector<16x512xf32>
    %101 = arith.mulf %2, %100 : vector<16x512xf32>
    %c16 = arith.constant 16 : index
    %102 = memref.load %arg2[%c16] : memref<96xf32, #tpu.memory_space<smem>>
    %103 = vector.broadcast %102 : f32 to vector<16x512xf32>
    %104 = arith.mulf %5, %103 : vector<16x512xf32>
    %105 = arith.addf %101, %104 : vector<16x512xf32>
    %c17 = arith.constant 17 : index
    %106 = memref.load %arg2[%c17] : memref<96xf32, #tpu.memory_space<smem>>
    %107 = vector.broadcast %106 : f32 to vector<16x512xf32>
    %108 = arith.mulf %8, %107 : vector<16x512xf32>
    %109 = arith.addf %105, %108 : vector<16x512xf32>
    %c5_23 = arith.constant 5 : index
    %110 = memref.load %arg3[%c5_23] : memref<32xf32, #tpu.memory_space<smem>>
    %111 = vector.broadcast %110 : f32 to vector<16x512xf32>
    %112 = arith.addf %109, %111 : vector<16x512xf32>
    %cst_24 = arith.constant 0.000000e+00 : f32
    %113 = vector.broadcast %cst_24 : f32 to vector<16x512xf32>
    %114 = arith.maximumf %112, %113 : vector<16x512xf32>
    %cst_25 = arith.constant dense<0.000000e+00> : vector<16xf32>
    %115 = vector.multi_reduction <add>, %114, %cst_25 [1] : vector<16x512xf32> to vector<16xf32>
    %116 = vector.shape_cast %115 : vector<16xf32> to vector<16x1xf32>
    %c18 = arith.constant 18 : index
    %117 = memref.load %arg2[%c18] : memref<96xf32, #tpu.memory_space<smem>>
    %118 = vector.broadcast %117 : f32 to vector<16x512xf32>
    %119 = arith.mulf %2, %118 : vector<16x512xf32>
    %c19 = arith.constant 19 : index
    %120 = memref.load %arg2[%c19] : memref<96xf32, #tpu.memory_space<smem>>
    %121 = vector.broadcast %120 : f32 to vector<16x512xf32>
    %122 = arith.mulf %5, %121 : vector<16x512xf32>
    %123 = arith.addf %119, %122 : vector<16x512xf32>
    %c20 = arith.constant 20 : index
    %124 = memref.load %arg2[%c20] : memref<96xf32, #tpu.memory_space<smem>>
    %125 = vector.broadcast %124 : f32 to vector<16x512xf32>
    %126 = arith.mulf %8, %125 : vector<16x512xf32>
    %127 = arith.addf %123, %126 : vector<16x512xf32>
    %c6_26 = arith.constant 6 : index
    %128 = memref.load %arg3[%c6_26] : memref<32xf32, #tpu.memory_space<smem>>
    %129 = vector.broadcast %128 : f32 to vector<16x512xf32>
    %130 = arith.addf %127, %129 : vector<16x512xf32>
    %cst_27 = arith.constant 0.000000e+00 : f32
    %131 = vector.broadcast %cst_27 : f32 to vector<16x512xf32>
    %132 = arith.maximumf %130, %131 : vector<16x512xf32>
    %cst_28 = arith.constant dense<0.000000e+00> : vector<16xf32>
    %133 = vector.multi_reduction <add>, %132, %cst_28 [1] : vector<16x512xf32> to vector<16xf32>
    %134 = vector.shape_cast %133 : vector<16xf32> to vector<16x1xf32>
    %c21 = arith.constant 21 : index
    %135 = memref.load %arg2[%c21] : memref<96xf32, #tpu.memory_space<smem>>
    %136 = vector.broadcast %135 : f32 to vector<16x512xf32>
    %137 = arith.mulf %2, %136 : vector<16x512xf32>
    %c22 = arith.constant 22 : index
    %138 = memref.load %arg2[%c22] : memref<96xf32, #tpu.memory_space<smem>>
    %139 = vector.broadcast %138 : f32 to vector<16x512xf32>
    %140 = arith.mulf %5, %139 : vector<16x512xf32>
    %141 = arith.addf %137, %140 : vector<16x512xf32>
    %c23 = arith.constant 23 : index
    %142 = memref.load %arg2[%c23] : memref<96xf32, #tpu.memory_space<smem>>
    %143 = vector.broadcast %142 : f32 to vector<16x512xf32>
    %144 = arith.mulf %8, %143 : vector<16x512xf32>
    %145 = arith.addf %141, %144 : vector<16x512xf32>
    %c7_29 = arith.constant 7 : index
    %146 = memref.load %arg3[%c7_29] : memref<32xf32, #tpu.memory_space<smem>>
    %147 = vector.broadcast %146 : f32 to vector<16x512xf32>
    %148 = arith.addf %145, %147 : vector<16x512xf32>
    %cst_30 = arith.constant 0.000000e+00 : f32
    %149 = vector.broadcast %cst_30 : f32 to vector<16x512xf32>
    %150 = arith.maximumf %148, %149 : vector<16x512xf32>
    %cst_31 = arith.constant dense<0.000000e+00> : vector<16xf32>
    %151 = vector.multi_reduction <add>, %150, %cst_31 [1] : vector<16x512xf32> to vector<16xf32>
    %152 = vector.shape_cast %151 : vector<16xf32> to vector<16x1xf32>
    %c24 = arith.constant 24 : index
    %153 = memref.load %arg2[%c24] : memref<96xf32, #tpu.memory_space<smem>>
    %154 = vector.broadcast %153 : f32 to vector<16x512xf32>
    %155 = arith.mulf %2, %154 : vector<16x512xf32>
    %c25 = arith.constant 25 : index
    %156 = memref.load %arg2[%c25] : memref<96xf32, #tpu.memory_space<smem>>
    %157 = vector.broadcast %156 : f32 to vector<16x512xf32>
    %158 = arith.mulf %5, %157 : vector<16x512xf32>
    %159 = arith.addf %155, %158 : vector<16x512xf32>
    %c26 = arith.constant 26 : index
    %160 = memref.load %arg2[%c26] : memref<96xf32, #tpu.memory_space<smem>>
    %161 = vector.broadcast %160 : f32 to vector<16x512xf32>
    %162 = arith.mulf %8, %161 : vector<16x512xf32>
    %163 = arith.addf %159, %162 : vector<16x512xf32>
    %c8_32 = arith.constant 8 : index
    %164 = memref.load %arg3[%c8_32] : memref<32xf32, #tpu.memory_space<smem>>
    %165 = vector.broadcast %164 : f32 to vector<16x512xf32>
    %166 = arith.addf %163, %165 : vector<16x512xf32>
    %cst_33 = arith.constant 0.000000e+00 : f32
    %167 = vector.broadcast %cst_33 : f32 to vector<16x512xf32>
    %168 = arith.maximumf %166, %167 : vector<16x512xf32>
    %cst_34 = arith.constant dense<0.000000e+00> : vector<16xf32>
    %169 = vector.multi_reduction <add>, %168, %cst_34 [1] : vector<16x512xf32> to vector<16xf32>
    %170 = vector.shape_cast %169 : vector<16xf32> to vector<16x1xf32>
    %c27 = arith.constant 27 : index
    %171 = memref.load %arg2[%c27] : memref<96xf32, #tpu.memory_space<smem>>
    %172 = vector.broadcast %171 : f32 to vector<16x512xf32>
    %173 = arith.mulf %2, %172 : vector<16x512xf32>
    %c28 = arith.constant 28 : index
    %174 = memref.load %arg2[%c28] : memref<96xf32, #tpu.memory_space<smem>>
    %175 = vector.broadcast %174 : f32 to vector<16x512xf32>
    %176 = arith.mulf %5, %175 : vector<16x512xf32>
    %177 = arith.addf %173, %176 : vector<16x512xf32>
    %c29 = arith.constant 29 : index
    %178 = memref.load %arg2[%c29] : memref<96xf32, #tpu.memory_space<smem>>
    %179 = vector.broadcast %178 : f32 to vector<16x512xf32>
    %180 = arith.mulf %8, %179 : vector<16x512xf32>
    %181 = arith.addf %177, %180 : vector<16x512xf32>
    %c9_35 = arith.constant 9 : index
    %182 = memref.load %arg3[%c9_35] : memref<32xf32, #tpu.memory_space<smem>>
    %183 = vector.broadcast %182 : f32 to vector<16x512xf32>
    %184 = arith.addf %181, %183 : vector<16x512xf32>
    %cst_36 = arith.constant 0.000000e+00 : f32
    %185 = vector.broadcast %cst_36 : f32 to vector<16x512xf32>
    %186 = arith.maximumf %184, %185 : vector<16x512xf32>
    %cst_37 = arith.constant dense<0.000000e+00> : vector<16xf32>
    %187 = vector.multi_reduction <add>, %186, %cst_37 [1] : vector<16x512xf32> to vector<16xf32>
    %188 = vector.shape_cast %187 : vector<16xf32> to vector<16x1xf32>
    %c30 = arith.constant 30 : index
    %189 = memref.load %arg2[%c30] : memref<96xf32, #tpu.memory_space<smem>>
    %190 = vector.broadcast %189 : f32 to vector<16x512xf32>
    %191 = arith.mulf %2, %190 : vector<16x512xf32>
    %c31 = arith.constant 31 : index
    %192 = memref.load %arg2[%c31] : memref<96xf32, #tpu.memory_space<smem>>
    %193 = vector.broadcast %192 : f32 to vector<16x512xf32>
    %194 = arith.mulf %5, %193 : vector<16x512xf32>
    %195 = arith.addf %191, %194 : vector<16x512xf32>
    %c32 = arith.constant 32 : index
    %196 = memref.load %arg2[%c32] : memref<96xf32, #tpu.memory_space<smem>>
    %197 = vector.broadcast %196 : f32 to vector<16x512xf32>
    %198 = arith.mulf %8, %197 : vector<16x512xf32>
    %199 = arith.addf %195, %198 : vector<16x512xf32>
    %c10_38 = arith.constant 10 : index
    %200 = memref.load %arg3[%c10_38] : memref<32xf32, #tpu.memory_space<smem>>
    %201 = vector.broadcast %200 : f32 to vector<16x512xf32>
    %202 = arith.addf %199, %201 : vector<16x512xf32>
    %cst_39 = arith.constant 0.000000e+00 : f32
    %203 = vector.broadcast %cst_39 : f32 to vector<16x512xf32>
    %204 = arith.maximumf %202, %203 : vector<16x512xf32>
    %cst_40 = arith.constant dense<0.000000e+00> : vector<16xf32>
    %205 = vector.multi_reduction <add>, %204, %cst_40 [1] : vector<16x512xf32> to vector<16xf32>
    %206 = vector.shape_cast %205 : vector<16xf32> to vector<16x1xf32>
    %c33 = arith.constant 33 : index
    %207 = memref.load %arg2[%c33] : memref<96xf32, #tpu.memory_space<smem>>
    %208 = vector.broadcast %207 : f32 to vector<16x512xf32>
    %209 = arith.mulf %2, %208 : vector<16x512xf32>
    %c34 = arith.constant 34 : index
    %210 = memref.load %arg2[%c34] : memref<96xf32, #tpu.memory_space<smem>>
    %211 = vector.broadcast %210 : f32 to vector<16x512xf32>
    %212 = arith.mulf %5, %211 : vector<16x512xf32>
    %213 = arith.addf %209, %212 : vector<16x512xf32>
    %c35 = arith.constant 35 : index
    %214 = memref.load %arg2[%c35] : memref<96xf32, #tpu.memory_space<smem>>
    %215 = vector.broadcast %214 : f32 to vector<16x512xf32>
    %216 = arith.mulf %8, %215 : vector<16x512xf32>
    %217 = arith.addf %213, %216 : vector<16x512xf32>
    %c11_41 = arith.constant 11 : index
    %218 = memref.load %arg3[%c11_41] : memref<32xf32, #tpu.memory_space<smem>>
    %219 = vector.broadcast %218 : f32 to vector<16x512xf32>
    %220 = arith.addf %217, %219 : vector<16x512xf32>
    %cst_42 = arith.constant 0.000000e+00 : f32
    %221 = vector.broadcast %cst_42 : f32 to vector<16x512xf32>
    %222 = arith.maximumf %220, %221 : vector<16x512xf32>
    %cst_43 = arith.constant dense<0.000000e+00> : vector<16xf32>
    %223 = vector.multi_reduction <add>, %222, %cst_43 [1] : vector<16x512xf32> to vector<16xf32>
    %224 = vector.shape_cast %223 : vector<16xf32> to vector<16x1xf32>
    %c36 = arith.constant 36 : index
    %225 = memref.load %arg2[%c36] : memref<96xf32, #tpu.memory_space<smem>>
    %226 = vector.broadcast %225 : f32 to vector<16x512xf32>
    %227 = arith.mulf %2, %226 : vector<16x512xf32>
    %c37 = arith.constant 37 : index
    %228 = memref.load %arg2[%c37] : memref<96xf32, #tpu.memory_space<smem>>
    %229 = vector.broadcast %228 : f32 to vector<16x512xf32>
    %230 = arith.mulf %5, %229 : vector<16x512xf32>
    %231 = arith.addf %227, %230 : vector<16x512xf32>
    %c38 = arith.constant 38 : index
    %232 = memref.load %arg2[%c38] : memref<96xf32, #tpu.memory_space<smem>>
    %233 = vector.broadcast %232 : f32 to vector<16x512xf32>
    %234 = arith.mulf %8, %233 : vector<16x512xf32>
    %235 = arith.addf %231, %234 : vector<16x512xf32>
    %c12_44 = arith.constant 12 : index
    %236 = memref.load %arg3[%c12_44] : memref<32xf32, #tpu.memory_space<smem>>
    %237 = vector.broadcast %236 : f32 to vector<16x512xf32>
    %238 = arith.addf %235, %237 : vector<16x512xf32>
    %cst_45 = arith.constant 0.000000e+00 : f32
    %239 = vector.broadcast %cst_45 : f32 to vector<16x512xf32>
    %240 = arith.maximumf %238, %239 : vector<16x512xf32>
    %cst_46 = arith.constant dense<0.000000e+00> : vector<16xf32>
    %241 = vector.multi_reduction <add>, %240, %cst_46 [1] : vector<16x512xf32> to vector<16xf32>
    %242 = vector.shape_cast %241 : vector<16xf32> to vector<16x1xf32>
    %c39 = arith.constant 39 : index
    %243 = memref.load %arg2[%c39] : memref<96xf32, #tpu.memory_space<smem>>
    %244 = vector.broadcast %243 : f32 to vector<16x512xf32>
    %245 = arith.mulf %2, %244 : vector<16x512xf32>
    %c40 = arith.constant 40 : index
    %246 = memref.load %arg2[%c40] : memref<96xf32, #tpu.memory_space<smem>>
    %247 = vector.broadcast %246 : f32 to vector<16x512xf32>
    %248 = arith.mulf %5, %247 : vector<16x512xf32>
    %249 = arith.addf %245, %248 : vector<16x512xf32>
    %c41 = arith.constant 41 : index
    %250 = memref.load %arg2[%c41] : memref<96xf32, #tpu.memory_space<smem>>
    %251 = vector.broadcast %250 : f32 to vector<16x512xf32>
    %252 = arith.mulf %8, %251 : vector<16x512xf32>
    %253 = arith.addf %249, %252 : vector<16x512xf32>
    %c13_47 = arith.constant 13 : index
    %254 = memref.load %arg3[%c13_47] : memref<32xf32, #tpu.memory_space<smem>>
    %255 = vector.broadcast %254 : f32 to vector<16x512xf32>
    %256 = arith.addf %253, %255 : vector<16x512xf32>
    %cst_48 = arith.constant 0.000000e+00 : f32
    %257 = vector.broadcast %cst_48 : f32 to vector<16x512xf32>
    %258 = arith.maximumf %256, %257 : vector<16x512xf32>
    %cst_49 = arith.constant dense<0.000000e+00> : vector<16xf32>
    %259 = vector.multi_reduction <add>, %258, %cst_49 [1] : vector<16x512xf32> to vector<16xf32>
    %260 = vector.shape_cast %259 : vector<16xf32> to vector<16x1xf32>
    %c42 = arith.constant 42 : index
    %261 = memref.load %arg2[%c42] : memref<96xf32, #tpu.memory_space<smem>>
    %262 = vector.broadcast %261 : f32 to vector<16x512xf32>
    %263 = arith.mulf %2, %262 : vector<16x512xf32>
    %c43 = arith.constant 43 : index
    %264 = memref.load %arg2[%c43] : memref<96xf32, #tpu.memory_space<smem>>
    %265 = vector.broadcast %264 : f32 to vector<16x512xf32>
    %266 = arith.mulf %5, %265 : vector<16x512xf32>
    %267 = arith.addf %263, %266 : vector<16x512xf32>
    %c44 = arith.constant 44 : index
    %268 = memref.load %arg2[%c44] : memref<96xf32, #tpu.memory_space<smem>>
    %269 = vector.broadcast %268 : f32 to vector<16x512xf32>
    %270 = arith.mulf %8, %269 : vector<16x512xf32>
    %271 = arith.addf %267, %270 : vector<16x512xf32>
    %c14_50 = arith.constant 14 : index
    %272 = memref.load %arg3[%c14_50] : memref<32xf32, #tpu.memory_space<smem>>
    %273 = vector.broadcast %272 : f32 to vector<16x512xf32>
    %274 = arith.addf %271, %273 : vector<16x512xf32>
    %cst_51 = arith.constant 0.000000e+00 : f32
    %275 = vector.broadcast %cst_51 : f32 to vector<16x512xf32>
    %276 = arith.maximumf %274, %275 : vector<16x512xf32>
    %cst_52 = arith.constant dense<0.000000e+00> : vector<16xf32>
    %277 = vector.multi_reduction <add>, %276, %cst_52 [1] : vector<16x512xf32> to vector<16xf32>
    %278 = vector.shape_cast %277 : vector<16xf32> to vector<16x1xf32>
    %c45 = arith.constant 45 : index
    %279 = memref.load %arg2[%c45] : memref<96xf32, #tpu.memory_space<smem>>
    %280 = vector.broadcast %279 : f32 to vector<16x512xf32>
    %281 = arith.mulf %2, %280 : vector<16x512xf32>
    %c46 = arith.constant 46 : index
    %282 = memref.load %arg2[%c46] : memref<96xf32, #tpu.memory_space<smem>>
    %283 = vector.broadcast %282 : f32 to vector<16x512xf32>
    %284 = arith.mulf %5, %283 : vector<16x512xf32>
    %285 = arith.addf %281, %284 : vector<16x512xf32>
    %c47 = arith.constant 47 : index
    %286 = memref.load %arg2[%c47] : memref<96xf32, #tpu.memory_space<smem>>
    %287 = vector.broadcast %286 : f32 to vector<16x512xf32>
    %288 = arith.mulf %8, %287 : vector<16x512xf32>
    %289 = arith.addf %285, %288 : vector<16x512xf32>
    %c15_53 = arith.constant 15 : index
    %290 = memref.load %arg3[%c15_53] : memref<32xf32, #tpu.memory_space<smem>>
    %291 = vector.broadcast %290 : f32 to vector<16x512xf32>
    %292 = arith.addf %289, %291 : vector<16x512xf32>
    %cst_54 = arith.constant 0.000000e+00 : f32
    %293 = vector.broadcast %cst_54 : f32 to vector<16x512xf32>
    %294 = arith.maximumf %292, %293 : vector<16x512xf32>
    %cst_55 = arith.constant dense<0.000000e+00> : vector<16xf32>
    %295 = vector.multi_reduction <add>, %294, %cst_55 [1] : vector<16x512xf32> to vector<16xf32>
    %296 = vector.shape_cast %295 : vector<16xf32> to vector<16x1xf32>
    %c48 = arith.constant 48 : index
    %297 = memref.load %arg2[%c48] : memref<96xf32, #tpu.memory_space<smem>>
    %298 = vector.broadcast %297 : f32 to vector<16x512xf32>
    %299 = arith.mulf %2, %298 : vector<16x512xf32>
    %c49 = arith.constant 49 : index
    %300 = memref.load %arg2[%c49] : memref<96xf32, #tpu.memory_space<smem>>
    %301 = vector.broadcast %300 : f32 to vector<16x512xf32>
    %302 = arith.mulf %5, %301 : vector<16x512xf32>
    %303 = arith.addf %299, %302 : vector<16x512xf32>
    %c50 = arith.constant 50 : index
    %304 = memref.load %arg2[%c50] : memref<96xf32, #tpu.memory_space<smem>>
    %305 = vector.broadcast %304 : f32 to vector<16x512xf32>
    %306 = arith.mulf %8, %305 : vector<16x512xf32>
    %307 = arith.addf %303, %306 : vector<16x512xf32>
    %c16_56 = arith.constant 16 : index
    %308 = memref.load %arg3[%c16_56] : memref<32xf32, #tpu.memory_space<smem>>
    %309 = vector.broadcast %308 : f32 to vector<16x512xf32>
    %310 = arith.addf %307, %309 : vector<16x512xf32>
    %cst_57 = arith.constant 0.000000e+00 : f32
    %311 = vector.broadcast %cst_57 : f32 to vector<16x512xf32>
    %312 = arith.maximumf %310, %311 : vector<16x512xf32>
    %cst_58 = arith.constant dense<0.000000e+00> : vector<16xf32>
    %313 = vector.multi_reduction <add>, %312, %cst_58 [1] : vector<16x512xf32> to vector<16xf32>
    %314 = vector.shape_cast %313 : vector<16xf32> to vector<16x1xf32>
    %c51 = arith.constant 51 : index
    %315 = memref.load %arg2[%c51] : memref<96xf32, #tpu.memory_space<smem>>
    %316 = vector.broadcast %315 : f32 to vector<16x512xf32>
    %317 = arith.mulf %2, %316 : vector<16x512xf32>
    %c52 = arith.constant 52 : index
    %318 = memref.load %arg2[%c52] : memref<96xf32, #tpu.memory_space<smem>>
    %319 = vector.broadcast %318 : f32 to vector<16x512xf32>
    %320 = arith.mulf %5, %319 : vector<16x512xf32>
    %321 = arith.addf %317, %320 : vector<16x512xf32>
    %c53 = arith.constant 53 : index
    %322 = memref.load %arg2[%c53] : memref<96xf32, #tpu.memory_space<smem>>
    %323 = vector.broadcast %322 : f32 to vector<16x512xf32>
    %324 = arith.mulf %8, %323 : vector<16x512xf32>
    %325 = arith.addf %321, %324 : vector<16x512xf32>
    %c17_59 = arith.constant 17 : index
    %326 = memref.load %arg3[%c17_59] : memref<32xf32, #tpu.memory_space<smem>>
    %327 = vector.broadcast %326 : f32 to vector<16x512xf32>
    %328 = arith.addf %325, %327 : vector<16x512xf32>
    %cst_60 = arith.constant 0.000000e+00 : f32
    %329 = vector.broadcast %cst_60 : f32 to vector<16x512xf32>
    %330 = arith.maximumf %328, %329 : vector<16x512xf32>
    %cst_61 = arith.constant dense<0.000000e+00> : vector<16xf32>
    %331 = vector.multi_reduction <add>, %330, %cst_61 [1] : vector<16x512xf32> to vector<16xf32>
    %332 = vector.shape_cast %331 : vector<16xf32> to vector<16x1xf32>
    %c54 = arith.constant 54 : index
    %333 = memref.load %arg2[%c54] : memref<96xf32, #tpu.memory_space<smem>>
    %334 = vector.broadcast %333 : f32 to vector<16x512xf32>
    %335 = arith.mulf %2, %334 : vector<16x512xf32>
    %c55 = arith.constant 55 : index
    %336 = memref.load %arg2[%c55] : memref<96xf32, #tpu.memory_space<smem>>
    %337 = vector.broadcast %336 : f32 to vector<16x512xf32>
    %338 = arith.mulf %5, %337 : vector<16x512xf32>
    %339 = arith.addf %335, %338 : vector<16x512xf32>
    %c56 = arith.constant 56 : index
    %340 = memref.load %arg2[%c56] : memref<96xf32, #tpu.memory_space<smem>>
    %341 = vector.broadcast %340 : f32 to vector<16x512xf32>
    %342 = arith.mulf %8, %341 : vector<16x512xf32>
    %343 = arith.addf %339, %342 : vector<16x512xf32>
    %c18_62 = arith.constant 18 : index
    %344 = memref.load %arg3[%c18_62] : memref<32xf32, #tpu.memory_space<smem>>
    %345 = vector.broadcast %344 : f32 to vector<16x512xf32>
    %346 = arith.addf %343, %345 : vector<16x512xf32>
    %cst_63 = arith.constant 0.000000e+00 : f32
    %347 = vector.broadcast %cst_63 : f32 to vector<16x512xf32>
    %348 = arith.maximumf %346, %347 : vector<16x512xf32>
    %cst_64 = arith.constant dense<0.000000e+00> : vector<16xf32>
    %349 = vector.multi_reduction <add>, %348, %cst_64 [1] : vector<16x512xf32> to vector<16xf32>
    %350 = vector.shape_cast %349 : vector<16xf32> to vector<16x1xf32>
    %c57 = arith.constant 57 : index
    %351 = memref.load %arg2[%c57] : memref<96xf32, #tpu.memory_space<smem>>
    %352 = vector.broadcast %351 : f32 to vector<16x512xf32>
    %353 = arith.mulf %2, %352 : vector<16x512xf32>
    %c58 = arith.constant 58 : index
    %354 = memref.load %arg2[%c58] : memref<96xf32, #tpu.memory_space<smem>>
    %355 = vector.broadcast %354 : f32 to vector<16x512xf32>
    %356 = arith.mulf %5, %355 : vector<16x512xf32>
    %357 = arith.addf %353, %356 : vector<16x512xf32>
    %c59 = arith.constant 59 : index
    %358 = memref.load %arg2[%c59] : memref<96xf32, #tpu.memory_space<smem>>
    %359 = vector.broadcast %358 : f32 to vector<16x512xf32>
    %360 = arith.mulf %8, %359 : vector<16x512xf32>
    %361 = arith.addf %357, %360 : vector<16x512xf32>
    %c19_65 = arith.constant 19 : index
    %362 = memref.load %arg3[%c19_65] : memref<32xf32, #tpu.memory_space<smem>>
    %363 = vector.broadcast %362 : f32 to vector<16x512xf32>
    %364 = arith.addf %361, %363 : vector<16x512xf32>
    %cst_66 = arith.constant 0.000000e+00 : f32
    %365 = vector.broadcast %cst_66 : f32 to vector<16x512xf32>
    %366 = arith.maximumf %364, %365 : vector<16x512xf32>
    %cst_67 = arith.constant dense<0.000000e+00> : vector<16xf32>
    %367 = vector.multi_reduction <add>, %366, %cst_67 [1] : vector<16x512xf32> to vector<16xf32>
    %368 = vector.shape_cast %367 : vector<16xf32> to vector<16x1xf32>
    %c60 = arith.constant 60 : index
    %369 = memref.load %arg2[%c60] : memref<96xf32, #tpu.memory_space<smem>>
    %370 = vector.broadcast %369 : f32 to vector<16x512xf32>
    %371 = arith.mulf %2, %370 : vector<16x512xf32>
    %c61 = arith.constant 61 : index
    %372 = memref.load %arg2[%c61] : memref<96xf32, #tpu.memory_space<smem>>
    %373 = vector.broadcast %372 : f32 to vector<16x512xf32>
    %374 = arith.mulf %5, %373 : vector<16x512xf32>
    %375 = arith.addf %371, %374 : vector<16x512xf32>
    %c62 = arith.constant 62 : index
    %376 = memref.load %arg2[%c62] : memref<96xf32, #tpu.memory_space<smem>>
    %377 = vector.broadcast %376 : f32 to vector<16x512xf32>
    %378 = arith.mulf %8, %377 : vector<16x512xf32>
    %379 = arith.addf %375, %378 : vector<16x512xf32>
    %c20_68 = arith.constant 20 : index
    %380 = memref.load %arg3[%c20_68] : memref<32xf32, #tpu.memory_space<smem>>
    %381 = vector.broadcast %380 : f32 to vector<16x512xf32>
    %382 = arith.addf %379, %381 : vector<16x512xf32>
    %cst_69 = arith.constant 0.000000e+00 : f32
    %383 = vector.broadcast %cst_69 : f32 to vector<16x512xf32>
    %384 = arith.maximumf %382, %383 : vector<16x512xf32>
    %cst_70 = arith.constant dense<0.000000e+00> : vector<16xf32>
    %385 = vector.multi_reduction <add>, %384, %cst_70 [1] : vector<16x512xf32> to vector<16xf32>
    %386 = vector.shape_cast %385 : vector<16xf32> to vector<16x1xf32>
    %c63 = arith.constant 63 : index
    %387 = memref.load %arg2[%c63] : memref<96xf32, #tpu.memory_space<smem>>
    %388 = vector.broadcast %387 : f32 to vector<16x512xf32>
    %389 = arith.mulf %2, %388 : vector<16x512xf32>
    %c64 = arith.constant 64 : index
    %390 = memref.load %arg2[%c64] : memref<96xf32, #tpu.memory_space<smem>>
    %391 = vector.broadcast %390 : f32 to vector<16x512xf32>
    %392 = arith.mulf %5, %391 : vector<16x512xf32>
    %393 = arith.addf %389, %392 : vector<16x512xf32>
    %c65 = arith.constant 65 : index
    %394 = memref.load %arg2[%c65] : memref<96xf32, #tpu.memory_space<smem>>
    %395 = vector.broadcast %394 : f32 to vector<16x512xf32>
    %396 = arith.mulf %8, %395 : vector<16x512xf32>
    %397 = arith.addf %393, %396 : vector<16x512xf32>
    %c21_71 = arith.constant 21 : index
    %398 = memref.load %arg3[%c21_71] : memref<32xf32, #tpu.memory_space<smem>>
    %399 = vector.broadcast %398 : f32 to vector<16x512xf32>
    %400 = arith.addf %397, %399 : vector<16x512xf32>
    %cst_72 = arith.constant 0.000000e+00 : f32
    %401 = vector.broadcast %cst_72 : f32 to vector<16x512xf32>
    %402 = arith.maximumf %400, %401 : vector<16x512xf32>
    %cst_73 = arith.constant dense<0.000000e+00> : vector<16xf32>
    %403 = vector.multi_reduction <add>, %402, %cst_73 [1] : vector<16x512xf32> to vector<16xf32>
    %404 = vector.shape_cast %403 : vector<16xf32> to vector<16x1xf32>
    %c66 = arith.constant 66 : index
    %405 = memref.load %arg2[%c66] : memref<96xf32, #tpu.memory_space<smem>>
    %406 = vector.broadcast %405 : f32 to vector<16x512xf32>
    %407 = arith.mulf %2, %406 : vector<16x512xf32>
    %c67 = arith.constant 67 : index
    %408 = memref.load %arg2[%c67] : memref<96xf32, #tpu.memory_space<smem>>
    %409 = vector.broadcast %408 : f32 to vector<16x512xf32>
    %410 = arith.mulf %5, %409 : vector<16x512xf32>
    %411 = arith.addf %407, %410 : vector<16x512xf32>
    %c68 = arith.constant 68 : index
    %412 = memref.load %arg2[%c68] : memref<96xf32, #tpu.memory_space<smem>>
    %413 = vector.broadcast %412 : f32 to vector<16x512xf32>
    %414 = arith.mulf %8, %413 : vector<16x512xf32>
    %415 = arith.addf %411, %414 : vector<16x512xf32>
    %c22_74 = arith.constant 22 : index
    %416 = memref.load %arg3[%c22_74] : memref<32xf32, #tpu.memory_space<smem>>
    %417 = vector.broadcast %416 : f32 to vector<16x512xf32>
    %418 = arith.addf %415, %417 : vector<16x512xf32>
    %cst_75 = arith.constant 0.000000e+00 : f32
    %419 = vector.broadcast %cst_75 : f32 to vector<16x512xf32>
    %420 = arith.maximumf %418, %419 : vector<16x512xf32>
    %cst_76 = arith.constant dense<0.000000e+00> : vector<16xf32>
    %421 = vector.multi_reduction <add>, %420, %cst_76 [1] : vector<16x512xf32> to vector<16xf32>
    %422 = vector.shape_cast %421 : vector<16xf32> to vector<16x1xf32>
    %c69 = arith.constant 69 : index
    %423 = memref.load %arg2[%c69] : memref<96xf32, #tpu.memory_space<smem>>
    %424 = vector.broadcast %423 : f32 to vector<16x512xf32>
    %425 = arith.mulf %2, %424 : vector<16x512xf32>
    %c70 = arith.constant 70 : index
    %426 = memref.load %arg2[%c70] : memref<96xf32, #tpu.memory_space<smem>>
    %427 = vector.broadcast %426 : f32 to vector<16x512xf32>
    %428 = arith.mulf %5, %427 : vector<16x512xf32>
    %429 = arith.addf %425, %428 : vector<16x512xf32>
    %c71 = arith.constant 71 : index
    %430 = memref.load %arg2[%c71] : memref<96xf32, #tpu.memory_space<smem>>
    %431 = vector.broadcast %430 : f32 to vector<16x512xf32>
    %432 = arith.mulf %8, %431 : vector<16x512xf32>
    %433 = arith.addf %429, %432 : vector<16x512xf32>
    %c23_77 = arith.constant 23 : index
    %434 = memref.load %arg3[%c23_77] : memref<32xf32, #tpu.memory_space<smem>>
    %435 = vector.broadcast %434 : f32 to vector<16x512xf32>
    %436 = arith.addf %433, %435 : vector<16x512xf32>
    %cst_78 = arith.constant 0.000000e+00 : f32
    %437 = vector.broadcast %cst_78 : f32 to vector<16x512xf32>
    %438 = arith.maximumf %436, %437 : vector<16x512xf32>
    %cst_79 = arith.constant dense<0.000000e+00> : vector<16xf32>
    %439 = vector.multi_reduction <add>, %438, %cst_79 [1] : vector<16x512xf32> to vector<16xf32>
    %440 = vector.shape_cast %439 : vector<16xf32> to vector<16x1xf32>
    %c72 = arith.constant 72 : index
    %441 = memref.load %arg2[%c72] : memref<96xf32, #tpu.memory_space<smem>>
    %442 = vector.broadcast %441 : f32 to vector<16x512xf32>
    %443 = arith.mulf %2, %442 : vector<16x512xf32>
    %c73 = arith.constant 73 : index
    %444 = memref.load %arg2[%c73] : memref<96xf32, #tpu.memory_space<smem>>
    %445 = vector.broadcast %444 : f32 to vector<16x512xf32>
    %446 = arith.mulf %5, %445 : vector<16x512xf32>
    %447 = arith.addf %443, %446 : vector<16x512xf32>
    %c74 = arith.constant 74 : index
    %448 = memref.load %arg2[%c74] : memref<96xf32, #tpu.memory_space<smem>>
    %449 = vector.broadcast %448 : f32 to vector<16x512xf32>
    %450 = arith.mulf %8, %449 : vector<16x512xf32>
    %451 = arith.addf %447, %450 : vector<16x512xf32>
    %c24_80 = arith.constant 24 : index
    %452 = memref.load %arg3[%c24_80] : memref<32xf32, #tpu.memory_space<smem>>
    %453 = vector.broadcast %452 : f32 to vector<16x512xf32>
    %454 = arith.addf %451, %453 : vector<16x512xf32>
    %cst_81 = arith.constant 0.000000e+00 : f32
    %455 = vector.broadcast %cst_81 : f32 to vector<16x512xf32>
    %456 = arith.maximumf %454, %455 : vector<16x512xf32>
    %cst_82 = arith.constant dense<0.000000e+00> : vector<16xf32>
    %457 = vector.multi_reduction <add>, %456, %cst_82 [1] : vector<16x512xf32> to vector<16xf32>
    %458 = vector.shape_cast %457 : vector<16xf32> to vector<16x1xf32>
    %c75 = arith.constant 75 : index
    %459 = memref.load %arg2[%c75] : memref<96xf32, #tpu.memory_space<smem>>
    %460 = vector.broadcast %459 : f32 to vector<16x512xf32>
    %461 = arith.mulf %2, %460 : vector<16x512xf32>
    %c76 = arith.constant 76 : index
    %462 = memref.load %arg2[%c76] : memref<96xf32, #tpu.memory_space<smem>>
    %463 = vector.broadcast %462 : f32 to vector<16x512xf32>
    %464 = arith.mulf %5, %463 : vector<16x512xf32>
    %465 = arith.addf %461, %464 : vector<16x512xf32>
    %c77 = arith.constant 77 : index
    %466 = memref.load %arg2[%c77] : memref<96xf32, #tpu.memory_space<smem>>
    %467 = vector.broadcast %466 : f32 to vector<16x512xf32>
    %468 = arith.mulf %8, %467 : vector<16x512xf32>
    %469 = arith.addf %465, %468 : vector<16x512xf32>
    %c25_83 = arith.constant 25 : index
    %470 = memref.load %arg3[%c25_83] : memref<32xf32, #tpu.memory_space<smem>>
    %471 = vector.broadcast %470 : f32 to vector<16x512xf32>
    %472 = arith.addf %469, %471 : vector<16x512xf32>
    %cst_84 = arith.constant 0.000000e+00 : f32
    %473 = vector.broadcast %cst_84 : f32 to vector<16x512xf32>
    %474 = arith.maximumf %472, %473 : vector<16x512xf32>
    %cst_85 = arith.constant dense<0.000000e+00> : vector<16xf32>
    %475 = vector.multi_reduction <add>, %474, %cst_85 [1] : vector<16x512xf32> to vector<16xf32>
    %476 = vector.shape_cast %475 : vector<16xf32> to vector<16x1xf32>
    %c78 = arith.constant 78 : index
    %477 = memref.load %arg2[%c78] : memref<96xf32, #tpu.memory_space<smem>>
    %478 = vector.broadcast %477 : f32 to vector<16x512xf32>
    %479 = arith.mulf %2, %478 : vector<16x512xf32>
    %c79 = arith.constant 79 : index
    %480 = memref.load %arg2[%c79] : memref<96xf32, #tpu.memory_space<smem>>
    %481 = vector.broadcast %480 : f32 to vector<16x512xf32>
    %482 = arith.mulf %5, %481 : vector<16x512xf32>
    %483 = arith.addf %479, %482 : vector<16x512xf32>
    %c80 = arith.constant 80 : index
    %484 = memref.load %arg2[%c80] : memref<96xf32, #tpu.memory_space<smem>>
    %485 = vector.broadcast %484 : f32 to vector<16x512xf32>
    %486 = arith.mulf %8, %485 : vector<16x512xf32>
    %487 = arith.addf %483, %486 : vector<16x512xf32>
    %c26_86 = arith.constant 26 : index
    %488 = memref.load %arg3[%c26_86] : memref<32xf32, #tpu.memory_space<smem>>
    %489 = vector.broadcast %488 : f32 to vector<16x512xf32>
    %490 = arith.addf %487, %489 : vector<16x512xf32>
    %cst_87 = arith.constant 0.000000e+00 : f32
    %491 = vector.broadcast %cst_87 : f32 to vector<16x512xf32>
    %492 = arith.maximumf %490, %491 : vector<16x512xf32>
    %cst_88 = arith.constant dense<0.000000e+00> : vector<16xf32>
    %493 = vector.multi_reduction <add>, %492, %cst_88 [1] : vector<16x512xf32> to vector<16xf32>
    %494 = vector.shape_cast %493 : vector<16xf32> to vector<16x1xf32>
    %c81 = arith.constant 81 : index
    %495 = memref.load %arg2[%c81] : memref<96xf32, #tpu.memory_space<smem>>
    %496 = vector.broadcast %495 : f32 to vector<16x512xf32>
    %497 = arith.mulf %2, %496 : vector<16x512xf32>
    %c82 = arith.constant 82 : index
    %498 = memref.load %arg2[%c82] : memref<96xf32, #tpu.memory_space<smem>>
    %499 = vector.broadcast %498 : f32 to vector<16x512xf32>
    %500 = arith.mulf %5, %499 : vector<16x512xf32>
    %501 = arith.addf %497, %500 : vector<16x512xf32>
    %c83 = arith.constant 83 : index
    %502 = memref.load %arg2[%c83] : memref<96xf32, #tpu.memory_space<smem>>
    %503 = vector.broadcast %502 : f32 to vector<16x512xf32>
    %504 = arith.mulf %8, %503 : vector<16x512xf32>
    %505 = arith.addf %501, %504 : vector<16x512xf32>
    %c27_89 = arith.constant 27 : index
    %506 = memref.load %arg3[%c27_89] : memref<32xf32, #tpu.memory_space<smem>>
    %507 = vector.broadcast %506 : f32 to vector<16x512xf32>
    %508 = arith.addf %505, %507 : vector<16x512xf32>
    %cst_90 = arith.constant 0.000000e+00 : f32
    %509 = vector.broadcast %cst_90 : f32 to vector<16x512xf32>
    %510 = arith.maximumf %508, %509 : vector<16x512xf32>
    %cst_91 = arith.constant dense<0.000000e+00> : vector<16xf32>
    %511 = vector.multi_reduction <add>, %510, %cst_91 [1] : vector<16x512xf32> to vector<16xf32>
    %512 = vector.shape_cast %511 : vector<16xf32> to vector<16x1xf32>
    %c84 = arith.constant 84 : index
    %513 = memref.load %arg2[%c84] : memref<96xf32, #tpu.memory_space<smem>>
    %514 = vector.broadcast %513 : f32 to vector<16x512xf32>
    %515 = arith.mulf %2, %514 : vector<16x512xf32>
    %c85 = arith.constant 85 : index
    %516 = memref.load %arg2[%c85] : memref<96xf32, #tpu.memory_space<smem>>
    %517 = vector.broadcast %516 : f32 to vector<16x512xf32>
    %518 = arith.mulf %5, %517 : vector<16x512xf32>
    %519 = arith.addf %515, %518 : vector<16x512xf32>
    %c86 = arith.constant 86 : index
    %520 = memref.load %arg2[%c86] : memref<96xf32, #tpu.memory_space<smem>>
    %521 = vector.broadcast %520 : f32 to vector<16x512xf32>
    %522 = arith.mulf %8, %521 : vector<16x512xf32>
    %523 = arith.addf %519, %522 : vector<16x512xf32>
    %c28_92 = arith.constant 28 : index
    %524 = memref.load %arg3[%c28_92] : memref<32xf32, #tpu.memory_space<smem>>
    %525 = vector.broadcast %524 : f32 to vector<16x512xf32>
    %526 = arith.addf %523, %525 : vector<16x512xf32>
    %cst_93 = arith.constant 0.000000e+00 : f32
    %527 = vector.broadcast %cst_93 : f32 to vector<16x512xf32>
    %528 = arith.maximumf %526, %527 : vector<16x512xf32>
    %cst_94 = arith.constant dense<0.000000e+00> : vector<16xf32>
    %529 = vector.multi_reduction <add>, %528, %cst_94 [1] : vector<16x512xf32> to vector<16xf32>
    %530 = vector.shape_cast %529 : vector<16xf32> to vector<16x1xf32>
    %c87 = arith.constant 87 : index
    %531 = memref.load %arg2[%c87] : memref<96xf32, #tpu.memory_space<smem>>
    %532 = vector.broadcast %531 : f32 to vector<16x512xf32>
    %533 = arith.mulf %2, %532 : vector<16x512xf32>
    %c88 = arith.constant 88 : index
    %534 = memref.load %arg2[%c88] : memref<96xf32, #tpu.memory_space<smem>>
    %535 = vector.broadcast %534 : f32 to vector<16x512xf32>
    %536 = arith.mulf %5, %535 : vector<16x512xf32>
    %537 = arith.addf %533, %536 : vector<16x512xf32>
    %c89 = arith.constant 89 : index
    %538 = memref.load %arg2[%c89] : memref<96xf32, #tpu.memory_space<smem>>
    %539 = vector.broadcast %538 : f32 to vector<16x512xf32>
    %540 = arith.mulf %8, %539 : vector<16x512xf32>
    %541 = arith.addf %537, %540 : vector<16x512xf32>
    %c29_95 = arith.constant 29 : index
    %542 = memref.load %arg3[%c29_95] : memref<32xf32, #tpu.memory_space<smem>>
    %543 = vector.broadcast %542 : f32 to vector<16x512xf32>
    %544 = arith.addf %541, %543 : vector<16x512xf32>
    %cst_96 = arith.constant 0.000000e+00 : f32
    %545 = vector.broadcast %cst_96 : f32 to vector<16x512xf32>
    %546 = arith.maximumf %544, %545 : vector<16x512xf32>
    %cst_97 = arith.constant dense<0.000000e+00> : vector<16xf32>
    %547 = vector.multi_reduction <add>, %546, %cst_97 [1] : vector<16x512xf32> to vector<16xf32>
    %548 = vector.shape_cast %547 : vector<16xf32> to vector<16x1xf32>
    %c90 = arith.constant 90 : index
    %549 = memref.load %arg2[%c90] : memref<96xf32, #tpu.memory_space<smem>>
    %550 = vector.broadcast %549 : f32 to vector<16x512xf32>
    %551 = arith.mulf %2, %550 : vector<16x512xf32>
    %c91 = arith.constant 91 : index
    %552 = memref.load %arg2[%c91] : memref<96xf32, #tpu.memory_space<smem>>
    %553 = vector.broadcast %552 : f32 to vector<16x512xf32>
    %554 = arith.mulf %5, %553 : vector<16x512xf32>
    %555 = arith.addf %551, %554 : vector<16x512xf32>
    %c92 = arith.constant 92 : index
    %556 = memref.load %arg2[%c92] : memref<96xf32, #tpu.memory_space<smem>>
    %557 = vector.broadcast %556 : f32 to vector<16x512xf32>
    %558 = arith.mulf %8, %557 : vector<16x512xf32>
    %559 = arith.addf %555, %558 : vector<16x512xf32>
    %c30_98 = arith.constant 30 : index
    %560 = memref.load %arg3[%c30_98] : memref<32xf32, #tpu.memory_space<smem>>
    %561 = vector.broadcast %560 : f32 to vector<16x512xf32>
    %562 = arith.addf %559, %561 : vector<16x512xf32>
    %cst_99 = arith.constant 0.000000e+00 : f32
    %563 = vector.broadcast %cst_99 : f32 to vector<16x512xf32>
    %564 = arith.maximumf %562, %563 : vector<16x512xf32>
    %cst_100 = arith.constant dense<0.000000e+00> : vector<16xf32>
    %565 = vector.multi_reduction <add>, %564, %cst_100 [1] : vector<16x512xf32> to vector<16xf32>
    %566 = vector.shape_cast %565 : vector<16xf32> to vector<16x1xf32>
    %c93 = arith.constant 93 : index
    %567 = memref.load %arg2[%c93] : memref<96xf32, #tpu.memory_space<smem>>
    %568 = vector.broadcast %567 : f32 to vector<16x512xf32>
    %569 = arith.mulf %2, %568 : vector<16x512xf32>
    %c94 = arith.constant 94 : index
    %570 = memref.load %arg2[%c94] : memref<96xf32, #tpu.memory_space<smem>>
    %571 = vector.broadcast %570 : f32 to vector<16x512xf32>
    %572 = arith.mulf %5, %571 : vector<16x512xf32>
    %573 = arith.addf %569, %572 : vector<16x512xf32>
    %c95 = arith.constant 95 : index
    %574 = memref.load %arg2[%c95] : memref<96xf32, #tpu.memory_space<smem>>
    %575 = vector.broadcast %574 : f32 to vector<16x512xf32>
    %576 = arith.mulf %8, %575 : vector<16x512xf32>
    %577 = arith.addf %573, %576 : vector<16x512xf32>
    %c31_101 = arith.constant 31 : index
    %578 = memref.load %arg3[%c31_101] : memref<32xf32, #tpu.memory_space<smem>>
    %579 = vector.broadcast %578 : f32 to vector<16x512xf32>
    %580 = arith.addf %577, %579 : vector<16x512xf32>
    %cst_102 = arith.constant 0.000000e+00 : f32
    %581 = vector.broadcast %cst_102 : f32 to vector<16x512xf32>
    %582 = arith.maximumf %580, %581 : vector<16x512xf32>
    %cst_103 = arith.constant dense<0.000000e+00> : vector<16xf32>
    %583 = vector.multi_reduction <add>, %582, %cst_103 [1] : vector<16x512xf32> to vector<16xf32>
    %584 = vector.shape_cast %583 : vector<16xf32> to vector<16x1xf32>
    %585 = tpu.concatenate %26, %44, %62, %80, %98, %116, %134, %152, %170, %188, %206, %224, %242, %260, %278, %296 in 1 : vector<16x1xf32>, vector<16x1xf32>, vector<16x1xf32>, vector<16x1xf32>, vector<16x1xf32>, vector<16x1xf32>, vector<16x1xf32>, vector<16x1xf32>, vector<16x1xf32>, vector<16x1xf32>, vector<16x1xf32>, vector<16x1xf32>, vector<16x1xf32>, vector<16x1xf32>, vector<16x1xf32>, vector<16x1xf32> -> vector<16x16xf32>
    %586 = tpu.concatenate %314, %332, %350, %368, %386, %404, %422, %440, %458, %476, %494, %512, %530, %548, %566, %584 in 1 : vector<16x1xf32>, vector<16x1xf32>, vector<16x1xf32>, vector<16x1xf32>, vector<16x1xf32>, vector<16x1xf32>, vector<16x1xf32>, vector<16x1xf32>, vector<16x1xf32>, vector<16x1xf32>, vector<16x1xf32>, vector<16x1xf32>, vector<16x1xf32>, vector<16x1xf32>, vector<16x1xf32>, vector<16x1xf32> -> vector<16x16xf32>
    %587 = tpu.concatenate %585, %586 in 1 : vector<16x16xf32>, vector<16x16xf32> -> vector<16x32xf32>
    %c0_104 = arith.constant 0 : index
    %c0_105 = arith.constant 0 : index
    %588 = vector.load %arg4[%c0_104, %c0_105] : memref<32x128xf32, #tpu.memory_space<vmem>>, vector<32x128xf32>
    %cst_106 = arith.constant dense<0.000000e+00> : vector<16x128xf32>
    %589 = tpu.matmul %587, %588, %cst_106 {dimension_numbers = #tpu.dot_dimension_numbers<[1], [0], [0], [1], [0, 0, 1, 1], [], []>} : vector<16x32xf32>, vector<32x128xf32>, vector<16x128xf32> -> vector<16x128xf32>
    %c0_107 = arith.constant 0 : index
    %c0_108 = arith.constant 0 : index
    %590 = vector.load %arg5[%c0_107, %c0_108] : memref<1x128xf32, #tpu.memory_space<vmem>>, vector<1x128xf32>
    %591 = vector.broadcast %590 : vector<1x128xf32> to vector<16x128xf32>
    %592 = arith.addf %589, %591 : vector<16x128xf32>
    %c0_109 = arith.constant 0 : index
    %c0_110 = arith.constant 0 : index
    %593 = vector.load %arg6[%c0_109, %c0_110] : memref<16x128xf32, #tpu.memory_space<vmem>>, vector<16x128xf32>
    tpu.vector_store %arg6[%c0_109, %c0_110], %592 {strides = array<i32>} : memref<16x128xf32, #tpu.memory_space<vmem>>, vector<16x128xf32>,
    return
  }
  func.func @transform_0(%arg0: i32) -> (i32, i32, i32) {
    %c0_i32 = arith.constant 0 : i32
    %c0_i32_0 = arith.constant 0 : i32
    %c0_i32_1 = arith.constant 0 : i32
    return %c0_i32, %arg0, %c0_i32_0 : i32, i32, i32
  }
  func.func @transform_1(%arg0: i32) -> i32 {
    %c0_i32 = arith.constant 0 : i32
    %c0_i32_0 = arith.constant 0 : i32
    return %c0_i32 : i32
  }
  func.func @transform_2(%arg0: i32) -> i32 {
    %c0_i32 = arith.constant 0 : i32
    %c0_i32_0 = arith.constant 0 : i32
    return %c0_i32 : i32
  }
  func.func @transform_3(%arg0: i32) -> (i32, i32) {
    %c0_i32 = arith.constant 0 : i32
    %c0_i32_0 = arith.constant 0 : i32
    %c0_i32_1 = arith.constant 0 : i32
    return %c0_i32, %c0_i32_0 : i32, i32
  }
  func.func @transform_4(%arg0: i32) -> (i32, i32) {
    %c0_i32 = arith.constant 0 : i32
    %c0_i32_0 = arith.constant 0 : i32
    %c0_i32_1 = arith.constant 0 : i32
    return %c0_i32, %c0_i32_0 : i32, i32
  }
  func.func @transform_5(%arg0: i32) -> (i32, i32) {
    %c0_i32 = arith.constant 0 : i32
    %c0_i32_0 = arith.constant 0 : i32
    return %arg0, %c0_i32 : i32, i32
  }
}

</mosaic_0001>

<bundles_post_ra>
// kernel: tpu_custom_call.1
= control target key start
LH: loop header
LB: loop body
LE: loop exit
PB: predicated region body
PF: predicated region fallthrough
CT: control target
= control target key end

     0   :  { %s5326_s0 = inlined_call_operand.hbm [shape: bf16[3,32,512], index: 0, kind: input, shape index: {}]   ;;  %s5327_s1 = inlined_call_operand.vmem [shape: f32[96], index: 1, kind: input, shape index: {}]   ;;  %s5328_s2 = inlined_call_operand.vmem [shape: f32[32], index: 2, kind: input, shape index: {}]   ;;  %s5329_s3 = inlined_call_operand.hbm [shape: f32[32,128], index: 3, kind: input, shape index: {}]   ;;  %s5330_s4 = inlined_call_operand.vmem [shape: f32[1,128], index: 4, kind: input, shape index: {}]   ;;  %s5331_s5 = inlined_call_operand.hbm [shape: f32[32,128], index: 5, kind: output, shape index: {}]  }
   0x1   :  { %5337 = sst [smem:[#allocation45_spill]] %s5327_s1 }
   0x2   :  { %10 = vsyncpa [#allocation3], 0 }
   0x3   :  { %12 = vsyncpa [#allocation3 + $0x1], 0 }
   0x4   :  { %13 = vsyncpa [#allocation5], 0 }
   0x5   :  { %14 = vsyncpa [#allocation8], 0 }
   0x6   :  { %15 = vsyncpa [#allocation10], 0 }
   0x7   :  { %16 = vsyncpa [#allocation4], 0 }
   0x8   :  { %18 = vsyncpa [#allocation4 + $0x1], 0  ;;  %s3480_s18 = smov 0   ;;  %s3482_s19 = smov 0  }
   0x9   :  { %s3484_s20 = smov 0   ;;  %s3486_s21 = smov 0  }
   0xa LB: > { %s3501_s22 = sadd.s32 4294967295, %s3433_s21   ;;  %s3019_s23 = sadd.s32 4294967294, %s3433_s21   ;;  %s3433_s21 = sphi %s3486_s21, %s5409_s21   ;;  %s3429_s20 = sphi %s3484_s20, %s5408_s20   ;;  %s3425_s19 = sphi %s3482_s19, %s5407_s19   ;;  %s3421_s18 = sphi %s3480_s18, %s5406_s18  }
   0xb   : > { %s3505_s24 = sadd.s32 1, %s3433_s21   ;;  %s31_s25 = sadd.s32 1, %s3429_s20 }
   0xc   : > { %s28_s26 = ssub.s32 %s3433_s21, %s3505_s24  ;;  %p38_p0 = scmp.ne.s32.totalorder %s3429_s20, %s3425_s19 }
   0xd   : > { %p29_p1 = scmp.eq.s32.totalorder %s28_s26, 0  ;;  %p39_p2 = scmp.eq.s32.totalorder %s3433_s21, 0 }
   0xe   : > { %p44_p3 = scmp.ne.s32.totalorder %s3425_s19, %s3421_s18  ;;  %p5332_p4 = scmp.eq.s32.totalorder %s3501_s22, 0 }
   0xf   : > { %s3517_s27 = scalar_select %p29_p1, %s3429_s20, %s31_s25  }
  0x10   : > { %p3519_p5 = por %p39_p2, %p38_p0  ;;  %p3525_p6 = por %p5332_p4, %p44_p3 }
  0x11   : > { %p152_p7 = scmp.eq.s32.totalorder %s3501_s22, 1  ;;  %p158_p8 = scmp.eq.s32.totalorder %s3019_s23, 1 }
  0x12   : > { %s5338_s28 = scalar_select %p3519_p5, 1, 0 }
  0x13   : > { %s5339_s29 = scalar_select %p3525_p6, 1, 0 }
  0x14   : > { %p3020_p9 = scmp.ge.s32.totalorder %s3433_s21, 1  ;;  %p165_p10 = scmp.lt.s32.totalorder %s3433_s21, 3 }
  0x15   : > { %p3532_p11 = por %p152_p7, %p38_p0  ;;  %p3536_p12 = por %p158_p8, %p44_p3 }
  0x16   : > { %p3540_p13 = pnand %p3020_p9, %p165_p10  ;;  %s5343_s1 = sld [smem:[#allocation45_spill]] }
  0x17   : > { %s5340_s30 = scalar_select %p3532_p11, 1, 0 }
  0x18   : > { %s5341_s6 = scalar_select %p3536_p12, 1, 0 }
  0x19   : > { %s5342_s7 = scalar_select %p3540_p13, 1, 0 }
  0x1a   : > { %p3230_p1 = pneg %p3540_p13  ;;  %s189_s13 = sshll.u32 %s5328_s2, 4  ;;  %s190_s13 = int_to_ptr.vmem [resolvable:$true] %s189_s13 }
  0x1b   : > { %s3435_s15 = smov [#allocation9]  }
  0x1c   : > { %s178_s10 = sshll.u32 %s5343_s1, 4  ;;  %p3554_p0 = pnand %p3230_p1, %p5332_p4  ;;  %s179_s10 = int_to_ptr.vmem [resolvable:$true] %s178_s10 }
  0x1d   : > { %s199_s16 = sshll.u32 %s3435_s15, 4  ;;  %s3297_s17 = scalar_lea.vmem %s179_s10, 16  ;;  %s200_s16 = int_to_ptr.vmem [resolvable:$true] %s199_s16 }
  0x1e   : > { %p3298_p2 = scmp.ne.s32.totalorder %s179_s10, %s3297_s17  ;;  %p3299_p3 = pneg %p3554_p0 }
  0x1f   : > { %p3305_p9 = scmp.lt.s32.totalorder %s179_s10, %s179_s10  ;;  %p3306_p10 = scmp.lt.s32.totalorder %s3297_s17, %s3297_s17 }
  0x20   : > { %p3300_p7 = pnand %p3299_p3, %p3298_p2 }
  0x21   : > { %p3307_p12 = por %p3306_p10, %p3305_p9 }
  0x22   : > { %p3301_p8 = pneg %p3300_p7 }
  0x24   : > { %p3308_p1 = pnand %p3307_p12, %p3301_p8 }
  0x26   : > { %3311 = shalt.err (!%p3308_p1)
}
  0x27   : > { %s3436_s23 = smov [#allocation6]   ;;  %s3312_s25 = scalar_lea.vmem %s190_s13, 16 }
  0x28   : > { %3233 = dma.vmem_to_smem (!%p3554_p0), %s179_s10, 16, %s3436_s23, [#allocation5]  }
  0x29   : > { %p3313_p4 = scmp.ne.s32.totalorder %s190_s13, %s3312_s25  ;;  %p3320_p13 = scmp.lt.s32.totalorder %s190_s13, %s190_s13 }
  0x2a   : > { %p3321_p5 = scmp.lt.s32.totalorder %s3312_s25, %s3312_s25 }
  0x2b   : > { %p3315_p11 = pnand %p3313_p4, %p3299_p3 }
  0x2c   : > { %p3322_p2 = por %p3321_p5, %p3320_p13 }
  0x2d   : > { %p3316_p6 = pneg %p3315_p11 }
  0x2f   : > { %p3323_p7 = pnand %p3322_p2, %p3316_p6 }
  0x31   : > { %3326 = shalt.err (!%p3323_p7)
}
  0x32   : > { %s3437_s26 = smov [#allocation7]   ;;  %s3327_s10 = scalar_lea.hbm %s5329_s3, 512 }
  0x33   : > { %3236 = dma.vmem_to_smem (!%p3554_p0), %s190_s13, 16, %s3437_s26, [#allocation8]  }
  0x34   : > { %p3328_p4 = scmp.ne.s32.totalorder %s5329_s3, %s3327_s10  ;;  %p3334_p6 = scmp.lt.u32.totalorder %s3327_s10, %s5329_s3 }
  0x36   : > { %p3330_p11 = pnand %p3328_p4, %p3299_p3 }
  0x38   : > { %p3331_p5 = pneg %p3330_p11 }
  0x3a   : > { %p3336_p12 = pnand %p3334_p6, %p3331_p5 }
  0x3c   : > { %3339 = shalt.err (!%p3336_p12)
}
  0x3d   : > { %s3340_s13 = scalar_lea.vmem %s200_s16, 512  ;;  %p3348_p10 = scmp.lt.s32.totalorder %s200_s16, %s200_s16 }
  0x3e   : > { %p3341_p13 = scmp.ne.s32.totalorder %s200_s16, %s3340_s13  ;;  %p3349_p1 = scmp.lt.s32.totalorder %s3340_s13, %s3340_s13 }
  0x40   : > { %p3343_p8 = pnand %p3341_p13, %p3299_p3  ;;  %p3350_p2 = por %p3349_p1, %p3348_p10 }
  0x42   : > { %p3344_p9 = pneg %p3343_p8 }
  0x44   : > { %p3351_p7 = pnand %p3350_p2, %p3344_p9 }
  0x46   : > { %3354 = shalt.err (!%p3351_p7)
}
  0x47   : > { %s3438_s23 = smov 128   ;;  %s3439_s25 = smov 8  }
  0x48   : > { %3239 = dma.hbm_to_vmem [thread:$0]  (!%p3554_p0), %s5329_s3, 512, %s200_s16, [#allocation10], %s3438_s23, %s3438_s23, %s3439_s25  }
  0x49   : > { %p3024_p4 = scmp.ge.s32.totalorder %s3433_s21, 2 }
  0x4b   : > { %212 = sbr.rel (%p3024_p4) target bundleno = 98 (0x62), region = 32 }
  0x52   : > { %s216_s9 = sand.u32 1, %s3429_s20   ;;  %s3178_s14 = sshll.u32 %s3433_s21, 9 }
  0x53   : > { %s3205_s10 = smul.u32 96, %s216_s9  ;;  %s3440_s11 = smov 1024  }
  0x54   : > { %p5345_p3 = scmp.ne.s32.totalorder %s5338_s28, 0  ;;  %s227_s17 = scalar_lea.hbm %s5326_s0, %s3178_s14 }
  0x55   : > { %s220_s23 = scalar_lea.vmem [#allocation2], %s3205_s10  ;;  %s3441_s26 = smov 512  }
  0x56   : > { %3214 = sst [smem:[#allocation13]] (%p5345_p3), %s3440_s11  ;;  %s240_s25 = sshll.u32 %s220_s23, 4  ;;  %s241_s25 = int_to_ptr.vmem [resolvable:$true] %s240_s25 }
  0x57   : > { %s3213_s16 = scalar_select %p5345_p3, [#allocation0], [#allocation14] }
  0x58   : > { %3215 = sst [smem:[#allocation13 + $0x1]] (%p5345_p3), %s3441_s26  ;;  %s3442_s8 = smov 2  }
  0x59   : > { %s232_s13 = sld [smem:[%s3213_s16]]   ;;  %s3443_s1 = smov 256  }
  0x5a   : > { %3216 = sst [smem:[#allocation13 + $0x2]] (%p5345_p3), %s3442_s8  ;;  %s3444_s11 = smov 16  }
  0x5b   : > { %3217 = sst [smem:[#allocation13 + $0x3]] (%p5345_p3), %s3443_s1  ;;  %s217_s10 = scalar_lea.sflag [#allocation3], %s216_s9 }
  0x5c   : > { %3218 = sst [smem:[#allocation13 + $0x4]] (%p5345_p3), %s3443_s1  ;;  %s3445_s12 = smov [#allocation12]  }
  0x5d   : > { %3219 = sst [smem:[#allocation13 + $0x5]] (%p5345_p3), %s3444_s11 }
  0x5f   : > { %s3028_s14 = sshll.u32 %s232_s13, 26 }
  0x60   : > { %s3029_s16 = sadd.s32 134217728, %s3028_s14 }
  0x61   : > { %3220 = dma.general (%p5345_p3), %s227_s17, 1536, %s241_s25, %s217_s10, %s3445_s12, [#allocation13], %s3029_s16, 0  }
  0x62 PF: > { %p5346_p0 = scmp.ne.s32.totalorder %s5342_s7, 0 }
  0x64   : > { %265 = sbr.rel (%p5346_p0) target bundleno = 1045 (0x415), region = 40 }
  0x6b   : > { %s3617_s15 = sand.u32 1, %s3425_s19   ;;  %p5347_p11 = scmp.ne.s32.totalorder %s5339_s29, 0 }
  0x6c   : > { %s3206_s1 = smul.u32 96, %s3617_s15  ;;  %s268_s23 = scalar_lea.sflag [#allocation3], %s3617_s15 }
  0x6e   : > { %s3621_s26 = scalar_lea.vmem [#allocation2], %s3206_s1 }
  0x6f   : > { %3400 = dma.done.wait (%p5347_p11), %s268_s23, 1536  }
  0x70   : > { %3402 = vsyncadd (%p5347_p11), %s268_s23, 4294965760  ;;  %p5348_p5 = scmp.eq.s32.totalorder %s3501_s22, 0 }
  0x72   : > { %3404 = dma.done.wait (%p5348_p5), [#allocation5], 16   ;;  %p5349_p6 = pmov %p5348_p5 }
  0x73   : > { %p5350_p12 = pmov %p5348_p5 }
  0x74   : > { %3406 = vsyncadd (%p5349_p6), [#allocation5], 4294967280 }
  0x75   : > { %3408 = dma.done.wait (%p5350_p12), [#allocation8], 16   ;;  %p5351_p13 = pmov %p5348_p5 }
  0x76   : > { %p5352_p8 = pmov %p5348_p5 }
  0x77   : > { %3410 = vsyncadd (%p5351_p13), [#allocation8], 4294967280 }
  0x78   : > { %3412 = dma.done.wait (%p5352_p8), [#allocation10], 512   ;;  %p5353_p9 = pmov %p5348_p5 }
  0x7a   : > { %3414 = vsyncadd (%p5353_p9), [#allocation10], 4294966784 }
  0x7b   : > { %288 = sfence }
  0x7c   : > { %v315_v0 = vld [vmem:[%s3621_s26 + $0x10] sm:$0xff]  ;;  %v316_v1 = vld [vmem:[%s3621_s26 + $0x18] sm:$0xff]  ;;  %s3642_s28 = sld [smem:[#allocation6 + $0x30]]  ;;  %s3655_s29 = sld [smem:[#allocation6 + $0x31]]  ;;  %v313_v14 = vld [vmem:[%s3621_s26] sm:$0xff]  ;;  %vm2719_vm0 = vcmask 7168  }
  0x7d   : > { %v3037_v2 = vld [vmem:[%s3621_s26 + $0x30] sm:$0xff]  ;;  %v3644_v3 = vunpack.c.l.bf16 %v315_v0  ;;  %v3646_v4 = vunpack.c.h.bf16 %v315_v0  ;;  %v3648_v5 = vunpack.c.l.bf16 %v316_v1  ;;  %v3650_v6 = vunpack.c.h.bf16 %v316_v1  ;;  %v3038_v7 = vld [vmem:[%s3621_s26 + $0x38] sm:$0xff]  ;;  %s3107_s7 = sld [smem:[#allocation6 + $0x32]]  ;;  %s3108_s9 = sld [smem:[#allocation7 + $0x10]]  ;;  %v314_v15 = vld [vmem:[%s3621_s26 + $0x8] sm:$0xff] }
  0x7e   : > { %v3041_v8 = vld [vmem:[%s3621_s26 + $0x50] sm:$0xff]  ;;  %v3042_v9 = vld [vmem:[%s3621_s26 + $0x58] sm:$0xff]  ;;  %v3657_v10 = vunpack.c.l.bf16 %v3037_v2  ;;  %v3659_v11 = vunpack.c.h.bf16 %v3037_v2  ;;  %v3661_v12 = vunpack.c.l.bf16 %v3038_v7  ;;  %v3663_v13 = vunpack.c.h.bf16 %v3038_v7  ;;  %v3035_v20 = vld [vmem:[%s3621_s26 + $0x20] sm:$0xff]  ;;  %s3717_s17 = sld [smem:[#allocation6 + $0x33]]  ;;  %s3719_s13 = sld [smem:[#allocation6 + $0x34]] }
  0x7f   : > { %v3667_v16 = vunpack.c.l.bf16 %v3041_v8  ;;  %v3669_v17 = vunpack.c.h.bf16 %v3041_v8  ;;  %v3671_v18 = vunpack.c.l.bf16 %v3042_v9  ;;  %v3673_v19 = vunpack.c.h.bf16 %v3042_v9  ;;  %v3036_v21 = vld [vmem:[%s3621_s26 + $0x28] sm:$0xff]  ;;  %v3039_v22 = vld [vmem:[%s3621_s26 + $0x40] sm:$0xff]  ;;  %s3721_s25 = sld [smem:[#allocation6 + $0x35]]  ;;  %s3740_s8 = sld [smem:[#allocation7 + $0x11]] }
  0x80   : > { %v3678_v23 = vunpack.c.l.bf16 %v313_v14  ;;  %v3680_v24 = vunpack.c.h.bf16 %v313_v14  ;;  %v3682_v25 = vunpack.c.l.bf16 %v314_v15  ;;  %v3684_v26 = vunpack.c.h.bf16 %v314_v15  ;;  %v3040_v27 = vld [vmem:[%s3621_s26 + $0x48] sm:$0xff]  ;;  %s3759_s11 = sld [smem:[#allocation6 + $0x36]]  ;;  %s3765_s14 = sld [smem:[#allocation6 + $0x37]] }
  0x81   : > { %v3687_v28 = vunpack.c.l.bf16 %v3035_v20  ;;  %v3689_v29 = vunpack.c.h.bf16 %v3035_v20  ;;  %v3691_v30 = vunpack.c.l.bf16 %v3036_v21  ;;  %v3693_v31 = vunpack.c.h.bf16 %v3036_v21  ;;  %s3773_s16 = sld [smem:[#allocation6 + $0x38]]  ;;  %s3784_s10 = sld [smem:[#allocation7 + $0x12]] }
  0x82   : > { %v1536_v32 = vstv %s3642_s28  ;;  %v3696_v33 = vunpack.c.l.bf16 %v3039_v22  ;;  %v3698_v34 = vunpack.c.h.bf16 %v3039_v22  ;;  %v3700_v35 = vunpack.c.l.bf16 %v3040_v27  ;;  %s3797_s12 = sld [smem:[#allocation6 + $0x39]]  ;;  %s3803_s1 = sld [smem:[#allocation6 + $0x3a]] }
  0x83   : > { %v1541_v36 = vmul.f32 %v1536_v32, %v3644_v3  ;;  %v1542_v37 = vmul.f32 %v1536_v32, %v3646_v4  ;;  %v1543_v38 = vmul.f32 %v1536_v32, %v3648_v5  ;;  %v1544_v39 = vmul.f32 %v1536_v32, %v3650_v6  ;;  %s3805_s23 = sld [smem:[#allocation6 + $0x3b]]  ;;  %s3841_s28 = sld [smem:[#allocation6 + $0x3c]] }
  0x84   : > { %v1546_v40 = vstv %s3655_s29  ;;  %v1564_v41 = vstv %s3107_s7  ;;  %v1582_v42 = vstv %s3108_s9  ;;  %v3707_v43 = vunpack.c.h.bf16 %v3040_v27  ;;  %s3822_s26 = sld [smem:[#allocation7 + $0x13]]  ;;  %s3847_s29 = sld [smem:[#allocation6 + $0x3d]] }
  0x85   : > { %v1551_v44 = vmul.f32 %v1546_v40, %v3657_v10  ;;  %v1552_v45 = vmul.f32 %v1546_v40, %v3659_v11  ;;  %v1553_v46 = vmul.f32 %v1546_v40, %v3661_v12  ;;  %v1554_v47 = vmul.f32 %v1546_v40, %v3663_v13  ;;  %s3855_s7 = sld [smem:[#allocation6 + $0x3e]]  ;;  %s3866_s9 = sld [smem:[#allocation7 + $0x14]] }
  0x86   : > { %v1569_v48 = vmul.f32 %v1564_v41, %v3667_v16  ;;  %v1570_v49 = vmul.f32 %v1564_v41, %v3669_v17  ;;  %v1571_v50 = vmul.f32 %v1564_v41, %v3671_v18  ;;  %v1572_v51 = vmul.f32 %v1564_v41, %v3673_v19  ;;  %p5404_p1 = scmp.ne.s32.totalorder %s5340_s30, 0 }
  0x87   : > { %v1559_v52 = vadd.f32 %v1551_v44, %v1541_v36  ;;  %v1560_v53 = vadd.f32 %v1552_v45, %v1542_v37  ;;  %v1561_v54 = vadd.f32 %v1553_v46, %v1543_v38  ;;  %v1562_v55 = vadd.f32 %v1554_v47, %v1544_v39 }
  0x88   : > { %v1537_v56 = vmul.f32 %v1536_v32, %v3678_v23  ;;  %v1538_v57 = vmul.f32 %v1536_v32, %v3680_v24  ;;  %v1539_v58 = vmul.f32 %v1536_v32, %v3682_v25  ;;  %v1540_v59 = vmul.f32 %v1536_v32, %v3684_v26 }
  0x89   : > { %v1577_v60 = vadd.f32 %v1569_v48, %v1559_v52  ;;  %v1578_v61 = vadd.f32 %v1570_v49, %v1560_v53  ;;  %v1579_v62 = vadd.f32 %v1571_v50, %v1561_v54  ;;  %v1580_v63 = vadd.f32 %v1572_v51, %v1562_v55 }
  0x8a   : > { %v1547_v0 = vmul.f32 %v1546_v40, %v3687_v28  ;;  %v1548_v1 = vmul.f32 %v1546_v40, %v3689_v29  ;;  %v1549_v2 = vmul.f32 %v1546_v40, %v3691_v30  ;;  %v1550_v7 = vmul.f32 %v1546_v40, %v3693_v31 }
  0x8b   : > { %v1587_v8 = vadd.f32 %v1582_v42, %v1577_v60  ;;  %v1588_v9 = vadd.f32 %v1582_v42, %v1578_v61  ;;  %v1589_v14 = vadd.f32 %v1582_v42, %v1579_v62  ;;  %v1590_v15 = vadd.f32 %v1582_v42, %v1580_v63 }
  0x8c   : > { %v1555_v20 = vadd.f32 %v1547_v0, %v1537_v56  ;;  %v1556_v21 = vadd.f32 %v1548_v1, %v1538_v57  ;;  %v1557_v22 = vadd.f32 %v1549_v2, %v1539_v58  ;;  %v1558_v27 = vadd.f32 %v1550_v7, %v1540_v59 }
  0x8d   : > { %v1595_v32 = vmax.f32 %v1587_v8, 0.0  ;;  %v1596_v36 = vmax.f32 %v1588_v9, 0.0  ;;  %v1597_v37 = vmax.f32 %v1589_v14, 0.0  ;;  %v1598_v38 = vmax.f32 %v1590_v15, 0.0 }
  0x8e   : > { %v1565_v39 = vmul.f32 %v1564_v41, %v3696_v33  ;;  %v1566_v44 = vmul.f32 %v1564_v41, %v3698_v34  ;;  %v1567_v40 = vmul.f32 %v1564_v41, %v3700_v35  ;;  %v1568_v45 = vmul.f32 %v1564_v41, %v3707_v43 }
  0x8f   : > { %v1604_v46 = vadd.f32 %v1596_v36, %v1595_v32  ;;  %v1610_v47 = vstv %s3717_s17  ;;  %v1620_v48 = vstv %s3719_s13  ;;  %v3738_v49 = vstv %s3721_s25  ;;  %s3879_s17 = sld [smem:[#allocation6 + $0x3f]]  ;;  %s3885_s13 = sld [smem:[#allocation6 + $0x40]] }
  0x90   : > { %v1573_v50 = vadd.f32 %v1565_v39, %v1555_v20  ;;  %v1574_v51 = vadd.f32 %v1566_v44, %v1556_v21  ;;  %v1575_v52 = vadd.f32 %v1567_v40, %v1557_v22  ;;  %v1576_v53 = vadd.f32 %v1568_v45, %v1558_v27  ;;  %s3887_s25 = sld [smem:[#allocation6 + $0x41]] }
  0x91   : > { %v1605_v54 = vadd.f32 %v1604_v46, %v1597_v37  ;;  %v1615_v55 = vmul.f32 %v1610_v47, %v3644_v3  ;;  %v1616_v56 = vmul.f32 %v1610_v47, %v3646_v4  ;;  %v1617_v57 = vmul.f32 %v1610_v47, %v3648_v5 }
  0x92   : > { %v1583_v58 = vadd.f32 %v1582_v42, %v1573_v50  ;;  %v1584_v41 = vadd.f32 %v1582_v42, %v1574_v51  ;;  %v1585_v59 = vadd.f32 %v1582_v42, %v1575_v52  ;;  %v1586_v60 = vadd.f32 %v1582_v42, %v1576_v53 }
  0x93   : > { %v1606_v61 = vadd.f32 %v1605_v54, %v1598_v38  ;;  %v1618_v62 = vmul.f32 %v1610_v47, %v3650_v6  ;;  %v1625_v63 = vmul.f32 %v1620_v48, %v3657_v10  ;;  %v1626_v0 = vmul.f32 %v1620_v48, %v3659_v11 }
  0x94   : > { %v1591_v1 = vmax.f32 %v1583_v58, 0.0  ;;  %v1592_v2 = vmax.f32 %v1584_v41, 0.0  ;;  %v1593_v7 = vmax.f32 %v1585_v59, 0.0  ;;  %v1594_v8 = vmax.f32 %v1586_v60, 0.0 }
  0x95   : > { %1607 = vadd.xlane.f32.xlu1 %v1606_v61  ;;  %v1627_v9 = vmul.f32 %v1620_v48, %v3661_v12  ;;  %v1628_v14 = vmul.f32 %v1620_v48, %v3663_v13  ;;  %v1633_v15 = vadd.f32 %v1625_v63, %v1615_v55  ;;  %v1634_v20 = vadd.f32 %v1626_v0, %v1616_v56 }
  0x96   : > { %v1599_v42 = vadd.f32 %v1592_v2, %v1591_v1  ;;  %v1643_v21 = vmul.f32 %v3738_v49, %v3667_v16  ;;  %v1644_v22 = vmul.f32 %v3738_v49, %v3669_v17  ;;  %v1645_v27 = vmul.f32 %v3738_v49, %v3671_v18 }
  0x97   : > { %v1635_v32 = vadd.f32 %v1627_v9, %v1617_v57  ;;  %v1636_v36 = vadd.f32 %v1628_v14, %v1618_v62  ;;  %v1646_v37 = vmul.f32 %v3738_v49, %v3673_v19  ;;  %v1656_v38 = vstv %s3740_s8  ;;  %s3904_s8 = sld [smem:[#allocation7 + $0x15]] }
  0x98   : > { %v1600_v39 = vadd.f32 %v1599_v42, %v1593_v7  ;;  %v1651_v44 = vadd.f32 %v1643_v21, %v1633_v15  ;;  %v1652_v40 = vadd.f32 %v1644_v22, %v1634_v20  ;;  %v1611_v45 = vmul.f32 %v1610_v47, %v3678_v23 }
  0x99   : > { %v1653_v46 = vadd.f32 %v1645_v27, %v1635_v32  ;;  %v1654_v50 = vadd.f32 %v1646_v37, %v1636_v36  ;;  %v1612_v51 = vmul.f32 %v1610_v47, %v3680_v24  ;;  %v1613_v52 = vmul.f32 %v1610_v47, %v3682_v25 }
  0x9a   : > { %v1601_v53 = vadd.f32 %v1600_v39, %v1594_v8  ;;  %v1661_v54 = vadd.f32 %v1656_v38, %v1651_v44  ;;  %v1662_v55 = vadd.f32 %v1656_v38, %v1652_v40  ;;  %v1614_v56 = vmul.f32 %v1610_v47, %v3684_v26 }
  0x9b   : > { %v1663_v57 = vadd.f32 %v1656_v38, %v1653_v46  ;;  %v1664_v58 = vadd.f32 %v1656_v38, %v1654_v50  ;;  %v1621_v41 = vmul.f32 %v1620_v48, %v3687_v28  ;;  %v1622_v59 = vmul.f32 %v1620_v48, %v3689_v29 }
  0x9c   : > { %1602 = vadd.xlane.f32.xlu0 %v1601_v53  ;;  %v1669_v60 = vmax.f32 %v1661_v54, 0.0  ;;  %v1670_v61 = vmax.f32 %v1662_v55, 0.0  ;;  %v1623_v62 = vmul.f32 %v1620_v48, %v3691_v30  ;;  %v1624_v63 = vmul.f32 %v1620_v48, %v3693_v31 }
  0x9d   : > { %v1671_v0 = vmax.f32 %v1663_v57, 0.0  ;;  %v1672_v1 = vmax.f32 %v1664_v58, 0.0  ;;  %v1629_v2 = vadd.f32 %v1621_v41, %v1611_v45  ;;  %v1630_v47 = vadd.f32 %v1622_v59, %v1612_v51 }
  0x9e   : > { %v1678_v7 = vadd.f32 %v1670_v61, %v1669_v60  ;;  %v1631_v8 = vadd.f32 %v1623_v62, %v1613_v52  ;;  %v1632_v9 = vadd.f32 %v1624_v63, %v1614_v56  ;;  %v1639_v14 = vmul.f32 %v3738_v49, %v3696_v33 }
  0x9f   : > { %v1640_v15 = vmul.f32 %v3738_v49, %v3698_v34  ;;  %v1641_v20 = vmul.f32 %v3738_v49, %v3700_v35  ;;  %v1642_v48 = vmul.f32 %v3738_v49, %v3707_v43  ;;  %v1684_v42 = vstv %s3759_s11  ;;  %s3923_s11 = sld [smem:[#allocation6 + $0x42]] }
  0xa0   : > { %v1679_v21 = vadd.f32 %v1678_v7, %v1671_v0  ;;  %v1647_v22 = vadd.f32 %v1639_v14, %v1629_v2  ;;  %v1689_v27 = vmul.f32 %v1684_v42, %v3644_v3  ;;  %v1690_v32 = vmul.f32 %v1684_v42, %v3646_v4 }
  0xa1   : > { %v1648_v36 = vadd.f32 %v1640_v15, %v1630_v47  ;;  %v1649_v37 = vadd.f32 %v1641_v20, %v1631_v8  ;;  %v1650_v39 = vadd.f32 %v1642_v48, %v1632_v9  ;;  %v1691_v44 = vmul.f32 %v1684_v42, %v3648_v5 }
  0xa2   : > { %v1680_v40 = vadd.f32 %v1679_v21, %v1672_v1  ;;  %v1657_v45 = vadd.f32 %v1656_v38, %v1647_v22  ;;  %v1692_v46 = vmul.f32 %v1684_v42, %v3650_v6  ;;  %v1694_v50 = vstv %s3765_s14  ;;  %s3929_s14 = sld [smem:[#allocation6 + $0x43]] }
  0xa3   : > { %v1658_v49 = vadd.f32 %v1656_v38, %v1648_v36  ;;  %v1659_v51 = vadd.f32 %v1656_v38, %v1649_v37  ;;  %v1660_v52 = vadd.f32 %v1656_v38, %v1650_v39  ;;  %v1699_v53 = vmul.f32 %v1694_v50, %v3657_v10 }
  0xa4   : > { %1681 = vadd.xlane.f32.xlu1 %v1680_v40  ;;  %v1665_v54 = vmax.f32 %v1657_v45, 0.0  ;;  %v1700_v55 = vmul.f32 %v1694_v50, %v3659_v11  ;;  %v1701_v56 = vmul.f32 %v1694_v50, %v3661_v12  ;;  %v1702_v57 = vmul.f32 %v1694_v50, %v3663_v13 }
  0xa5   : > { %v1666_v58 = vmax.f32 %v1658_v49, 0.0  ;;  %v1667_v41 = vmax.f32 %v1659_v51, 0.0  ;;  %v1668_v59 = vmax.f32 %v1660_v52, 0.0  ;;  %v1707_v60 = vadd.f32 %v1699_v53, %v1689_v27 }
  0xa6   : > { %v1708_v61 = vadd.f32 %v1700_v55, %v1690_v32  ;;  %v1709_v62 = vadd.f32 %v1701_v56, %v1691_v44  ;;  %v1710_v63 = vadd.f32 %v1702_v57, %v1692_v46  ;;  %v1712_v0 = vstv %s3773_s16  ;;  %s3937_s16 = sld [smem:[#allocation6 + $0x44]] }
  0xa7   : > { %v1673_v38 = vadd.f32 %v1666_v58, %v1665_v54  ;;  %v1717_v1 = vmul.f32 %v1712_v0, %v3667_v16  ;;  %v1718_v2 = vmul.f32 %v1712_v0, %v3669_v17  ;;  %v1719_v47 = vmul.f32 %v1712_v0, %v3671_v18 }
  0xa8   : > { %v1720_v7 = vmul.f32 %v1712_v0, %v3673_v19  ;;  %v1730_v8 = vstv %s3784_s10  ;;  %v1685_v9 = vmul.f32 %v1684_v42, %v3678_v23  ;;  %v1686_v14 = vmul.f32 %v1684_v42, %v3680_v24  ;;  %s3948_s10 = sld [smem:[#allocation7 + $0x16]] }
  0xa9   : > { %v1674_v15 = vadd.f32 %v1673_v38, %v1667_v41  ;;  %v1725_v20 = vadd.f32 %v1717_v1, %v1707_v60  ;;  %v1726_v48 = vadd.f32 %v1718_v2, %v1708_v61  ;;  %v1727_v21 = vadd.f32 %v1719_v47, %v1709_v62 }
  0xaa   : > { %v1728_v22 = vadd.f32 %v1720_v7, %v1710_v63  ;;  %v1687_v27 = vmul.f32 %v1684_v42, %v3682_v25  ;;  %v1688_v32 = vmul.f32 %v1684_v42, %v3684_v26  ;;  %v1695_v36 = vmul.f32 %v1694_v50, %v3687_v28 }
  0xab   : > { %v1675_v37 = vadd.f32 %v1674_v15, %v1668_v59  ;;  %v1735_v39 = vadd.f32 %v1730_v8, %v1725_v20  ;;  %v1736_v44 = vadd.f32 %v1730_v8, %v1726_v48  ;;  %v1737_v40 = vadd.f32 %v1730_v8, %v1727_v21 }
  0xac   : > { %v1738_v45 = vadd.f32 %v1730_v8, %v1728_v22  ;;  %v1696_v46 = vmul.f32 %v1694_v50, %v3689_v29  ;;  %v1697_v49 = vmul.f32 %v1694_v50, %v3691_v30  ;;  %v1698_v51 = vmul.f32 %v1694_v50, %v3693_v31 }
  0xad   : > { %1676 = vadd.xlane.f32.xlu0 %v1675_v37  ;;  %v1743_v52 = vmax.f32 %v1735_v39, 0.0  ;;  %v1744_v53 = vmax.f32 %v1736_v44, 0.0  ;;  %v1745_v42 = vmax.f32 %v1737_v40, 0.0  ;;  %v1703_v54 = vadd.f32 %v1695_v36, %v1685_v9 }
  0xae   : > { %v1746_v55 = vmax.f32 %v1738_v45, 0.0  ;;  %v1704_v56 = vadd.f32 %v1696_v46, %v1686_v14  ;;  %v1705_v57 = vadd.f32 %v1697_v49, %v1687_v27  ;;  %v1706_v58 = vadd.f32 %v1698_v51, %v1688_v32 }
  0xaf   : > { %v1752_v41 = vadd.f32 %v1744_v53, %v1743_v52  ;;  %v1713_v59 = vmul.f32 %v1712_v0, %v3696_v33  ;;  %v1714_v60 = vmul.f32 %v1712_v0, %v3698_v34  ;;  %v1715_v61 = vmul.f32 %v1712_v0, %v3700_v35 }
  0xb0   : > { %v1716_v50 = vmul.f32 %v1712_v0, %v3707_v43  ;;  %v1758_v62 = vstv %s3797_s12  ;;  %v1768_v63 = vstv %s3803_s1  ;;  %v3820_v38 = vstv %s3805_s23  ;;  %s3961_s12 = sld [smem:[#allocation6 + $0x45]]  ;;  %s3967_s1 = sld [smem:[#allocation6 + $0x46]] }
  0xb1   : > { %v1753_v1 = vadd.f32 %v1752_v41, %v1745_v42  ;;  %v1721_v2 = vadd.f32 %v1713_v59, %v1703_v54  ;;  %v1722_v47 = vadd.f32 %v1714_v60, %v1704_v56  ;;  %v1723_v7 = vadd.f32 %v1715_v61, %v1705_v57  ;;  %s3969_s23 = sld [smem:[#allocation6 + $0x47]] }
  0xb2   : > { %v1724_v9 = vadd.f32 %v1716_v50, %v1706_v58  ;;  %v1763_v14 = vmul.f32 %v1758_v62, %v3644_v3  ;;  %v1764_v15 = vmul.f32 %v1758_v62, %v3646_v4  ;;  %v1765_v20 = vmul.f32 %v1758_v62, %v3648_v5 }
  0xb3   : > { %v1754_v48 = vadd.f32 %v1753_v1, %v1746_v55  ;;  %v1731_v21 = vadd.f32 %v1730_v8, %v1721_v2  ;;  %v1732_v0 = vadd.f32 %v1730_v8, %v1722_v47  ;;  %v1733_v22 = vadd.f32 %v1730_v8, %v1723_v7 }
  0xb4   : > { %v1734_v27 = vadd.f32 %v1730_v8, %v1724_v9  ;;  %v1766_v32 = vmul.f32 %v1758_v62, %v3650_v6  ;;  %v1773_v36 = vmul.f32 %v1768_v63, %v3657_v10  ;;  %v1774_v37 = vmul.f32 %v1768_v63, %v3659_v11 }
  0xb5   : > { %1755 = vadd.xlane.f32.xlu1 %v1754_v48  ;;  %v1739_v39 = vmax.f32 %v1731_v21, 0.0  ;;  %v1740_v44 = vmax.f32 %v1732_v0, 0.0  ;;  %v1741_v40 = vmax.f32 %v1733_v22, 0.0  ;;  %v1775_v45 = vmul.f32 %v1768_v63, %v3661_v12 }
  0xb6   : > { %v1742_v46 = vmax.f32 %v1734_v27, 0.0  ;;  %v1776_v49 = vmul.f32 %v1768_v63, %v3663_v13  ;;  %v1781_v51 = vadd.f32 %v1773_v36, %v1763_v14  ;;  %v1782_v52 = vadd.f32 %v1774_v37, %v1764_v15 }
  0xb7   : > { %v1747_v53 = vadd.f32 %v1740_v44, %v1739_v39  ;;  %v1783_v8 = vadd.f32 %v1775_v45, %v1765_v20  ;;  %v1791_v42 = vmul.f32 %v3820_v38, %v3667_v16  ;;  %v1792_v54 = vmul.f32 %v3820_v38, %v3669_v17 }
  0xb8   : > { %v1784_v55 = vadd.f32 %v1776_v49, %v1766_v32  ;;  %v1793_v56 = vmul.f32 %v3820_v38, %v3671_v18  ;;  %v1794_v57 = vmul.f32 %v3820_v38, %v3673_v19  ;;  %v1804_v58 = vstv %s3822_s26  ;;  %s3986_s26 = sld [smem:[#allocation7 + $0x17]] }
  0xb9   : > { %v1748_v41 = vadd.f32 %v1747_v53, %v1741_v40  ;;  %v1799_v59 = vadd.f32 %v1791_v42, %v1781_v51  ;;  %v1800_v60 = vadd.f32 %v1792_v54, %v1782_v52  ;;  %v1759_v61 = vmul.f32 %v1758_v62, %v3678_v23 }
  0xba   : > { %v1801_v50 = vadd.f32 %v1793_v56, %v1783_v8  ;;  %v1802_v1 = vadd.f32 %v1794_v57, %v1784_v55  ;;  %v1760_v2 = vmul.f32 %v1758_v62, %v3680_v24  ;;  %v1761_v47 = vmul.f32 %v1758_v62, %v3682_v25 }
  0xbb   : > { %v1749_v7 = vadd.f32 %v1748_v41, %v1742_v46  ;;  %v1809_v9 = vadd.f32 %v1804_v58, %v1799_v59  ;;  %v1810_v14 = vadd.f32 %v1804_v58, %v1800_v60  ;;  %v1762_v15 = vmul.f32 %v1758_v62, %v3684_v26 }
  0xbc   : > { %v1811_v20 = vadd.f32 %v1804_v58, %v1801_v50  ;;  %v1812_v48 = vadd.f32 %v1804_v58, %v1802_v1  ;;  %v1769_v21 = vmul.f32 %v1768_v63, %v3687_v28  ;;  %v1770_v0 = vmul.f32 %v1768_v63, %v3689_v29 }
  0xbd   : > { %1750 = vadd.xlane.f32.xlu0 %v1749_v7  ;;  %v1817_v22 = vmax.f32 %v1809_v9, 0.0  ;;  %v1818_v27 = vmax.f32 %v1810_v14, 0.0  ;;  %v1771_v32 = vmul.f32 %v1768_v63, %v3691_v30  ;;  %v1772_v36 = vmul.f32 %v1768_v63, %v3693_v31 }
  0xbe   : > { %v1819_v37 = vmax.f32 %v1811_v20, 0.0  ;;  %v1820_v39 = vmax.f32 %v1812_v48, 0.0  ;;  %v1777_v44 = vadd.f32 %v1769_v21, %v1759_v61  ;;  %v1778_v62 = vadd.f32 %v1770_v0, %v1760_v2 }
  0xbf   : > { %v1826_v40 = vadd.f32 %v1818_v27, %v1817_v22  ;;  %v1779_v45 = vadd.f32 %v1771_v32, %v1761_v47  ;;  %v1780_v46 = vadd.f32 %v1772_v36, %v1762_v15  ;;  %v1787_v49 = vmul.f32 %v3820_v38, %v3696_v33 }
  0xc0   : > { %v1788_v51 = vmul.f32 %v3820_v38, %v3698_v34  ;;  %v1789_v52 = vmul.f32 %v3820_v38, %v3700_v35  ;;  %v1790_v63 = vmul.f32 %v3820_v38, %v3707_v43  ;;  %v1832_v53 = vstv %s3841_s28  ;;  %s4005_s28 = sld [smem:[#allocation6 + $0x48]] }
  0xc1   : > { %v1827_v8 = vadd.f32 %v1826_v40, %v1819_v37  ;;  %v1795_v42 = vadd.f32 %v1787_v49, %v1777_v44  ;;  %v1837_v54 = vmul.f32 %v1832_v53, %v3644_v3  ;;  %v1838_v55 = vmul.f32 %v1832_v53, %v3646_v4 }
  0xc2   : > { %v1796_v56 = vadd.f32 %v1788_v51, %v1778_v62  ;;  %v1797_v57 = vadd.f32 %v1789_v52, %v1779_v45  ;;  %v1798_v41 = vadd.f32 %v1790_v63, %v1780_v46  ;;  %v1839_v59 = vmul.f32 %v1832_v53, %v3648_v5 }
  0xc3   : > { %v1828_v60 = vadd.f32 %v1827_v8, %v1820_v39  ;;  %v1805_v61 = vadd.f32 %v1804_v58, %v1795_v42  ;;  %v1840_v50 = vmul.f32 %v1832_v53, %v3650_v6  ;;  %v1842_v1 = vstv %s3847_s29  ;;  %s4011_s29 = sld [smem:[#allocation6 + $0x49]] }
  0xc4   : > { %v1806_v38 = vadd.f32 %v1804_v58, %v1796_v56  ;;  %v1807_v2 = vadd.f32 %v1804_v58, %v1797_v57  ;;  %v1808_v47 = vadd.f32 %v1804_v58, %v1798_v41  ;;  %v1847_v7 = vmul.f32 %v1842_v1, %v3657_v10 }
  0xc5   : > { %1829 = vadd.xlane.f32.xlu1 %v1828_v60  ;;  %v1813_v9 = vmax.f32 %v1805_v61, 0.0  ;;  %v1848_v14 = vmul.f32 %v1842_v1, %v3659_v11  ;;  %v1849_v15 = vmul.f32 %v1842_v1, %v3661_v12  ;;  %v1850_v20 = vmul.f32 %v1842_v1, %v3663_v13 }
  0xc6   : > { %v1814_v48 = vmax.f32 %v1806_v38, 0.0  ;;  %v1815_v21 = vmax.f32 %v1807_v2, 0.0  ;;  %v1816_v0 = vmax.f32 %v1808_v47, 0.0  ;;  %v1855_v22 = vadd.f32 %v1847_v7, %v1837_v54 }
  0xc7   : > { %v1856_v27 = vadd.f32 %v1848_v14, %v1838_v55  ;;  %v1857_v32 = vadd.f32 %v1849_v15, %v1839_v59  ;;  %v1858_v36 = vadd.f32 %v1850_v20, %v1840_v50  ;;  %v1860_v37 = vstv %s3855_s7  ;;  %s4019_s7 = sld [smem:[#allocation6 + $0x4a]] }
  0xc8   : > { %v1821_v58 = vadd.f32 %v1814_v48, %v1813_v9  ;;  %v1865_v39 = vmul.f32 %v1860_v37, %v3667_v16  ;;  %v1866_v44 = vmul.f32 %v1860_v37, %v3669_v17  ;;  %v1867_v62 = vmul.f32 %v1860_v37, %v3671_v18 }
  0xc9   : > { %v1868_v40 = vmul.f32 %v1860_v37, %v3673_v19  ;;  %v1878_v45 = vstv %s3866_s9  ;;  %v1833_v46 = vmul.f32 %v1832_v53, %v3678_v23  ;;  %v1834_v49 = vmul.f32 %v1832_v53, %v3680_v24  ;;  %s4030_s9 = sld [smem:[#allocation7 + $0x18]] }
  0xca   : > { %v1822_v51 = vadd.f32 %v1821_v58, %v1815_v21  ;;  %v1873_v52 = vadd.f32 %v1865_v39, %v1855_v22  ;;  %v1874_v63 = vadd.f32 %v1866_v44, %v1856_v27  ;;  %v1875_v8 = vadd.f32 %v1867_v62, %v1857_v32 }
  0xcb   : > { %v1876_v42 = vadd.f32 %v1868_v40, %v1858_v36  ;;  %v1835_v54 = vmul.f32 %v1832_v53, %v3682_v25  ;;  %v1836_v55 = vmul.f32 %v1832_v53, %v3684_v26  ;;  %v1843_v56 = vmul.f32 %v1842_v1, %v3687_v28 }
  0xcc   : > { %v1823_v57 = vadd.f32 %v1822_v51, %v1816_v0  ;;  %v1883_v41 = vadd.f32 %v1878_v45, %v1873_v52  ;;  %v1884_v59 = vadd.f32 %v1878_v45, %v1874_v63  ;;  %v1885_v60 = vadd.f32 %v1878_v45, %v1875_v8 }
  0xcd   : > { %v1886_v61 = vadd.f32 %v1878_v45, %v1876_v42  ;;  %v1844_v50 = vmul.f32 %v1842_v1, %v3689_v29  ;;  %v1845_v38 = vmul.f32 %v1842_v1, %v3691_v30  ;;  %v1846_v2 = vmul.f32 %v1842_v1, %v3693_v31 }
  0xce   : > { %1824 = vadd.xlane.f32.xlu0 %v1823_v57  ;;  %v1891_v47 = vmax.f32 %v1883_v41, 0.0  ;;  %v1892_v7 = vmax.f32 %v1884_v59, 0.0  ;;  %v1893_v53 = vmax.f32 %v1885_v60, 0.0  ;;  %v1851_v9 = vadd.f32 %v1843_v56, %v1833_v46 }
  0xcf   : > { %v1894_v14 = vmax.f32 %v1886_v61, 0.0  ;;  %v1852_v15 = vadd.f32 %v1844_v50, %v1834_v49  ;;  %v1853_v20 = vadd.f32 %v1845_v38, %v1835_v54  ;;  %v1854_v48 = vadd.f32 %v1846_v2, %v1836_v55 }
  0xd0   : > { %v1900_v21 = vadd.f32 %v1892_v7, %v1891_v47  ;;  %v1861_v0 = vmul.f32 %v1860_v37, %v3696_v33  ;;  %v1862_v22 = vmul.f32 %v1860_v37, %v3698_v34  ;;  %v1863_v27 = vmul.f32 %v1860_v37, %v3700_v35 }
  0xd1   : > { %v1864_v1 = vmul.f32 %v1860_v37, %v3707_v43  ;;  %v1906_v32 = vstv %s3879_s17  ;;  %v1916_v36 = vstv %s3885_s13  ;;  %v3902_v58 = vstv %s3887_s25  ;;  %s4043_s17 = sld [smem:[#allocation6 + $0x4b]]  ;;  %s4049_s13 = sld [smem:[#allocation6 + $0x4c]] }
  0xd2   : > { %v1901_v39 = vadd.f32 %v1900_v21, %v1893_v53  ;;  %v1869_v44 = vadd.f32 %v1861_v0, %v1851_v9  ;;  %v1870_v62 = vadd.f32 %v1862_v22, %v1852_v15  ;;  %v1871_v40 = vadd.f32 %v1863_v27, %v1853_v20  ;;  %s4051_s25 = sld [smem:[#allocation6 + $0x4d]] }
  0xd3   : > { %v1872_v46 = vadd.f32 %v1864_v1, %v1854_v48  ;;  %v1911_v49 = vmul.f32 %v1906_v32, %v3644_v3  ;;  %v1912_v51 = vmul.f32 %v1906_v32, %v3646_v4  ;;  %v1913_v52 = vmul.f32 %v1906_v32, %v3648_v5 }
  0xd4   : > { %v1902_v63 = vadd.f32 %v1901_v39, %v1894_v14  ;;  %v1879_v8 = vadd.f32 %v1878_v45, %v1869_v44  ;;  %v1880_v37 = vadd.f32 %v1878_v45, %v1870_v62  ;;  %v1881_v42 = vadd.f32 %v1878_v45, %v1871_v40 }
  0xd5   : > { %v1882_v54 = vadd.f32 %v1878_v45, %v1872_v46  ;;  %v1914_v55 = vmul.f32 %v1906_v32, %v3650_v6  ;;  %v1921_v56 = vmul.f32 %v1916_v36, %v3657_v10  ;;  %v1922_v57 = vmul.f32 %v1916_v36, %v3659_v11 }
  0xd6   : > { %1903 = vadd.xlane.f32.xlu1 %v1902_v63  ;;  %v1887_v41 = vmax.f32 %v1879_v8, 0.0  ;;  %v1888_v59 = vmax.f32 %v1880_v37, 0.0  ;;  %v1889_v60 = vmax.f32 %v1881_v42, 0.0  ;;  %v1923_v61 = vmul.f32 %v1916_v36, %v3661_v12 }
  0xd7   : > { %v1890_v50 = vmax.f32 %v1882_v54, 0.0  ;;  %v1924_v38 = vmul.f32 %v1916_v36, %v3663_v13  ;;  %v1929_v2 = vadd.f32 %v1921_v56, %v1911_v49  ;;  %v1930_v47 = vadd.f32 %v1922_v57, %v1912_v51 }
  0xd8   : > { %v1895_v7 = vadd.f32 %v1888_v59, %v1887_v41  ;;  %v1931_v45 = vadd.f32 %v1923_v61, %v1913_v52  ;;  %v1939_v53 = vmul.f32 %v3902_v58, %v3667_v16  ;;  %v1940_v9 = vmul.f32 %v3902_v58, %v3669_v17 }
  0xd9   : > { %v1932_v14 = vadd.f32 %v1924_v38, %v1914_v55  ;;  %v1941_v15 = vmul.f32 %v3902_v58, %v3671_v18  ;;  %v1942_v20 = vmul.f32 %v3902_v58, %v3673_v19  ;;  %v1952_v48 = vstv %s3904_s8  ;;  %s4068_s8 = sld [smem:[#allocation7 + $0x19]] }
  0xda   : > { %v1896_v21 = vadd.f32 %v1895_v7, %v1889_v60  ;;  %v1947_v0 = vadd.f32 %v1939_v53, %v1929_v2  ;;  %v1948_v22 = vadd.f32 %v1940_v9, %v1930_v47  ;;  %v1907_v27 = vmul.f32 %v1906_v32, %v3678_v23 }
  0xdb   : > { %v1949_v1 = vadd.f32 %v1941_v15, %v1931_v45  ;;  %v1950_v39 = vadd.f32 %v1942_v20, %v1932_v14  ;;  %v1908_v44 = vmul.f32 %v1906_v32, %v3680_v24  ;;  %v1909_v62 = vmul.f32 %v1906_v32, %v3682_v25 }
  0xdc   : > { %v1897_v40 = vadd.f32 %v1896_v21, %v1890_v50  ;;  %v1957_v46 = vadd.f32 %v1952_v48, %v1947_v0  ;;  %v1958_v49 = vadd.f32 %v1952_v48, %v1948_v22  ;;  %v1910_v51 = vmul.f32 %v1906_v32, %v3684_v26 }
  0xdd   : > { %v1959_v52 = vadd.f32 %v1952_v48, %v1949_v1  ;;  %v1960_v63 = vadd.f32 %v1952_v48, %v1950_v39  ;;  %v1917_v8 = vmul.f32 %v1916_v36, %v3687_v28  ;;  %v1918_v37 = vmul.f32 %v1916_v36, %v3689_v29 }
  0xde   : > { %1898 = vadd.xlane.f32.xlu0 %v1897_v40  ;;  %v1965_v42 = vmax.f32 %v1957_v46, 0.0  ;;  %v1966_v54 = vmax.f32 %v1958_v49, 0.0  ;;  %v1919_v55 = vmul.f32 %v1916_v36, %v3691_v30  ;;  %v1920_v56 = vmul.f32 %v1916_v36, %v3693_v31 }
  0xdf   : > { %v1967_v57 = vmax.f32 %v1959_v52, 0.0  ;;  %v1968_v41 = vmax.f32 %v1960_v63, 0.0  ;;  %v1925_v59 = vadd.f32 %v1917_v8, %v1907_v27  ;;  %v1926_v32 = vadd.f32 %v1918_v37, %v1908_v44 }
  0xe0   : > { %v1974_v60 = vadd.f32 %v1966_v54, %v1965_v42  ;;  %v1927_v61 = vadd.f32 %v1919_v55, %v1909_v62  ;;  %v1928_v50 = vadd.f32 %v1920_v56, %v1910_v51  ;;  %v1935_v38 = vmul.f32 %v3902_v58, %v3696_v33 }
  0xe1   : > { %v1936_v2 = vmul.f32 %v3902_v58, %v3698_v34  ;;  %v1937_v47 = vmul.f32 %v3902_v58, %v3700_v35  ;;  %v1938_v36 = vmul.f32 %v3902_v58, %v3707_v43  ;;  %v1980_v7 = vstv %s3923_s11  ;;  %s4087_s11 = sld [smem:[#allocation6 + $0x4e]] }
  0xe2   : > { %v1975_v45 = vadd.f32 %v1974_v60, %v1967_v57  ;;  %v1943_v53 = vadd.f32 %v1935_v38, %v1925_v59  ;;  %v1985_v9 = vmul.f32 %v1980_v7, %v3644_v3  ;;  %v1986_v14 = vmul.f32 %v1980_v7, %v3646_v4 }
  0xe3   : > { %v1944_v15 = vadd.f32 %v1936_v2, %v1926_v32  ;;  %v1945_v20 = vadd.f32 %v1937_v47, %v1927_v61  ;;  %v1946_v21 = vadd.f32 %v1938_v36, %v1928_v50  ;;  %v1987_v0 = vmul.f32 %v1980_v7, %v3648_v5 }
  0xe4   : > { %v1976_v22 = vadd.f32 %v1975_v45, %v1968_v41  ;;  %v1953_v27 = vadd.f32 %v1952_v48, %v1943_v53  ;;  %v1988_v1 = vmul.f32 %v1980_v7, %v3650_v6  ;;  %v1990_v39 = vstv %s3929_s14  ;;  %s4093_s14 = sld [smem:[#allocation6 + $0x4f]] }
  0xe5   : > { %v1954_v58 = vadd.f32 %v1952_v48, %v1944_v15  ;;  %v1955_v44 = vadd.f32 %v1952_v48, %v1945_v20  ;;  %v1956_v62 = vadd.f32 %v1952_v48, %v1946_v21  ;;  %v1995_v40 = vmul.f32 %v1990_v39, %v3657_v10 }
  0xe6   : > { %1977 = vadd.xlane.f32.xlu1 %v1976_v22  ;;  %v1961_v46 = vmax.f32 %v1953_v27, 0.0  ;;  %v1996_v49 = vmul.f32 %v1990_v39, %v3659_v11  ;;  %v1997_v51 = vmul.f32 %v1990_v39, %v3661_v12  ;;  %v1998_v52 = vmul.f32 %v1990_v39, %v3663_v13 }
  0xe7   : > { %v1962_v63 = vmax.f32 %v1954_v58, 0.0  ;;  %v1963_v8 = vmax.f32 %v1955_v44, 0.0  ;;  %v1964_v37 = vmax.f32 %v1956_v62, 0.0  ;;  %v2003_v42 = vadd.f32 %v1995_v40, %v1985_v9 }
  0xe8   : > { %v2004_v54 = vadd.f32 %v1996_v49, %v1986_v14  ;;  %v2005_v55 = vadd.f32 %v1997_v51, %v1987_v0  ;;  %v2006_v56 = vadd.f32 %v1998_v52, %v1988_v1  ;;  %v2008_v57 = vstv %s3937_s16  ;;  %s4101_s16 = sld [smem:[#allocation6 + $0x50]] }
  0xe9   : > { %v1969_v48 = vadd.f32 %v1962_v63, %v1961_v46  ;;  %v2013_v41 = vmul.f32 %v2008_v57, %v3667_v16  ;;  %v2014_v59 = vmul.f32 %v2008_v57, %v3669_v17  ;;  %v2015_v32 = vmul.f32 %v2008_v57, %v3671_v18 }
  0xea   : > { %v2016_v60 = vmul.f32 %v2008_v57, %v3673_v19  ;;  %v2026_v61 = vstv %s3948_s10  ;;  %v1981_v50 = vmul.f32 %v1980_v7, %v3678_v23  ;;  %v1982_v38 = vmul.f32 %v1980_v7, %v3680_v24  ;;  %s4112_s10 = sld [smem:[#allocation7 + $0x1a]] }
  0xeb   : > { %v1970_v2 = vadd.f32 %v1969_v48, %v1963_v8  ;;  %v2021_v47 = vadd.f32 %v2013_v41, %v2003_v42  ;;  %v2022_v36 = vadd.f32 %v2014_v59, %v2004_v54  ;;  %v2023_v45 = vadd.f32 %v2015_v32, %v2005_v55 }
  0xec   : > { %v2024_v53 = vadd.f32 %v2016_v60, %v2006_v56  ;;  %v1983_v9 = vmul.f32 %v1980_v7, %v3682_v25  ;;  %v1984_v14 = vmul.f32 %v1980_v7, %v3684_v26  ;;  %v1991_v15 = vmul.f32 %v1990_v39, %v3687_v28 }
  0xed   : > { %v1971_v20 = vadd.f32 %v1970_v2, %v1964_v37  ;;  %v2031_v21 = vadd.f32 %v2026_v61, %v2021_v47  ;;  %v2032_v0 = vadd.f32 %v2026_v61, %v2022_v36  ;;  %v2033_v22 = vadd.f32 %v2026_v61, %v2023_v45 }
  0xee   : > { %v2034_v27 = vadd.f32 %v2026_v61, %v2024_v53  ;;  %v1992_v1 = vmul.f32 %v1990_v39, %v3689_v29  ;;  %v1993_v58 = vmul.f32 %v1990_v39, %v3691_v30  ;;  %v1994_v44 = vmul.f32 %v1990_v39, %v3693_v31 }
  0xef   : > { %1972 = vadd.xlane.f32.xlu0 %v1971_v20  ;;  %v2039_v62 = vmax.f32 %v2031_v21, 0.0  ;;  %v2040_v40 = vmax.f32 %v2032_v0, 0.0  ;;  %v2041_v7 = vmax.f32 %v2033_v22, 0.0  ;;  %v1999_v46 = vadd.f32 %v1991_v15, %v1981_v50 }
  0xf0   : > { %v2042_v49 = vmax.f32 %v2034_v27, 0.0  ;;  %v2000_v51 = vadd.f32 %v1992_v1, %v1982_v38  ;;  %v2001_v52 = vadd.f32 %v1993_v58, %v1983_v9  ;;  %v2002_v63 = vadd.f32 %v1994_v44, %v1984_v14 }
  0xf1   : > { %v2048_v8 = vadd.f32 %v2040_v40, %v2039_v62  ;;  %v2009_v37 = vmul.f32 %v2008_v57, %v3696_v33  ;;  %v2010_v42 = vmul.f32 %v2008_v57, %v3698_v34  ;;  %v2011_v54 = vmul.f32 %v2008_v57, %v3700_v35 }
  0xf2   : > { %v2012_v39 = vmul.f32 %v2008_v57, %v3707_v43  ;;  %v2054_v55 = vstv %s3961_s12  ;;  %v2064_v56 = vstv %s3967_s1  ;;  %v3984_v48 = vstv %s3969_s23  ;;  %s4125_s12 = sld [smem:[#allocation6 + $0x51]]  ;;  %s4131_s1 = sld [smem:[#allocation6 + $0x52]] }
  0xf3   : > { %v2049_v41 = vadd.f32 %v2048_v8, %v2041_v7  ;;  %v2017_v59 = vadd.f32 %v2009_v37, %v1999_v46  ;;  %v2018_v32 = vadd.f32 %v2010_v42, %v2000_v51  ;;  %v2019_v60 = vadd.f32 %v2011_v54, %v2001_v52  ;;  %s4133_s23 = sld [smem:[#allocation6 + $0x53]] }
  0xf4   : > { %v2020_v50 = vadd.f32 %v2012_v39, %v2002_v63  ;;  %v2059_v38 = vmul.f32 %v2054_v55, %v3644_v3  ;;  %v2060_v2 = vmul.f32 %v2054_v55, %v3646_v4  ;;  %v2061_v47 = vmul.f32 %v2054_v55, %v3648_v5 }
  0xf5   : > { %v2050_v36 = vadd.f32 %v2049_v41, %v2042_v49  ;;  %v2027_v45 = vadd.f32 %v2026_v61, %v2017_v59  ;;  %v2028_v57 = vadd.f32 %v2026_v61, %v2018_v32  ;;  %v2029_v53 = vadd.f32 %v2026_v61, %v2019_v60 }
  0xf6   : > { %v2030_v9 = vadd.f32 %v2026_v61, %v2020_v50  ;;  %v2062_v14 = vmul.f32 %v2054_v55, %v3650_v6  ;;  %v2069_v15 = vmul.f32 %v2064_v56, %v3657_v10  ;;  %v2070_v20 = vmul.f32 %v2064_v56, %v3659_v11 }
  0xf7   : > { %2051 = vadd.xlane.f32.xlu1 %v2050_v36  ;;  %v2035_v21 = vmax.f32 %v2027_v45, 0.0  ;;  %v2036_v0 = vmax.f32 %v2028_v57, 0.0  ;;  %v2037_v22 = vmax.f32 %v2029_v53, 0.0  ;;  %v2071_v27 = vmul.f32 %v2064_v56, %v3661_v12 }
  0xf8   : > { %v2038_v1 = vmax.f32 %v2030_v9, 0.0  ;;  %v2072_v58 = vmul.f32 %v2064_v56, %v3663_v13  ;;  %v2077_v44 = vadd.f32 %v2069_v15, %v2059_v38  ;;  %v2078_v62 = vadd.f32 %v2070_v20, %v2060_v2 }
  0xf9   : > { %v2043_v40 = vadd.f32 %v2036_v0, %v2035_v21  ;;  %v2079_v61 = vadd.f32 %v2071_v27, %v2061_v47  ;;  %v2087_v7 = vmul.f32 %v3984_v48, %v3667_v16  ;;  %v2088_v46 = vmul.f32 %v3984_v48, %v3669_v17 }
  0xfa   : > { %v2080_v49 = vadd.f32 %v2072_v58, %v2062_v14  ;;  %v2089_v51 = vmul.f32 %v3984_v48, %v3671_v18  ;;  %v2090_v52 = vmul.f32 %v3984_v48, %v3673_v19  ;;  %v2100_v63 = vstv %s3986_s26  ;;  %s4150_s26 = sld [smem:[#allocation7 + $0x1b]] }
  0xfb   : > { %v2044_v8 = vadd.f32 %v2043_v40, %v2037_v22  ;;  %v2095_v37 = vadd.f32 %v2087_v7, %v2077_v44  ;;  %v2096_v42 = vadd.f32 %v2088_v46, %v2078_v62  ;;  %v2055_v54 = vmul.f32 %v2054_v55, %v3678_v23 }
  0xfc   : > { %v2097_v39 = vadd.f32 %v2089_v51, %v2079_v61  ;;  %v2098_v41 = vadd.f32 %v2090_v52, %v2080_v49  ;;  %v2056_v59 = vmul.f32 %v2054_v55, %v3680_v24  ;;  %v2057_v32 = vmul.f32 %v2054_v55, %v3682_v25 }
  0xfd   : > { %v2045_v60 = vadd.f32 %v2044_v8, %v2038_v1  ;;  %v2105_v50 = vadd.f32 %v2100_v63, %v2095_v37  ;;  %v2106_v38 = vadd.f32 %v2100_v63, %v2096_v42  ;;  %v2058_v2 = vmul.f32 %v2054_v55, %v3684_v26 }
  0xfe   : > { %v2107_v47 = vadd.f32 %v2100_v63, %v2097_v39  ;;  %v2108_v36 = vadd.f32 %v2100_v63, %v2098_v41  ;;  %v2065_v45 = vmul.f32 %v2064_v56, %v3687_v28  ;;  %v2066_v57 = vmul.f32 %v2064_v56, %v3689_v29 }
  0xff   : > { %2046 = vadd.xlane.f32.xlu0 %v2045_v60  ;;  %v2113_v53 = vmax.f32 %v2105_v50, 0.0  ;;  %v2114_v9 = vmax.f32 %v2106_v38, 0.0  ;;  %v2067_v14 = vmul.f32 %v2064_v56, %v3691_v30  ;;  %v2068_v15 = vmul.f32 %v2064_v56, %v3693_v31 }
 0x100   : > { %v2115_v20 = vmax.f32 %v2107_v47, 0.0  ;;  %v2116_v21 = vmax.f32 %v2108_v36, 0.0  ;;  %v2073_v0 = vadd.f32 %v2065_v45, %v2055_v54  ;;  %v2074_v55 = vadd.f32 %v2066_v57, %v2056_v59 }
 0x101   : > { %v2122_v22 = vadd.f32 %v2114_v9, %v2113_v53  ;;  %v2075_v27 = vadd.f32 %v2067_v14, %v2057_v32  ;;  %v2076_v1 = vadd.f32 %v2068_v15, %v2058_v2  ;;  %v2083_v58 = vmul.f32 %v3984_v48, %v3696_v33 }
 0x102   : > { %v2084_v44 = vmul.f32 %v3984_v48, %v3698_v34  ;;  %v2085_v62 = vmul.f32 %v3984_v48, %v3700_v35  ;;  %v2086_v56 = vmul.f32 %v3984_v48, %v3707_v43  ;;  %v2128_v40 = vstv %s4005_s28  ;;  %s4169_s28 = sld [smem:[#allocation6 + $0x54]] }
 0x103   : > { %v2123_v61 = vadd.f32 %v2122_v22, %v2115_v20  ;;  %v2091_v7 = vadd.f32 %v2083_v58, %v2073_v0  ;;  %v2133_v46 = vmul.f32 %v2128_v40, %v3644_v3  ;;  %v2134_v49 = vmul.f32 %v2128_v40, %v3646_v4 }
 0x104   : > { %v2092_v51 = vadd.f32 %v2084_v44, %v2074_v55  ;;  %v2093_v52 = vadd.f32 %v2085_v62, %v2075_v27  ;;  %v2094_v8 = vadd.f32 %v2086_v56, %v2076_v1  ;;  %v2135_v37 = vmul.f32 %v2128_v40, %v3648_v5 }
 0x105   : > { %v2124_v42 = vadd.f32 %v2123_v61, %v2116_v21  ;;  %v2101_v54 = vadd.f32 %v2100_v63, %v2091_v7  ;;  %v2136_v39 = vmul.f32 %v2128_v40, %v3650_v6  ;;  %v2138_v41 = vstv %s4011_s29  ;;  %s4175_s29 = sld [smem:[#allocation6 + $0x55]] }
 0x106   : > { %v2102_v48 = vadd.f32 %v2100_v63, %v2092_v51  ;;  %v2103_v59 = vadd.f32 %v2100_v63, %v2093_v52  ;;  %v2104_v32 = vadd.f32 %v2100_v63, %v2094_v8  ;;  %v2143_v60 = vmul.f32 %v2138_v41, %v3657_v10 }
 0x107   : > { %2125 = vadd.xlane.f32.xlu1 %v2124_v42  ;;  %v2109_v50 = vmax.f32 %v2101_v54, 0.0  ;;  %v2144_v38 = vmul.f32 %v2138_v41, %v3659_v11  ;;  %v2145_v2 = vmul.f32 %v2138_v41, %v3661_v12  ;;  %v2146_v47 = vmul.f32 %v2138_v41, %v3663_v13 }
 0x108   : > { %v2110_v36 = vmax.f32 %v2102_v48, 0.0  ;;  %v2111_v45 = vmax.f32 %v2103_v59, 0.0  ;;  %v2112_v57 = vmax.f32 %v2104_v32, 0.0  ;;  %v2151_v53 = vadd.f32 %v2143_v60, %v2133_v46 }
 0x109   : > { %v2152_v9 = vadd.f32 %v2144_v38, %v2134_v49  ;;  %v2153_v14 = vadd.f32 %v2145_v2, %v2135_v37  ;;  %v2154_v15 = vadd.f32 %v2146_v47, %v2136_v39  ;;  %v2156_v20 = vstv %s4019_s7  ;;  %s4183_s7 = sld [smem:[#allocation6 + $0x56]] }
 0x10a   : > { %v2117_v63 = vadd.f32 %v2110_v36, %v2109_v50  ;;  %v2161_v21 = vmul.f32 %v2156_v20, %v3667_v16  ;;  %v2162_v0 = vmul.f32 %v2156_v20, %v3669_v17  ;;  %v2163_v55 = vmul.f32 %v2156_v20, %v3671_v18 }
 0x10b   : > { %v2164_v22 = vmul.f32 %v2156_v20, %v3673_v19  ;;  %v2174_v27 = vstv %s4030_s9  ;;  %v2129_v1 = vmul.f32 %v2128_v40, %v3678_v23  ;;  %v2130_v58 = vmul.f32 %v2128_v40, %v3680_v24  ;;  %s4194_s9 = sld [smem:[#allocation7 + $0x1c]] }
 0x10c   : > { %v2118_v44 = vadd.f32 %v2117_v63, %v2111_v45  ;;  %v2169_v62 = vadd.f32 %v2161_v21, %v2151_v53  ;;  %v2170_v56 = vadd.f32 %v2162_v0, %v2152_v9  ;;  %v2171_v61 = vadd.f32 %v2163_v55, %v2153_v14 }
 0x10d   : > { %v2172_v7 = vadd.f32 %v2164_v22, %v2154_v15  ;;  %v2131_v46 = vmul.f32 %v2128_v40, %v3682_v25  ;;  %v2132_v49 = vmul.f32 %v2128_v40, %v3684_v26  ;;  %v2139_v51 = vmul.f32 %v2138_v41, %v3687_v28 }
 0x10e   : > { %v2119_v52 = vadd.f32 %v2118_v44, %v2112_v57  ;;  %v2179_v8 = vadd.f32 %v2174_v27, %v2169_v62  ;;  %v2180_v37 = vadd.f32 %v2174_v27, %v2170_v56  ;;  %v2181_v42 = vadd.f32 %v2174_v27, %v2171_v61 }
 0x10f   : > { %v2182_v54 = vadd.f32 %v2174_v27, %v2172_v7  ;;  %v2140_v39 = vmul.f32 %v2138_v41, %v3689_v29  ;;  %v2141_v48 = vmul.f32 %v2138_v41, %v3691_v30  ;;  %v2142_v59 = vmul.f32 %v2138_v41, %v3693_v31 }
 0x110   : > { %2120 = vadd.xlane.f32.xlu0 %v2119_v52  ;;  %v2187_v32 = vmax.f32 %v2179_v8, 0.0  ;;  %v2188_v60 = vmax.f32 %v2180_v37, 0.0  ;;  %v2189_v40 = vmax.f32 %v2181_v42, 0.0  ;;  %v2147_v50 = vadd.f32 %v2139_v51, %v2129_v1 }
 0x111   : > { %v2190_v38 = vmax.f32 %v2182_v54, 0.0  ;;  %v2148_v2 = vadd.f32 %v2140_v39, %v2130_v58  ;;  %v2149_v47 = vadd.f32 %v2141_v48, %v2131_v46  ;;  %v2150_v36 = vadd.f32 %v2142_v59, %v2132_v49 }
 0x112   : > { %v2196_v45 = vadd.f32 %v2188_v60, %v2187_v32  ;;  %v2157_v57 = vmul.f32 %v2156_v20, %v3696_v33  ;;  %v2158_v53 = vmul.f32 %v2156_v20, %v3698_v34  ;;  %v2159_v9 = vmul.f32 %v2156_v20, %v3700_v35 }
 0x113   : > { %v2160_v41 = vmul.f32 %v2156_v20, %v3707_v43  ;;  %v2202_v14 = vstv %s4043_s17  ;;  %v2212_v15 = vstv %s4049_s13  ;;  %v4066_v63 = vstv %s4051_s25  ;;  %s4207_s17 = sld [smem:[#allocation6 + $0x57]]  ;;  %s4213_s13 = sld [smem:[#allocation6 + $0x58]] }
 0x114   : > { %v2197_v21 = vadd.f32 %v2196_v45, %v2189_v40  ;;  %v2165_v0 = vadd.f32 %v2157_v57, %v2147_v50  ;;  %v2166_v55 = vadd.f32 %v2158_v53, %v2148_v2  ;;  %v2167_v22 = vadd.f32 %v2159_v9, %v2149_v47  ;;  %s4215_s25 = sld [smem:[#allocation6 + $0x59]] }
 0x115   : > { %v2168_v1 = vadd.f32 %v2160_v41, %v2150_v36  ;;  %v2207_v58 = vmul.f32 %v2202_v14, %v3644_v3  ;;  %v2208_v44 = vmul.f32 %v2202_v14, %v3646_v4  ;;  %v2209_v62 = vmul.f32 %v2202_v14, %v3648_v5 }
 0x116   : > { %v2198_v56 = vadd.f32 %v2197_v21, %v2190_v38  ;;  %v2175_v61 = vadd.f32 %v2174_v27, %v2165_v0  ;;  %v2176_v20 = vadd.f32 %v2174_v27, %v2166_v55  ;;  %v2177_v7 = vadd.f32 %v2174_v27, %v2167_v22 }
 0x117   : > { %v2178_v46 = vadd.f32 %v2174_v27, %v2168_v1  ;;  %v2210_v49 = vmul.f32 %v2202_v14, %v3650_v6  ;;  %v2217_v51 = vmul.f32 %v2212_v15, %v3657_v10  ;;  %v2218_v52 = vmul.f32 %v2212_v15, %v3659_v11 }
 0x118   : > { %2199 = vadd.xlane.f32.xlu1 %v2198_v56  ;;  %v2183_v8 = vmax.f32 %v2175_v61, 0.0  ;;  %v2184_v37 = vmax.f32 %v2176_v20, 0.0  ;;  %v2185_v42 = vmax.f32 %v2177_v7, 0.0  ;;  %v2219_v54 = vmul.f32 %v2212_v15, %v3661_v12 }
 0x119   : > { %v2186_v39 = vmax.f32 %v2178_v46, 0.0  ;;  %v2220_v48 = vmul.f32 %v2212_v15, %v3663_v13  ;;  %v2225_v59 = vadd.f32 %v2217_v51, %v2207_v58  ;;  %v2226_v32 = vadd.f32 %v2218_v52, %v2208_v44 }
 0x11a   : > { %v2191_v60 = vadd.f32 %v2184_v37, %v2183_v8  ;;  %v2227_v27 = vadd.f32 %v2219_v54, %v2209_v62  ;;  %v2235_v40 = vmul.f32 %v4066_v63, %v3667_v16  ;;  %v2236_v50 = vmul.f32 %v4066_v63, %v3669_v17 }
 0x11b   : > { %v2228_v38 = vadd.f32 %v2220_v48, %v2210_v49  ;;  %v2237_v2 = vmul.f32 %v4066_v63, %v3671_v18  ;;  %v2238_v47 = vmul.f32 %v4066_v63, %v3673_v19  ;;  %v2248_v36 = vstv %s4068_s8  ;;  %s4232_s8 = sld [smem:[#allocation7 + $0x1d]] }
 0x11c   : > { %v2192_v45 = vadd.f32 %v2191_v60, %v2185_v42  ;;  %v2243_v57 = vadd.f32 %v2235_v40, %v2225_v59  ;;  %v2244_v53 = vadd.f32 %v2236_v50, %v2226_v32  ;;  %v2203_v9 = vmul.f32 %v2202_v14, %v3678_v23 }
 0x11d   : > { %v2245_v41 = vadd.f32 %v2237_v2, %v2227_v27  ;;  %v2246_v21 = vadd.f32 %v2238_v47, %v2228_v38  ;;  %v2204_v0 = vmul.f32 %v2202_v14, %v3680_v24  ;;  %v2205_v55 = vmul.f32 %v2202_v14, %v3682_v25 }
 0x11e   : > { %v2193_v22 = vadd.f32 %v2192_v45, %v2186_v39  ;;  %v2253_v1 = vadd.f32 %v2248_v36, %v2243_v57  ;;  %v2254_v58 = vadd.f32 %v2248_v36, %v2244_v53  ;;  %v2206_v44 = vmul.f32 %v2202_v14, %v3684_v26 }
 0x11f   : > { %v2255_v62 = vadd.f32 %v2248_v36, %v2245_v41  ;;  %v2256_v56 = vadd.f32 %v2248_v36, %v2246_v21  ;;  %v2213_v61 = vmul.f32 %v2212_v15, %v3687_v28  ;;  %v2214_v20 = vmul.f32 %v2212_v15, %v3689_v29 }
 0x120   : > { %2194 = vadd.xlane.f32.xlu0 %v2193_v22  ;;  %v2261_v7 = vmax.f32 %v2253_v1, 0.0  ;;  %v2262_v46 = vmax.f32 %v2254_v58, 0.0  ;;  %v2215_v49 = vmul.f32 %v2212_v15, %v3691_v30  ;;  %v2216_v51 = vmul.f32 %v2212_v15, %v3693_v31 }
 0x121   : > { %v2263_v52 = vmax.f32 %v2255_v62, 0.0  ;;  %v2264_v8 = vmax.f32 %v2256_v56, 0.0  ;;  %v2221_v37 = vadd.f32 %v2213_v61, %v2203_v9  ;;  %v2222_v14 = vadd.f32 %v2214_v20, %v2204_v0 }
 0x122   : > { %v2270_v42 = vadd.f32 %v2262_v46, %v2261_v7  ;;  %v2223_v54 = vadd.f32 %v2215_v49, %v2205_v55  ;;  %v2224_v39 = vadd.f32 %v2216_v51, %v2206_v44  ;;  %v2231_v48 = vmul.f32 %v4066_v63, %v3696_v33 }
 0x123   : > { %v2232_v59 = vmul.f32 %v4066_v63, %v3698_v34  ;;  %v2233_v32 = vmul.f32 %v4066_v63, %v3700_v35  ;;  %v2234_v15 = vmul.f32 %v4066_v63, %v3707_v43  ;;  %v2276_v60 = vstv %s4087_s11  ;;  %s4251_s11 = sld [smem:[#allocation6 + $0x5a]] }
 0x124   : > { %v2271_v27 = vadd.f32 %v2270_v42, %v2263_v52  ;;  %v2239_v40 = vadd.f32 %v2231_v48, %v2221_v37  ;;  %v2281_v50 = vmul.f32 %v2276_v60, %v3644_v3  ;;  %v2282_v38 = vmul.f32 %v2276_v60, %v3646_v4 }
 0x125   : > { %v2240_v2 = vadd.f32 %v2232_v59, %v2222_v14  ;;  %v2241_v47 = vadd.f32 %v2233_v32, %v2223_v54  ;;  %v2242_v45 = vadd.f32 %v2234_v15, %v2224_v39  ;;  %v2283_v57 = vmul.f32 %v2276_v60, %v3648_v5 }
 0x126   : > { %v2272_v53 = vadd.f32 %v2271_v27, %v2264_v8  ;;  %v2249_v9 = vadd.f32 %v2248_v36, %v2239_v40  ;;  %v2284_v41 = vmul.f32 %v2276_v60, %v3650_v6  ;;  %v2286_v21 = vstv %s4093_s14  ;;  %s4257_s14 = sld [smem:[#allocation6 + $0x5b]] }
 0x127   : > { %v2250_v63 = vadd.f32 %v2248_v36, %v2240_v2  ;;  %v2251_v0 = vadd.f32 %v2248_v36, %v2241_v47  ;;  %v2252_v55 = vadd.f32 %v2248_v36, %v2242_v45  ;;  %v2291_v22 = vmul.f32 %v2286_v21, %v3657_v10 }
 0x128   : > { %2273 = vadd.xlane.f32.xlu1 %v2272_v53  ;;  %v2257_v1 = vmax.f32 %v2249_v9, 0.0  ;;  %v2292_v58 = vmul.f32 %v2286_v21, %v3659_v11  ;;  %v2293_v44 = vmul.f32 %v2286_v21, %v3661_v12  ;;  %v2294_v62 = vmul.f32 %v2286_v21, %v3663_v13 }
 0x129   : > { %v2258_v56 = vmax.f32 %v2250_v63, 0.0  ;;  %v2259_v61 = vmax.f32 %v2251_v0, 0.0  ;;  %v2260_v20 = vmax.f32 %v2252_v55, 0.0  ;;  %v2299_v7 = vadd.f32 %v2291_v22, %v2281_v50 }
 0x12a   : > { %v2300_v46 = vadd.f32 %v2292_v58, %v2282_v38  ;;  %v2301_v49 = vadd.f32 %v2293_v44, %v2283_v57  ;;  %v2302_v51 = vadd.f32 %v2294_v62, %v2284_v41  ;;  %v2304_v52 = vstv %s4101_s16  ;;  %s4265_s16 = sld [smem:[#allocation6 + $0x5c]] }
 0x12b   : > { %v2265_v36 = vadd.f32 %v2258_v56, %v2257_v1  ;;  %v2309_v8 = vmul.f32 %v2304_v52, %v3667_v16  ;;  %v2310_v37 = vmul.f32 %v2304_v52, %v3669_v17  ;;  %v2311_v14 = vmul.f32 %v2304_v52, %v3671_v18 }
 0x12c   : > { %v2312_v42 = vmul.f32 %v2304_v52, %v3673_v19  ;;  %v2322_v54 = vstv %s4112_s10  ;;  %v2277_v39 = vmul.f32 %v2276_v60, %v3678_v23  ;;  %v2278_v48 = vmul.f32 %v2276_v60, %v3680_v24  ;;  %s4276_s10 = sld [smem:[#allocation7 + $0x1e]] }
 0x12d   : > { %v2266_v59 = vadd.f32 %v2265_v36, %v2259_v61  ;;  %v2317_v32 = vadd.f32 %v2309_v8, %v2299_v7  ;;  %v2318_v15 = vadd.f32 %v2310_v37, %v2300_v46  ;;  %v2319_v27 = vadd.f32 %v2311_v14, %v2301_v49 }
 0x12e   : > { %v2320_v40 = vadd.f32 %v2312_v42, %v2302_v51  ;;  %v2279_v50 = vmul.f32 %v2276_v60, %v3682_v25  ;;  %v2280_v38 = vmul.f32 %v2276_v60, %v3684_v26  ;;  %v2287_v2 = vmul.f32 %v2286_v21, %v3687_v28 }
 0x12f   : > { %v2267_v47 = vadd.f32 %v2266_v59, %v2260_v20  ;;  %v2327_v45 = vadd.f32 %v2322_v54, %v2317_v32  ;;  %v2328_v57 = vadd.f32 %v2322_v54, %v2318_v15  ;;  %v2329_v53 = vadd.f32 %v2322_v54, %v2319_v27 }
 0x130   : > { %v2330_v9 = vadd.f32 %v2322_v54, %v2320_v40  ;;  %v2288_v41 = vmul.f32 %v2286_v21, %v3689_v29  ;;  %v2289_v63 = vmul.f32 %v2286_v21, %v3691_v30  ;;  %v2290_v0 = vmul.f32 %v2286_v21, %v3693_v31 }
 0x131   : > { %2268 = vadd.xlane.f32.xlu0 %v2267_v47  ;;  %v2335_v55 = vmax.f32 %v2327_v45, 0.0  ;;  %v2336_v22 = vmax.f32 %v2328_v57, 0.0  ;;  %v2337_v60 = vmax.f32 %v2329_v53, 0.0  ;;  %v2295_v1 = vadd.f32 %v2287_v2, %v2277_v39 }
 0x132   : > { %v2338_v58 = vmax.f32 %v2330_v9, 0.0  ;;  %v2296_v44 = vadd.f32 %v2288_v41, %v2278_v48  ;;  %v2297_v62 = vadd.f32 %v2289_v63, %v2279_v50  ;;  %v2298_v56 = vadd.f32 %v2290_v0, %v2280_v38 }
 0x133   : > { %v2344_v61 = vadd.f32 %v2336_v22, %v2335_v55  ;;  %v2305_v20 = vmul.f32 %v2304_v52, %v3696_v33  ;;  %v2306_v7 = vmul.f32 %v2304_v52, %v3698_v34  ;;  %v2307_v46 = vmul.f32 %v2304_v52, %v3700_v35 }
 0x134   : > { %v2308_v21 = vmul.f32 %v2304_v52, %v3707_v43  ;;  %v2350_v49 = vstv %s4125_s12  ;;  %v2360_v51 = vstv %s4131_s1  ;;  %v4148_v36 = vstv %s4133_s23  ;;  %s4289_s12 = sld [smem:[#allocation6 + $0x5d]]  ;;  %s4295_s1 = sld [smem:[#allocation6 + $0x5e]] }
 0x135   : > { %v2345_v8 = vadd.f32 %v2344_v61, %v2337_v60  ;;  %v2313_v37 = vadd.f32 %v2305_v20, %v2295_v1  ;;  %v2314_v14 = vadd.f32 %v2306_v7, %v2296_v44  ;;  %v2315_v42 = vadd.f32 %v2307_v46, %v2297_v62  ;;  %s4297_s23 = sld [smem:[#allocation6 + $0x5f]] }
 0x136   : > { %v2316_v39 = vadd.f32 %v2308_v21, %v2298_v56  ;;  %v2355_v48 = vmul.f32 %v2350_v49, %v3644_v3  ;;  %v2356_v59 = vmul.f32 %v2350_v49, %v3646_v4  ;;  %v2357_v32 = vmul.f32 %v2350_v49, %v3648_v5 }
 0x137   : > { %v2346_v15 = vadd.f32 %v2345_v8, %v2338_v58  ;;  %v2323_v27 = vadd.f32 %v2322_v54, %v2313_v37  ;;  %v2324_v52 = vadd.f32 %v2322_v54, %v2314_v14  ;;  %v2325_v40 = vadd.f32 %v2322_v54, %v2315_v42 }
 0x138   : > { %v2326_v50 = vadd.f32 %v2322_v54, %v2316_v39  ;;  %v2358_v38 = vmul.f32 %v2350_v49, %v3650_v6  ;;  %v2365_v2 = vmul.f32 %v2360_v51, %v3657_v10  ;;  %v2366_v47 = vmul.f32 %v2360_v51, %v3659_v11 }
 0x139   : > { %2347 = vadd.xlane.f32.xlu1 %v2346_v15  ;;  %v2331_v45 = vmax.f32 %v2323_v27, 0.0  ;;  %v2332_v57 = vmax.f32 %v2324_v52, 0.0  ;;  %v2333_v53 = vmax.f32 %v2325_v40, 0.0  ;;  %v2367_v9 = vmul.f32 %v2360_v51, %v3661_v12 }
 0x13a   : > { %v2334_v41 = vmax.f32 %v2326_v50, 0.0  ;;  %v2368_v63 = vmul.f32 %v2360_v51, %v3663_v13  ;;  %v2373_v0 = vadd.f32 %v2365_v2, %v2355_v48  ;;  %v2374_v55 = vadd.f32 %v2366_v47, %v2356_v59 }
 0x13b   : > { %v2339_v22 = vadd.f32 %v2332_v57, %v2331_v45  ;;  %v2375_v54 = vadd.f32 %v2367_v9, %v2357_v32  ;;  %v2383_v60 = vmul.f32 %v4148_v36, %v3667_v16  ;;  %v2384_v1 = vmul.f32 %v4148_v36, %v3669_v17 }
 0x13c   : > { %v2376_v58 = vadd.f32 %v2368_v63, %v2358_v38  ;;  %v2385_v44 = vmul.f32 %v4148_v36, %v3671_v18  ;;  %v2386_v62 = vmul.f32 %v4148_v36, %v3673_v19  ;;  %v2396_v56 = vstv %s4150_s26  ;;  %s4314_s26 = sld [smem:[#allocation7 + $0x1f]] }
 0x13d   : > { %v2340_v61 = vadd.f32 %v2339_v22, %v2333_v53  ;;  %v2391_v20 = vadd.f32 %v2383_v60, %v2373_v0  ;;  %v2392_v7 = vadd.f32 %v2384_v1, %v2374_v55  ;;  %v2351_v46 = vmul.f32 %v2350_v49, %v3678_v23 }
 0x13e   : > { %v2393_v21 = vadd.f32 %v2385_v44, %v2375_v54  ;;  %v2394_v8 = vadd.f32 %v2386_v62, %v2376_v58  ;;  %v2352_v37 = vmul.f32 %v2350_v49, %v3680_v24  ;;  %v2353_v14 = vmul.f32 %v2350_v49, %v3682_v25 }
 0x13f   : > { %v2341_v42 = vadd.f32 %v2340_v61, %v2334_v41  ;;  %v2401_v39 = vadd.f32 %v2396_v56, %v2391_v20  ;;  %v2402_v48 = vadd.f32 %v2396_v56, %v2392_v7  ;;  %v2354_v59 = vmul.f32 %v2350_v49, %v3684_v26 }
 0x140   : > { %v2403_v32 = vadd.f32 %v2396_v56, %v2393_v21  ;;  %v2404_v15 = vadd.f32 %v2396_v56, %v2394_v8  ;;  %v2361_v27 = vmul.f32 %v2360_v51, %v3687_v28  ;;  %v2362_v52 = vmul.f32 %v2360_v51, %v3689_v29 }
 0x141   : > { %2342 = vadd.xlane.f32.xlu0 %v2341_v42  ;;  %v2409_v40 = vmax.f32 %v2401_v39, 0.0  ;;  %v2410_v50 = vmax.f32 %v2402_v48, 0.0  ;;  %v2363_v38 = vmul.f32 %v2360_v51, %v3691_v30  ;;  %v2364_v2 = vmul.f32 %v2360_v51, %v3693_v31 }
 0x142   : > { %v2411_v47 = vmax.f32 %v2403_v32, 0.0  ;;  %v2412_v45 = vmax.f32 %v2404_v15, 0.0  ;;  %v2369_v57 = vadd.f32 %v2361_v27, %v2351_v46  ;;  %v2370_v49 = vadd.f32 %v2362_v52, %v2352_v37 }
 0x143   : > { %v2418_v53 = vadd.f32 %v2410_v50, %v2409_v40  ;;  %v2371_v9 = vadd.f32 %v2363_v38, %v2353_v14  ;;  %v2372_v41 = vadd.f32 %v2364_v2, %v2354_v59  ;;  %v2379_v63 = vmul.f32 %v4148_v36, %v3696_v33 }
 0x144   : > { %v2380_v0 = vmul.f32 %v4148_v36, %v3698_v34  ;;  %v2381_v55 = vmul.f32 %v4148_v36, %v3700_v35  ;;  %v2382_v51 = vmul.f32 %v4148_v36, %v3707_v43  ;;  %v2424_v22 = vstv %s4169_s28  ;;  %s4333_s28 = sld [smem:[#allocation6]] }
 0x145   : > { %v2419_v54 = vadd.f32 %v2418_v53, %v2411_v47  ;;  %v2387_v60 = vadd.f32 %v2379_v63, %v2369_v57  ;;  %v2429_v1 = vmul.f32 %v2424_v22, %v3644_v3  ;;  %v2430_v58 = vmul.f32 %v2424_v22, %v3646_v4 }
 0x146   : > { %v2388_v44 = vadd.f32 %v2380_v0, %v2370_v49  ;;  %v2389_v62 = vadd.f32 %v2381_v55, %v2371_v9  ;;  %v2390_v61 = vadd.f32 %v2382_v51, %v2372_v41  ;;  %v2431_v20 = vmul.f32 %v2424_v22, %v3648_v5 }
 0x147   : > { %v2420_v7 = vadd.f32 %v2419_v54, %v2412_v45  ;;  %v2397_v46 = vadd.f32 %v2396_v56, %v2387_v60  ;;  %v2432_v21 = vmul.f32 %v2424_v22, %v3650_v6  ;;  %v2434_v8 = vstv %s4175_s29  ;;  %s4339_s29 = sld [smem:[#allocation6 + $0x1]] }
 0x148   : > { %v2398_v36 = vadd.f32 %v2396_v56, %v2388_v44  ;;  %v2399_v37 = vadd.f32 %v2396_v56, %v2389_v62  ;;  %v2400_v14 = vadd.f32 %v2396_v56, %v2390_v61  ;;  %v2439_v42 = vmul.f32 %v2434_v8, %v3657_v10 }
 0x149   : > { %2421 = vadd.xlane.f32.xlu1 %v2420_v7  ;;  %v2405_v39 = vmax.f32 %v2397_v46, 0.0  ;;  %v2440_v48 = vmul.f32 %v2434_v8, %v3659_v11  ;;  %v2441_v59 = vmul.f32 %v2434_v8, %v3661_v12  ;;  %v2442_v32 = vmul.f32 %v2434_v8, %v3663_v13 }
 0x14a   : > { %v2406_v15 = vmax.f32 %v2398_v36, 0.0  ;;  %v2407_v27 = vmax.f32 %v2399_v37, 0.0  ;;  %v2408_v52 = vmax.f32 %v2400_v14, 0.0  ;;  %v2447_v40 = vadd.f32 %v2439_v42, %v2429_v1 }
 0x14b   : > { %v2448_v50 = vadd.f32 %v2440_v48, %v2430_v58  ;;  %v2449_v38 = vadd.f32 %v2441_v59, %v2431_v20  ;;  %v2450_v2 = vadd.f32 %v2442_v32, %v2432_v21  ;;  %v2452_v47 = vstv %s4183_s7  ;;  %s4347_s7 = sld [smem:[#allocation6 + $0x2]] }
 0x14c   : > { %v2413_v56 = vadd.f32 %v2406_v15, %v2405_v39  ;;  %v2457_v45 = vmul.f32 %v2452_v47, %v3667_v16  ;;  %v2458_v57 = vmul.f32 %v2452_v47, %v3669_v17  ;;  %v2459_v49 = vmul.f32 %v2452_v47, %v3671_v18 }
 0x14d   : > { %v2460_v53 = vmul.f32 %v2452_v47, %v3673_v19  ;;  %v2470_v9 = vstv %s4194_s9  ;;  %v2425_v41 = vmul.f32 %v2424_v22, %v3678_v23  ;;  %v2426_v63 = vmul.f32 %v2424_v22, %v3680_v24  ;;  %s4358_s9 = sld [smem:[#allocation6 + $0x3]] }
 0x14e   : > { %v2414_v0 = vadd.f32 %v2413_v56, %v2407_v27  ;;  %v2465_v55 = vadd.f32 %v2457_v45, %v2447_v40  ;;  %v2466_v51 = vadd.f32 %v2458_v57, %v2448_v50  ;;  %v2467_v54 = vadd.f32 %v2459_v49, %v2449_v38 }
 0x14f   : > { %v2468_v60 = vadd.f32 %v2460_v53, %v2450_v2  ;;  %v2427_v1 = vmul.f32 %v2424_v22, %v3682_v25  ;;  %v2428_v58 = vmul.f32 %v2424_v22, %v3684_v26  ;;  %v2435_v44 = vmul.f32 %v2434_v8, %v3687_v28 }
 0x150   : > { %v2415_v62 = vadd.f32 %v2414_v0, %v2408_v52  ;;  %v2475_v61 = vadd.f32 %v2470_v9, %v2465_v55  ;;  %v2476_v20 = vadd.f32 %v2470_v9, %v2466_v51  ;;  %v2477_v7 = vadd.f32 %v2470_v9, %v2467_v54 }
 0x151   : > { %v2478_v46 = vadd.f32 %v2470_v9, %v2468_v60  ;;  %v2436_v21 = vmul.f32 %v2434_v8, %v3689_v29  ;;  %v2437_v36 = vmul.f32 %v2434_v8, %v3691_v30  ;;  %v2438_v37 = vmul.f32 %v2434_v8, %v3693_v31 }
 0x152   : > { %2416 = vadd.xlane.f32.xlu0 %v2415_v62  ;;  %v2483_v14 = vmax.f32 %v2475_v61, 0.0  ;;  %v2484_v42 = vmax.f32 %v2476_v20, 0.0  ;;  %v2485_v22 = vmax.f32 %v2477_v7, 0.0  ;;  %v2443_v39 = vadd.f32 %v2435_v44, %v2425_v41 }
 0x153   : > { %v2486_v48 = vmax.f32 %v2478_v46, 0.0  ;;  %v2444_v59 = vadd.f32 %v2436_v21, %v2426_v63  ;;  %v2445_v32 = vadd.f32 %v2437_v36, %v2427_v1  ;;  %v2446_v15 = vadd.f32 %v2438_v37, %v2428_v58 }
 0x154   : > { %v2492_v27 = vadd.f32 %v2484_v42, %v2483_v14  ;;  %v2453_v52 = vmul.f32 %v2452_v47, %v3696_v33  ;;  %v2454_v40 = vmul.f32 %v2452_v47, %v3698_v34  ;;  %v2455_v50 = vmul.f32 %v2452_v47, %v3700_v35 }
 0x155   : > { %v2456_v8 = vmul.f32 %v2452_v47, %v3707_v43  ;;  %v2498_v38 = vstv %s4207_s17  ;;  %v2508_v2 = vstv %s4213_s13  ;;  %v4230_v56 = vstv %s4215_s25  ;;  %s4364_s17 = sld [smem:[#allocation7]]  ;;  %s4366_s13 = sld [smem:[#allocation6 + $0x4]] }
 0x156   : > { %v2493_v45 = vadd.f32 %v2492_v27, %v2485_v22  ;;  %v2461_v57 = vadd.f32 %v2453_v52, %v2443_v39  ;;  %v2462_v49 = vadd.f32 %v2454_v40, %v2444_v59  ;;  %v2463_v53 = vadd.f32 %v2455_v50, %v2445_v32  ;;  %s4392_s25 = sld [smem:[#allocation6 + $0x5]] }
 0x157   : > { %v2464_v41 = vadd.f32 %v2456_v8, %v2446_v15  ;;  %v2503_v63 = vmul.f32 %v2498_v38, %v3644_v3  ;;  %v2504_v0 = vmul.f32 %v2498_v38, %v3646_v4  ;;  %v2505_v55 = vmul.f32 %v2498_v38, %v3648_v5 }
 0x158   : > { %v2494_v51 = vadd.f32 %v2493_v45, %v2486_v48  ;;  %v2471_v54 = vadd.f32 %v2470_v9, %v2461_v57  ;;  %v2472_v47 = vadd.f32 %v2470_v9, %v2462_v49  ;;  %v2473_v60 = vadd.f32 %v2470_v9, %v2463_v53 }
 0x159   : > { %v2474_v1 = vadd.f32 %v2470_v9, %v2464_v41  ;;  %v2506_v58 = vmul.f32 %v2498_v38, %v3650_v6  ;;  %v2513_v44 = vmul.f32 %v2508_v2, %v3657_v10  ;;  %v2514_v62 = vmul.f32 %v2508_v2, %v3659_v11 }
 0x15a   : > { %2495 = vadd.xlane.f32.xlu1 %v2494_v51  ;;  %v2479_v61 = vmax.f32 %v2471_v54, 0.0  ;;  %v2480_v20 = vmax.f32 %v2472_v47, 0.0  ;;  %v2481_v7 = vmax.f32 %v2473_v60, 0.0  ;;  %v2515_v46 = vmul.f32 %v2508_v2, %v3661_v12 }
 0x15b   : > { %v2482_v21 = vmax.f32 %v2474_v1, 0.0  ;;  %v2516_v36 = vmul.f32 %v2508_v2, %v3663_v13  ;;  %v2521_v37 = vadd.f32 %v2513_v44, %v2503_v63  ;;  %v2522_v14 = vadd.f32 %v2514_v62, %v2504_v0 }
 0x15c   : > { %v2487_v42 = vadd.f32 %v2480_v20, %v2479_v61  ;;  %v2523_v9 = vadd.f32 %v2515_v46, %v2505_v55  ;;  %v2531_v22 = vmul.f32 %v4230_v56, %v3667_v16  ;;  %v2532_v39 = vmul.f32 %v4230_v56, %v3669_v17 }
 0x15d   : > { %v2524_v48 = vadd.f32 %v2516_v36, %v2506_v58  ;;  %v2533_v59 = vmul.f32 %v4230_v56, %v3671_v18  ;;  %v2534_v32 = vmul.f32 %v4230_v56, %v3673_v19  ;;  %v2544_v15 = vstv %s4232_s8  ;;  %s4394_s8 = sld [smem:[#allocation7 + $0x1]] }
 0x15e   : > { %v2488_v27 = vadd.f32 %v2487_v42, %v2481_v7  ;;  %v2539_v52 = vadd.f32 %v2531_v22, %v2521_v37  ;;  %v2540_v40 = vadd.f32 %v2532_v39, %v2522_v14  ;;  %v2499_v50 = vmul.f32 %v2498_v38, %v3678_v23 }
 0x15f   : > { %v2541_v8 = vadd.f32 %v2533_v59, %v2523_v9  ;;  %v2542_v45 = vadd.f32 %v2534_v32, %v2524_v48  ;;  %v2500_v57 = vmul.f32 %v2498_v38, %v3680_v24  ;;  %v2501_v49 = vmul.f32 %v2498_v38, %v3682_v25 }
 0x160   : > { %v2489_v53 = vadd.f32 %v2488_v27, %v2482_v21  ;;  %v2549_v41 = vadd.f32 %v2544_v15, %v2539_v52  ;;  %v2550_v63 = vadd.f32 %v2544_v15, %v2540_v40  ;;  %v2502_v0 = vmul.f32 %v2498_v38, %v3684_v26 }
 0x161   : > { %v2551_v55 = vadd.f32 %v2544_v15, %v2541_v8  ;;  %v2552_v51 = vadd.f32 %v2544_v15, %v2542_v45  ;;  %v2509_v54 = vmul.f32 %v2508_v2, %v3687_v28  ;;  %v2510_v47 = vmul.f32 %v2508_v2, %v3689_v29 }
 0x162   : > { %2490 = vadd.xlane.f32.xlu0 %v2489_v53  ;;  %v2557_v60 = vmax.f32 %v2549_v41, 0.0  ;;  %v2558_v1 = vmax.f32 %v2550_v63, 0.0  ;;  %v2511_v58 = vmul.f32 %v2508_v2, %v3691_v30  ;;  %v2512_v44 = vmul.f32 %v2508_v2, %v3693_v31 }
 0x163   : > { %v2559_v62 = vmax.f32 %v2551_v55, 0.0  ;;  %v2560_v61 = vmax.f32 %v2552_v51, 0.0  ;;  %v2517_v20 = vadd.f32 %v2509_v54, %v2499_v50  ;;  %v2518_v38 = vadd.f32 %v2510_v47, %v2500_v57 }
 0x164   : > { %v2566_v7 = vadd.f32 %v2558_v1, %v2557_v60  ;;  %v2519_v46 = vadd.f32 %v2511_v58, %v2501_v49  ;;  %v2520_v21 = vadd.f32 %v2512_v44, %v2502_v0  ;;  %v2527_v36 = vmul.f32 %v4230_v56, %v3696_v33 }
 0x165   : > { %v2528_v37 = vmul.f32 %v4230_v56, %v3698_v34  ;;  %v2529_v14 = vmul.f32 %v4230_v56, %v3700_v35  ;;  %v2530_v2 = vmul.f32 %v4230_v56, %v3707_v43  ;;  %v2572_v42 = vstv %s4251_s11  ;;  %s4469_s11 = sld [smem:[#allocation6 + $0x6]] }
 0x166   : > { %v2567_v9 = vadd.f32 %v2566_v7, %v2559_v62  ;;  %v2535_v22 = vadd.f32 %v2527_v36, %v2517_v20  ;;  %v2577_v39 = vmul.f32 %v2572_v42, %v3644_v3  ;;  %v2578_v48 = vmul.f32 %v2572_v42, %v3646_v4 }
 0x167   : > { %v2536_v59 = vadd.f32 %v2528_v37, %v2518_v38  ;;  %v2537_v32 = vadd.f32 %v2529_v14, %v2519_v46  ;;  %v2538_v27 = vadd.f32 %v2530_v2, %v2520_v21  ;;  %v2579_v52 = vmul.f32 %v2572_v42, %v3648_v5 }
 0x168   : > { %v2568_v40 = vadd.f32 %v2567_v9, %v2560_v61  ;;  %v2545_v50 = vadd.f32 %v2544_v15, %v2535_v22  ;;  %v2580_v8 = vmul.f32 %v2572_v42, %v3650_v6  ;;  %v2582_v45 = vstv %s4257_s14  ;;  %s4484_s14 = sld [smem:[#allocation6 + $0x7]] }
 0x169   : > { %v2546_v56 = vadd.f32 %v2544_v15, %v2536_v59  ;;  %v2547_v57 = vadd.f32 %v2544_v15, %v2537_v32  ;;  %v2548_v49 = vadd.f32 %v2544_v15, %v2538_v27  ;;  %v2587_v53 = vmul.f32 %v2582_v45, %v3657_v10 }
 0x16a   : > { %2569 = vadd.xlane.f32.xlu1 %v2568_v40  ;;  %v2553_v41 = vmax.f32 %v2545_v50, 0.0  ;;  %v2588_v63 = vmul.f32 %v2582_v45, %v3659_v11  ;;  %v2589_v0 = vmul.f32 %v2582_v45, %v3661_v12  ;;  %v2590_v55 = vmul.f32 %v2582_v45, %v3663_v13 }
 0x16b   : > { %v2554_v51 = vmax.f32 %v2546_v56, 0.0  ;;  %v2555_v54 = vmax.f32 %v2547_v57, 0.0  ;;  %v2556_v47 = vmax.f32 %v2548_v49, 0.0  ;;  %v2595_v60 = vadd.f32 %v2587_v53, %v2577_v39 }
 0x16c   : > { %v2596_v1 = vadd.f32 %v2588_v63, %v2578_v48  ;;  %v2597_v58 = vadd.f32 %v2589_v0, %v2579_v52  ;;  %v2598_v44 = vadd.f32 %v2590_v55, %v2580_v8  ;;  %v2600_v62 = vstv %s4265_s16  ;;  %s4497_s16 = sld [smem:[#allocation6 + $0x8]] }
 0x16d   : > { %v2561_v15 = vadd.f32 %v2554_v51, %v2553_v41  ;;  %v2605_v61 = vmul.f32 %v2600_v62, %v3667_v16  ;;  %v2606_v20 = vmul.f32 %v2600_v62, %v3669_v17  ;;  %v2607_v38 = vmul.f32 %v2600_v62, %v3671_v18 }
 0x16e   : > { %v2608_v7 = vmul.f32 %v2600_v62, %v3673_v19  ;;  %v2618_v46 = vstv %s4276_s10  ;;  %v2573_v21 = vmul.f32 %v2572_v42, %v3678_v23  ;;  %v2574_v36 = vmul.f32 %v2572_v42, %v3680_v24  ;;  %s4506_s10 = sld [smem:[#allocation7 + $0x2]] }
 0x16f   : > { %v2562_v37 = vadd.f32 %v2561_v15, %v2555_v54  ;;  %v2613_v14 = vadd.f32 %v2605_v61, %v2595_v60  ;;  %v2614_v2 = vadd.f32 %v2606_v20, %v2596_v1  ;;  %v2615_v9 = vadd.f32 %v2607_v38, %v2597_v58 }
 0x170   : > { %v2616_v22 = vadd.f32 %v2608_v7, %v2598_v44  ;;  %v2575_v39 = vmul.f32 %v2572_v42, %v3682_v25  ;;  %v2576_v48 = vmul.f32 %v2572_v42, %v3684_v26  ;;  %v2583_v59 = vmul.f32 %v2582_v45, %v3687_v28 }
 0x171   : > { %v2563_v32 = vadd.f32 %v2562_v37, %v2556_v47  ;;  %v2623_v27 = vadd.f32 %v2618_v46, %v2613_v14  ;;  %v2624_v52 = vadd.f32 %v2618_v46, %v2614_v2  ;;  %v2625_v40 = vadd.f32 %v2618_v46, %v2615_v9 }
 0x172   : > { %v2626_v50 = vadd.f32 %v2618_v46, %v2616_v22  ;;  %v2584_v8 = vmul.f32 %v2582_v45, %v3689_v29  ;;  %v2585_v56 = vmul.f32 %v2582_v45, %v3691_v30  ;;  %v2586_v57 = vmul.f32 %v2582_v45, %v3693_v31 }
 0x173   : > { %2564 = vadd.xlane.f32.xlu0 %v2563_v32  ;;  %v2631_v49 = vmax.f32 %v2623_v27, 0.0  ;;  %v2632_v53 = vmax.f32 %v2624_v52, 0.0  ;;  %v2633_v42 = vmax.f32 %v2625_v40, 0.0  ;;  %v2591_v41 = vadd.f32 %v2583_v59, %v2573_v21 }
 0x174   : > { %v2634_v63 = vmax.f32 %v2626_v50, 0.0  ;;  %v2592_v0 = vadd.f32 %v2584_v8, %v2574_v36  ;;  %v2593_v55 = vadd.f32 %v2585_v56, %v2575_v39  ;;  %v2594_v51 = vadd.f32 %v2586_v57, %v2576_v48 }
 0x175   : > { %v2640_v54 = vadd.f32 %v2632_v53, %v2631_v49  ;;  %v2601_v47 = vmul.f32 %v2600_v62, %v3696_v33  ;;  %v2602_v60 = vmul.f32 %v2600_v62, %v3698_v34  ;;  %v2603_v1 = vmul.f32 %v2600_v62, %v3700_v35 }
 0x176   : > { %v2604_v45 = vmul.f32 %v2600_v62, %v3707_v43  ;;  %v2646_v58 = vstv %s4289_s12  ;;  %v2656_v44 = vstv %s4295_s1  ;;  %v4312_v15 = vstv %s4297_s23  ;;  %s4523_s12 = sld [smem:[#allocation6 + $0x9]]  ;;  %s4528_s1 = sld [smem:[#allocation6 + $0xa]] }
 0x177   : > { %v2641_v61 = vadd.f32 %v2640_v54, %v2633_v42  ;;  %v2609_v20 = vadd.f32 %v2601_v47, %v2591_v41  ;;  %v2610_v38 = vadd.f32 %v2602_v60, %v2592_v0  ;;  %v2611_v7 = vadd.f32 %v2603_v1, %v2593_v55  ;;  %s4530_s23 = sld [smem:[#allocation6 + $0xb]] }
 0x178   : > { %v2612_v21 = vadd.f32 %v2604_v45, %v2594_v51  ;;  %v2651_v36 = vmul.f32 %v2646_v58, %v3644_v3  ;;  %v2652_v37 = vmul.f32 %v2646_v58, %v3646_v4  ;;  %v2653_v14 = vmul.f32 %v2646_v58, %v3648_v5 }
 0x179   : > { %v2642_v2 = vadd.f32 %v2641_v61, %v2634_v63  ;;  %v2619_v9 = vadd.f32 %v2618_v46, %v2609_v20  ;;  %v2620_v62 = vadd.f32 %v2618_v46, %v2610_v38  ;;  %v2621_v22 = vadd.f32 %v2618_v46, %v2611_v7 }
 0x17a   : > { %v2622_v39 = vadd.f32 %v2618_v46, %v2612_v21  ;;  %v2654_v48 = vmul.f32 %v2646_v58, %v3650_v6  ;;  %v2661_v59 = vmul.f32 %v2656_v44, %v3657_v10  ;;  %v2662_v32 = vmul.f32 %v2656_v44, %v3659_v11 }
 0x17b   : > { %2643 = vadd.xlane.f32.xlu1 %v2642_v2  ;;  %v2627_v27 = vmax.f32 %v2619_v9, 0.0  ;;  %v2628_v52 = vmax.f32 %v2620_v62, 0.0  ;;  %v2629_v40 = vmax.f32 %v2621_v22, 0.0  ;;  %v2663_v50 = vmul.f32 %v2656_v44, %v3661_v12 }
 0x17c   : > { %v2630_v8 = vmax.f32 %v2622_v39, 0.0  ;;  %v2664_v56 = vmul.f32 %v2656_v44, %v3663_v13  ;;  %v2669_v57 = vadd.f32 %v2661_v59, %v2651_v36  ;;  %v2670_v49 = vadd.f32 %v2662_v32, %v2652_v37 }
 0x17d   : > { %v2635_v53 = vadd.f32 %v2628_v52, %v2627_v27  ;;  %v2671_v46 = vadd.f32 %v2663_v50, %v2653_v14  ;;  %v2679_v42 = vmul.f32 %v4312_v15, %v3667_v16  ;;  %v2680_v41 = vmul.f32 %v4312_v15, %v3669_v17 }
 0x17e   : > { %v2672_v63 = vadd.f32 %v2664_v56, %v2654_v48  ;;  %v2681_v0 = vmul.f32 %v4312_v15, %v3671_v18  ;;  %v2682_v55 = vmul.f32 %v4312_v15, %v3673_v19  ;;  %v2692_v51 = vstv %s4314_s26  ;;  %s4548_s26 = sld [smem:[#allocation7 + $0x3]] }
 0x17f   : > { %v2636_v54 = vadd.f32 %v2635_v53, %v2629_v40  ;;  %v2687_v47 = vadd.f32 %v2679_v42, %v2669_v57  ;;  %v2688_v60 = vadd.f32 %v2680_v41, %v2670_v49  ;;  %v2647_v1 = vmul.f32 %v2646_v58, %v3678_v23 }
 0x180   : > { %v2689_v45 = vadd.f32 %v2681_v0, %v2671_v46  ;;  %v2690_v61 = vadd.f32 %v2682_v55, %v2672_v63  ;;  %v2648_v20 = vmul.f32 %v2646_v58, %v3680_v24  ;;  %v2649_v38 = vmul.f32 %v2646_v58, %v3682_v25 }
 0x181   : > { %v2637_v7 = vadd.f32 %v2636_v54, %v2630_v8  ;;  %v2697_v21 = vadd.f32 %v2692_v51, %v2687_v47  ;;  %v2698_v36 = vadd.f32 %v2692_v51, %v2688_v60  ;;  %v2650_v37 = vmul.f32 %v2646_v58, %v3684_v26 }
 0x182   : > { %v2699_v14 = vadd.f32 %v2692_v51, %v2689_v45  ;;  %v2700_v2 = vadd.f32 %v2692_v51, %v2690_v61  ;;  %v2657_v9 = vmul.f32 %v2656_v44, %v3687_v28  ;;  %v2658_v62 = vmul.f32 %v2656_v44, %v3689_v29 }
 0x183   : > { %2638 = vadd.xlane.f32.xlu0 %v2637_v7  ;;  %v2705_v22 = vmax.f32 %v2697_v21, 0.0  ;;  %v2706_v39 = vmax.f32 %v2698_v36, 0.0  ;;  %v2659_v48 = vmul.f32 %v2656_v44, %v3691_v30  ;;  %v2660_v59 = vmul.f32 %v2656_v44, %v3693_v31 }
 0x184   : > { %v2707_v32 = vmax.f32 %v2699_v14, 0.0  ;;  %v2708_v27 = vmax.f32 %v2700_v2, 0.0  ;;  %v2665_v52 = vadd.f32 %v2657_v9, %v2647_v1  ;;  %v2666_v58 = vadd.f32 %v2658_v62, %v2648_v20 }
 0x185   : > { %v2714_v40 = vadd.f32 %v2706_v39, %v2705_v22  ;;  %v2667_v50 = vadd.f32 %v2659_v48, %v2649_v38  ;;  %v2668_v8 = vadd.f32 %v2660_v59, %v2650_v37  ;;  %v2675_v56 = vmul.f32 %v4312_v15, %v3696_v33 }
 0x186   : > { %v2676_v57 = vmul.f32 %v4312_v15, %v3698_v34  ;;  %v2677_v49 = vmul.f32 %v4312_v15, %v3700_v35  ;;  %v2678_v44 = vmul.f32 %v4312_v15, %v3707_v43  ;;  %v4356_v53 = vstv %s4333_s28  ;;  %s4567_s28 = sld [smem:[#allocation6 + $0xc]] }
 0x187   : > { %v2715_v46 = vadd.f32 %v2714_v40, %v2707_v32  ;;  %v2683_v42 = vadd.f32 %v2675_v56, %v2665_v52  ;;  %v353_v41 = vmul.f32 %v4356_v53, %v3678_v23  ;;  %v354_v63 = vmul.f32 %v4356_v53, %v3680_v24 }
 0x188   : > { %v2684_v0 = vadd.f32 %v2676_v57, %v2666_v58  ;;  %v2685_v55 = vadd.f32 %v2677_v49, %v2667_v50  ;;  %v2686_v15 = vadd.f32 %v2678_v44, %v2668_v8  ;;  %v355_v54 = vmul.f32 %v4356_v53, %v3682_v25 }
 0x189   : > { %v2716_v47 = vadd.f32 %v2715_v46, %v2708_v27  ;;  %v2693_v60 = vadd.f32 %v2692_v51, %v2683_v42  ;;  %v356_v1 = vmul.f32 %v4356_v53, %v3684_v26  ;;  %v4373_v45 = vstv %s4339_s29  ;;  %s4573_s29 = sld [smem:[#allocation6 + $0xd]] }
 0x18a   : > { %v2694_v61 = vadd.f32 %v2692_v51, %v2684_v0  ;;  %v2695_v20 = vadd.f32 %v2692_v51, %v2685_v55  ;;  %v2696_v38 = vadd.f32 %v2692_v51, %v2686_v15  ;;  %v363_v7 = vmul.f32 %v4373_v45, %v3687_v28 }
 0x18b   : > { %2717 = vadd.xlane.f32.xlu1 %v2716_v47  ;;  %v2701_v21 = vmax.f32 %v2693_v60, 0.0  ;;  %v364_v36 = vmul.f32 %v4373_v45, %v3689_v29  ;;  %v365_v37 = vmul.f32 %v4373_v45, %v3691_v30  ;;  %v366_v14 = vmul.f32 %v4373_v45, %v3693_v31 }
 0x18c   : > { %v2702_v2 = vmax.f32 %v2694_v61, 0.0  ;;  %v2703_v9 = vmax.f32 %v2695_v20, 0.0  ;;  %v2704_v51 = vmax.f32 %v2696_v38, 0.0  ;;  %v371_v62 = vadd.f32 %v363_v7, %v353_v41 }
 0x18d   : > { %v372_v22 = vadd.f32 %v364_v36, %v354_v63  ;;  %v373_v39 = vadd.f32 %v365_v37, %v355_v54  ;;  %v374_v48 = vadd.f32 %v366_v14, %v356_v1  ;;  %v4384_v59 = vstv %s4347_s7  ;;  %s4581_s7 = sld [smem:[#allocation6 + $0xe]] }
 0x18e   : > { %v2709_v32 = vadd.f32 %v2702_v2, %v2701_v21  ;;  %v381_v27 = vmul.f32 %v4384_v59, %v3696_v33  ;;  %v382_v52 = vmul.f32 %v4384_v59, %v3698_v34  ;;  %v383_v58 = vmul.f32 %v4384_v59, %v3700_v35 }
 0x18f   : > { %v384_v40 = vmul.f32 %v4384_v59, %v3707_v43  ;;  %v4399_v50 = vstv %s4364_s17  ;;  %v4402_v8 = vstv %s4358_s9  ;;  %v4405_v56 = vstv %s4366_s13  ;;  %s4592_s9 = sld [smem:[#allocation7 + $0x4]]  ;;  %s4605_s17 = sld [smem:[#allocation6 + $0xf]] }
 0x190   : > { %v2710_v57 = vadd.f32 %v2709_v32, %v2703_v9  ;;  %v389_v49 = vadd.f32 %v381_v27, %v371_v62  ;;  %v390_v44 = vadd.f32 %v382_v52, %v372_v22  ;;  %v391_v46 = vadd.f32 %v383_v58, %v373_v39  ;;  %s4611_s13 = sld [smem:[#allocation6 + $0x10]] }
 0x191   : > { %v392_v42 = vadd.f32 %v384_v40, %v374_v48  ;;  %v427_v41 = vmul.f32 %v4402_v8, %v3678_v23  ;;  %v428_v63 = vmul.f32 %v4402_v8, %v3680_v24  ;;  %v429_v0 = vmul.f32 %v4402_v8, %v3682_v25 }
 0x192   : > { %v2711_v55 = vadd.f32 %v2710_v57, %v2704_v51  ;;  %v399_v15 = vadd.f32 %v4399_v50, %v389_v49  ;;  %v400_v54 = vadd.f32 %v4399_v50, %v390_v44  ;;  %v401_v47 = vadd.f32 %v4399_v50, %v391_v46 }
 0x193   : > { %v402_v60 = vadd.f32 %v4399_v50, %v392_v42  ;;  %v430_v1 = vmul.f32 %v4402_v8, %v3684_v26  ;;  %v437_v61 = vmul.f32 %v4405_v56, %v3687_v28  ;;  %v438_v20 = vmul.f32 %v4405_v56, %v3689_v29 }
 0x194   : > { %2712 = vadd.xlane.f32.xlu0 %v2711_v55  ;;  %v407_v38 = vmax.f32 %v399_v15, 0.0  ;;  %v408_v7 = vmax.f32 %v400_v54, 0.0  ;;  %v409_v21 = vmax.f32 %v401_v47, 0.0  ;;  %v439_v36 = vmul.f32 %v4405_v56, %v3691_v30 }
 0x195   : > { %v410_v37 = vmax.f32 %v402_v60, 0.0  ;;  %v440_v14 = vmul.f32 %v4405_v56, %v3693_v31  ;;  %v445_v2 = vadd.f32 %v437_v61, %v427_v41  ;;  %v446_v9 = vadd.f32 %v438_v20, %v428_v63 }
 0x196   : > { %v415_v51 = vadd.f32 %v408_v7, %v407_v38  ;;  %v447_v62 = vadd.f32 %v439_v36, %v429_v0  ;;  %v4428_v22 = vstv %s4392_s25  ;;  %v4431_v39 = vstv %s4394_s8  ;;  %s4613_s25 = sld [smem:[#allocation6 + $0x11]]  ;;  %s4630_s8 = sld [smem:[#allocation7 + $0x5]] }
 0x197   : > { %v448_v48 = vadd.f32 %v440_v14, %v430_v1  ;;  %v455_v32 = vmul.f32 %v4428_v22, %v3696_v33  ;;  %v456_v27 = vmul.f32 %v4428_v22, %v3698_v34  ;;  %v457_v52 = vmul.f32 %v4428_v22, %v3700_v35 }
 0x198   : > { %v416_v58 = vadd.f32 %v415_v51, %v409_v21  ;;  %v458_v40 = vmul.f32 %v4428_v22, %v3707_v43  ;;  %v357_v57 = vmul.f32 %v4356_v53, %v3644_v3  ;;  %v358_v49 = vmul.f32 %v4356_v53, %v3646_v4 }
 0x199   : > { %v463_v44 = vadd.f32 %v455_v32, %v445_v2  ;;  %v464_v46 = vadd.f32 %v456_v27, %v446_v9  ;;  %v465_v42 = vadd.f32 %v457_v52, %v447_v62  ;;  %v359_v41 = vmul.f32 %v4356_v53, %v3648_v5 }
 0x19a   : > { %v417_v63 = vadd.f32 %v416_v58, %v410_v37  ;;  %v466_v0 = vadd.f32 %v458_v40, %v448_v48  ;;  %v360_v55 = vmul.f32 %v4356_v53, %v3650_v6  ;;  %v367_v15 = vmul.f32 %v4373_v45, %v3657_v10 }
 0x19b   : > { %v473_v54 = vadd.f32 %v4431_v39, %v463_v44  ;;  %v474_v47 = vadd.f32 %v4431_v39, %v464_v46  ;;  %v475_v60 = vadd.f32 %v4431_v39, %v465_v42  ;;  %v368_v1 = vmul.f32 %v4373_v45, %v3659_v11 }
 0x19c   : > { %418 = vadd.xlane.f32.xlu0 %v417_v63  ;;  %v476_v61 = vadd.f32 %v4431_v39, %v466_v0  ;;  %v369_v20 = vmul.f32 %v4373_v45, %v3661_v12  ;;  %v370_v53 = vmul.f32 %v4373_v45, %v3663_v13  ;;  %v375_v38 = vadd.f32 %v367_v15, %v357_v57 }
 0x19d   : > { %v481_v7 = vmax.f32 %v473_v54, 0.0  ;;  %v482_v21 = vmax.f32 %v474_v47, 0.0  ;;  %v483_v36 = vmax.f32 %v475_v60, 0.0  ;;  %v376_v37 = vadd.f32 %v368_v1, %v358_v49 }
 0x19e   : > { %v484_v14 = vmax.f32 %v476_v61, 0.0  ;;  %v377_v2 = vadd.f32 %v369_v20, %v359_v41  ;;  %v378_v9 = vadd.f32 %v370_v53, %v360_v55  ;;  %v385_v51 = vmul.f32 %v4384_v59, %v3667_v16 }
 0x19f   : > { %v489_v62 = vadd.f32 %v482_v21, %v481_v7  ;;  %v386_v48 = vmul.f32 %v4384_v59, %v3669_v17  ;;  %v387_v32 = vmul.f32 %v4384_v59, %v3671_v18  ;;  %v388_v45 = vmul.f32 %v4384_v59, %v3673_v19 }
 0x1a0   : > { %v393_v27 = vadd.f32 %v385_v51, %v375_v38  ;;  %v431_v52 = vmul.f32 %v4402_v8, %v3644_v3  ;;  %v432_v58 = vmul.f32 %v4402_v8, %v3646_v4  ;;  %v433_v40 = vmul.f32 %v4402_v8, %v3648_v5 }
 0x1a1   : > { %v490_v57 = vadd.f32 %v489_v62, %v483_v36  ;;  %v394_v49 = vadd.f32 %v386_v48, %v376_v37  ;;  %v395_v44 = vadd.f32 %v387_v32, %v377_v2  ;;  %v396_v46 = vadd.f32 %v388_v45, %v378_v9 }
 0x1a2   : > { %v403_v42 = vadd.f32 %v4399_v50, %v393_v27  ;;  %v434_v59 = vmul.f32 %v4402_v8, %v3650_v6  ;;  %v441_v41 = vmul.f32 %v4405_v56, %v3657_v10  ;;  %v442_v63 = vmul.f32 %v4405_v56, %v3659_v11 }
 0x1a3   : > { %v491_v0 = vadd.f32 %v490_v57, %v484_v14  ;;  %v404_v55 = vadd.f32 %v4399_v50, %v394_v49  ;;  %v405_v15 = vadd.f32 %v4399_v50, %v395_v44  ;;  %v406_v54 = vadd.f32 %v4399_v50, %v396_v46 }
 0x1a4   : > { %v411_v47 = vmax.f32 %v403_v42, 0.0  ;;  %v443_v60 = vmul.f32 %v4405_v56, %v3661_v12  ;;  %v444_v8 = vmul.f32 %v4405_v56, %v3663_v13  ;;  %v449_v1 = vadd.f32 %v441_v41, %v431_v52 }
 0x1a5   : > { %492 = vadd.xlane.f32.xlu1 %v491_v0  ;;  %v412_v61 = vmax.f32 %v404_v55, 0.0  ;;  %v413_v20 = vmax.f32 %v405_v15, 0.0  ;;  %v414_v53 = vmax.f32 %v406_v54, 0.0  ;;  %v450_v38 = vadd.f32 %v442_v63, %v432_v58 }
 0x1a6   : > { %v451_v7 = vadd.f32 %v443_v60, %v433_v40  ;;  %v452_v21 = vadd.f32 %v444_v8, %v434_v59  ;;  %v459_v36 = vmul.f32 %v4428_v22, %v3667_v16  ;;  %v460_v50 = vmul.f32 %v4428_v22, %v3669_v17 }
 0x1a7   : > { %v420_v37 = vadd.f32 %v412_v61, %v411_v47  ;;  %v461_v56 = vmul.f32 %v4428_v22, %v3671_v18  ;;  %v462_v14 = vmul.f32 %v4428_v22, %v3673_v19  ;;  %v500_v2 = vstv %s4469_s11  ;;  %s4649_s11 = sld [smem:[#allocation6 + $0x12]] }
 0x1a8   : > { %v467_v9 = vadd.f32 %v459_v36, %v449_v1  ;;  %v468_v51 = vadd.f32 %v460_v50, %v450_v38  ;;  %v501_v62 = vmul.f32 %v500_v2, %v3678_v23  ;;  %v502_v48 = vmul.f32 %v500_v2, %v3680_v24 }
 0x1a9   : > { %v421_v32 = vadd.f32 %v420_v37, %v413_v20  ;;  %v469_v45 = vadd.f32 %v461_v56, %v451_v7  ;;  %v470_v27 = vadd.f32 %v462_v14, %v452_v21  ;;  %v503_v52 = vmul.f32 %v500_v2, %v3682_v25 }
 0x1aa   : > { %v477_v58 = vadd.f32 %v4431_v39, %v467_v9  ;;  %v478_v40 = vadd.f32 %v4431_v39, %v468_v51  ;;  %v504_v22 = vmul.f32 %v500_v2, %v3684_v26  ;;  %v510_v57 = vstv %s4484_s14  ;;  %s4655_s14 = sld [smem:[#allocation6 + $0x13]] }
 0x1ab   : > { %v422_v49 = vadd.f32 %v421_v32, %v414_v53  ;;  %v479_v44 = vadd.f32 %v4431_v39, %v469_v45  ;;  %v480_v46 = vadd.f32 %v4431_v39, %v470_v27  ;;  %v511_v42 = vmul.f32 %v510_v57, %v3687_v28 }
 0x1ac   : > { %v485_v59 = vmax.f32 %v477_v58, 0.0  ;;  %v486_v41 = vmax.f32 %v478_v40, 0.0  ;;  %v512_v63 = vmul.f32 %v510_v57, %v3689_v29  ;;  %v513_v0 = vmul.f32 %v510_v57, %v3691_v30 }
 0x1ad   : > { %423 = vadd.xlane.f32.xlu0 %v422_v49  ;;  %v487_v55 = vmax.f32 %v479_v44, 0.0  ;;  %v488_v15 = vmax.f32 %v480_v46, 0.0  ;;  %v514_v54 = vmul.f32 %v510_v57, %v3693_v31  ;;  %v519_v47 = vadd.f32 %v511_v42, %v501_v62 }
 0x1ae   : > { %v494_v60 = vadd.f32 %v486_v41, %v485_v59  ;;  %v520_v8 = vadd.f32 %v512_v63, %v502_v48  ;;  %v521_v1 = vadd.f32 %v513_v0, %v503_v52  ;;  %v528_v61 = vstv %s4497_s16  ;;  %s4663_s16 = sld [smem:[#allocation6 + $0x14]] }
 0x1af   : > { %v522_v39 = vadd.f32 %v514_v54, %v504_v22  ;;  %v529_v20 = vmul.f32 %v528_v61, %v3696_v33  ;;  %v530_v53 = vmul.f32 %v528_v61, %v3698_v34  ;;  %v531_v38 = vmul.f32 %v528_v61, %v3700_v35 }
 0x1b0   : > { %v495_v7 = vadd.f32 %v494_v60, %v487_v55  ;;  %v532_v21 = vmul.f32 %v528_v61, %v3707_v43  ;;  %v546_v36 = vstv %s4506_s10  ;;  %v505_v50 = vmul.f32 %v500_v2, %v3644_v3  ;;  %s4674_s10 = sld [smem:[#allocation7 + $0x6]] }
 0x1b1   : > { %v537_v37 = vadd.f32 %v529_v20, %v519_v47  ;;  %v538_v56 = vadd.f32 %v530_v53, %v520_v8  ;;  %v539_v14 = vadd.f32 %v531_v38, %v521_v1  ;;  %v506_v9 = vmul.f32 %v500_v2, %v3646_v4 }
 0x1b2   : > { %v496_v51 = vadd.f32 %v495_v7, %v488_v15  ;;  %v540_v62 = vadd.f32 %v532_v21, %v522_v39  ;;  %v507_v48 = vmul.f32 %v500_v2, %v3648_v5  ;;  %v508_v32 = vmul.f32 %v500_v2, %v3650_v6 }
 0x1b3   : > { %v547_v45 = vadd.f32 %v546_v36, %v537_v37  ;;  %v548_v27 = vadd.f32 %v546_v36, %v538_v56  ;;  %v549_v52 = vadd.f32 %v546_v36, %v539_v14  ;;  %v515_v58 = vmul.f32 %v510_v57, %v3657_v10 }
 0x1b4   : > { %497 = vadd.xlane.f32.xlu1 %v496_v51  ;;  %v550_v40 = vadd.f32 %v546_v36, %v540_v62  ;;  %v516_v22 = vmul.f32 %v510_v57, %v3659_v11  ;;  %v517_v49 = vmul.f32 %v510_v57, %v3661_v12  ;;  %v518_v44 = vmul.f32 %v510_v57, %v3663_v13 }
 0x1b5   : > { %v555_v46 = vmax.f32 %v547_v45, 0.0  ;;  %v556_v42 = vmax.f32 %v548_v27, 0.0  ;;  %v557_v59 = vmax.f32 %v549_v52, 0.0  ;;  %v523_v2 = vadd.f32 %v515_v58, %v505_v50 }
 0x1b6   : > { %v558_v41 = vmax.f32 %v550_v40, 0.0  ;;  %v524_v63 = vadd.f32 %v516_v22, %v506_v9  ;;  %v525_v0 = vadd.f32 %v517_v49, %v507_v48  ;;  %v526_v55 = vadd.f32 %v518_v44, %v508_v32 }
 0x1b7   : > { %v563_v15 = vadd.f32 %v556_v42, %v555_v46  ;;  %v533_v54 = vmul.f32 %v528_v61, %v3667_v16  ;;  %v534_v47 = vmul.f32 %v528_v61, %v3669_v17  ;;  %v535_v60 = vmul.f32 %v528_v61, %v3671_v18 }
 0x1b8   : > { %v536_v8 = vmul.f32 %v528_v61, %v3673_v19  ;;  %v574_v1 = vstv %s4523_s12  ;;  %v584_v57 = vstv %s4528_s1  ;;  %v4546_v39 = vstv %s4530_s23  ;;  %s4687_s12 = sld [smem:[#allocation6 + $0x15]]  ;;  %s4693_s1 = sld [smem:[#allocation6 + $0x16]] }
 0x1b9   : > { %v564_v20 = vadd.f32 %v563_v15, %v557_v59  ;;  %v541_v53 = vadd.f32 %v533_v54, %v523_v2  ;;  %v542_v38 = vadd.f32 %v534_v47, %v524_v63  ;;  %v543_v7 = vadd.f32 %v535_v60, %v525_v0  ;;  %s4695_s23 = sld [smem:[#allocation6 + $0x17]] }
 0x1ba   : > { %v544_v21 = vadd.f32 %v536_v8, %v526_v55  ;;  %v575_v50 = vmul.f32 %v574_v1, %v3678_v23  ;;  %v576_v37 = vmul.f32 %v574_v1, %v3680_v24  ;;  %v577_v56 = vmul.f32 %v574_v1, %v3682_v25 }
 0x1bb   : > { %v565_v14 = vadd.f32 %v564_v20, %v558_v41  ;;  %v551_v9 = vadd.f32 %v546_v36, %v541_v53  ;;  %v552_v61 = vadd.f32 %v546_v36, %v542_v38  ;;  %v553_v51 = vadd.f32 %v546_v36, %v543_v7 }
 0x1bc   : > { %v554_v62 = vadd.f32 %v546_v36, %v544_v21  ;;  %v578_v48 = vmul.f32 %v574_v1, %v3684_v26  ;;  %v585_v32 = vmul.f32 %v584_v57, %v3687_v28  ;;  %v586_v45 = vmul.f32 %v584_v57, %v3689_v29 }
 0x1bd   : > { %566 = vadd.xlane.f32.xlu0 %v565_v14  ;;  %v559_v27 = vmax.f32 %v551_v9, 0.0  ;;  %v560_v52 = vmax.f32 %v552_v61, 0.0  ;;  %v561_v58 = vmax.f32 %v553_v51, 0.0  ;;  %v587_v40 = vmul.f32 %v584_v57, %v3691_v30 }
 0x1be   : > { %v562_v22 = vmax.f32 %v554_v62, 0.0  ;;  %v588_v49 = vmul.f32 %v584_v57, %v3693_v31  ;;  %v593_v44 = vadd.f32 %v585_v32, %v575_v50  ;;  %v594_v46 = vadd.f32 %v586_v45, %v576_v37 }
 0x1bf   : > { %v568_v42 = vadd.f32 %v560_v52, %v559_v27  ;;  %v595_v36 = vadd.f32 %v587_v40, %v577_v56  ;;  %v603_v59 = vmul.f32 %v4546_v39, %v3696_v33  ;;  %v604_v2 = vmul.f32 %v4546_v39, %v3698_v34 }
 0x1c0   : > { %v596_v41 = vadd.f32 %v588_v49, %v578_v48  ;;  %v605_v63 = vmul.f32 %v4546_v39, %v3700_v35  ;;  %v606_v0 = vmul.f32 %v4546_v39, %v3707_v43  ;;  %v620_v55 = vstv %s4548_s26  ;;  %s4712_s26 = sld [smem:[#allocation7 + $0x7]] }
 0x1c1   : > { %v569_v15 = vadd.f32 %v568_v42, %v561_v58  ;;  %v611_v54 = vadd.f32 %v603_v59, %v593_v44  ;;  %v612_v47 = vadd.f32 %v604_v2, %v594_v46  ;;  %v579_v60 = vmul.f32 %v574_v1, %v3644_v3 }
 0x1c2   : > { %v613_v8 = vadd.f32 %v605_v63, %v595_v36  ;;  %v614_v20 = vadd.f32 %v606_v0, %v596_v41  ;;  %v580_v53 = vmul.f32 %v574_v1, %v3646_v4  ;;  %v581_v38 = vmul.f32 %v574_v1, %v3648_v5 }
 0x1c3   : > { %v570_v7 = vadd.f32 %v569_v15, %v562_v22  ;;  %v621_v21 = vadd.f32 %v620_v55, %v611_v54  ;;  %v622_v50 = vadd.f32 %v620_v55, %v612_v47  ;;  %v582_v37 = vmul.f32 %v574_v1, %v3650_v6 }
 0x1c4   : > { %v623_v56 = vadd.f32 %v620_v55, %v613_v8  ;;  %v624_v14 = vadd.f32 %v620_v55, %v614_v20  ;;  %v589_v9 = vmul.f32 %v584_v57, %v3657_v10  ;;  %v590_v61 = vmul.f32 %v584_v57, %v3659_v11 }
 0x1c5   : > { %571 = vadd.xlane.f32.xlu1 %v570_v7  ;;  %v629_v51 = vmax.f32 %v621_v21, 0.0  ;;  %v630_v62 = vmax.f32 %v622_v50, 0.0  ;;  %v591_v48 = vmul.f32 %v584_v57, %v3661_v12  ;;  %v592_v32 = vmul.f32 %v584_v57, %v3663_v13 }
 0x1c6   : > { %v631_v45 = vmax.f32 %v623_v56, 0.0  ;;  %v632_v27 = vmax.f32 %v624_v14, 0.0  ;;  %v597_v52 = vadd.f32 %v589_v9, %v579_v60  ;;  %v598_v1 = vadd.f32 %v590_v61, %v580_v53 }
 0x1c7   : > { %v637_v58 = vadd.f32 %v630_v62, %v629_v51  ;;  %v599_v40 = vadd.f32 %v591_v48, %v581_v38  ;;  %v600_v22 = vadd.f32 %v592_v32, %v582_v37  ;;  %v607_v49 = vmul.f32 %v4546_v39, %v3667_v16 }
 0x1c8   : > { %v608_v44 = vmul.f32 %v4546_v39, %v3669_v17  ;;  %v609_v46 = vmul.f32 %v4546_v39, %v3671_v18  ;;  %v610_v57 = vmul.f32 %v4546_v39, %v3673_v19  ;;  %v648_v42 = vstv %s4567_s28  ;;  %s4731_s28 = sld [smem:[#allocation6 + $0x18]] }
 0x1c9   : > { %v638_v36 = vadd.f32 %v637_v58, %v631_v45  ;;  %v615_v59 = vadd.f32 %v607_v49, %v597_v52  ;;  %v649_v2 = vmul.f32 %v648_v42, %v3678_v23  ;;  %v650_v41 = vmul.f32 %v648_v42, %v3680_v24 }
 0x1ca   : > { %v616_v63 = vadd.f32 %v608_v44, %v598_v1  ;;  %v617_v0 = vadd.f32 %v609_v46, %v599_v40  ;;  %v618_v15 = vadd.f32 %v610_v57, %v600_v22  ;;  %v651_v54 = vmul.f32 %v648_v42, %v3682_v25 }
 0x1cb   : > { %v639_v47 = vadd.f32 %v638_v36, %v632_v27  ;;  %v625_v60 = vadd.f32 %v620_v55, %v615_v59  ;;  %v652_v8 = vmul.f32 %v648_v42, %v3684_v26  ;;  %v658_v20 = vstv %s4573_s29  ;;  %s4737_s29 = sld [smem:[#allocation6 + $0x19]] }
 0x1cc   : > { %v626_v39 = vadd.f32 %v620_v55, %v616_v63  ;;  %v627_v53 = vadd.f32 %v620_v55, %v617_v0  ;;  %v628_v38 = vadd.f32 %v620_v55, %v618_v15  ;;  %v659_v7 = vmul.f32 %v658_v20, %v3687_v28 }
 0x1cd   : > { %640 = vadd.xlane.f32.xlu0 %v639_v47  ;;  %v633_v21 = vmax.f32 %v625_v60, 0.0  ;;  %v660_v50 = vmul.f32 %v658_v20, %v3689_v29  ;;  %v661_v37 = vmul.f32 %v658_v20, %v3691_v30  ;;  %v662_v56 = vmul.f32 %v658_v20, %v3693_v31 }
 0x1ce   : > { %v634_v14 = vmax.f32 %v626_v39, 0.0  ;;  %v635_v9 = vmax.f32 %v627_v53, 0.0  ;;  %v636_v61 = vmax.f32 %v628_v38, 0.0  ;;  %v667_v51 = vadd.f32 %v659_v7, %v649_v2 }
 0x1cf   : > { %v668_v62 = vadd.f32 %v660_v50, %v650_v41  ;;  %v669_v48 = vadd.f32 %v661_v37, %v651_v54  ;;  %v670_v32 = vadd.f32 %v662_v56, %v652_v8  ;;  %v676_v45 = vstv %s4581_s7  ;;  %s4745_s7 = sld [smem:[#allocation6 + $0x1a]] }
 0x1d0   : > { %v642_v55 = vadd.f32 %v634_v14, %v633_v21  ;;  %v677_v27 = vmul.f32 %v676_v45, %v3696_v33  ;;  %v678_v52 = vmul.f32 %v676_v45, %v3698_v34  ;;  %v679_v1 = vmul.f32 %v676_v45, %v3700_v35 }
 0x1d1   : > { %v680_v58 = vmul.f32 %v676_v45, %v3707_v43  ;;  %v694_v40 = vstv %s4592_s9  ;;  %v653_v22 = vmul.f32 %v648_v42, %v3644_v3  ;;  %v654_v49 = vmul.f32 %v648_v42, %v3646_v4  ;;  %s4756_s9 = sld [smem:[#allocation7 + $0x8]] }
 0x1d2   : > { %v643_v44 = vadd.f32 %v642_v55, %v635_v9  ;;  %v685_v46 = vadd.f32 %v677_v27, %v667_v51  ;;  %v686_v57 = vadd.f32 %v678_v52, %v668_v62  ;;  %v687_v36 = vadd.f32 %v679_v1, %v669_v48 }
 0x1d3   : > { %v688_v59 = vadd.f32 %v680_v58, %v670_v32  ;;  %v655_v2 = vmul.f32 %v648_v42, %v3648_v5  ;;  %v656_v41 = vmul.f32 %v648_v42, %v3650_v6  ;;  %v663_v63 = vmul.f32 %v658_v20, %v3657_v10 }
 0x1d4   : > { %v644_v0 = vadd.f32 %v643_v44, %v636_v61  ;;  %v695_v15 = vadd.f32 %v694_v40, %v685_v46  ;;  %v696_v54 = vadd.f32 %v694_v40, %v686_v57  ;;  %v697_v47 = vadd.f32 %v694_v40, %v687_v36 }
 0x1d5   : > { %v698_v60 = vadd.f32 %v694_v40, %v688_v59  ;;  %v664_v8 = vmul.f32 %v658_v20, %v3659_v11  ;;  %v665_v39 = vmul.f32 %v658_v20, %v3661_v12  ;;  %v666_v53 = vmul.f32 %v658_v20, %v3663_v13 }
 0x1d6   : > { %645 = vadd.xlane.f32.xlu1 %v644_v0  ;;  %v703_v38 = vmax.f32 %v695_v15, 0.0  ;;  %v704_v7 = vmax.f32 %v696_v54, 0.0  ;;  %v705_v42 = vmax.f32 %v697_v47, 0.0  ;;  %v671_v21 = vadd.f32 %v663_v63, %v653_v22 }
 0x1d7   : > { %v706_v50 = vmax.f32 %v698_v60, 0.0  ;;  %v672_v37 = vadd.f32 %v664_v8, %v654_v49  ;;  %v673_v56 = vadd.f32 %v665_v39, %v655_v2  ;;  %v674_v14 = vadd.f32 %v666_v53, %v656_v41 }
 0x1d8   : > { %v711_v9 = vadd.f32 %v704_v7, %v703_v38  ;;  %v681_v61 = vmul.f32 %v676_v45, %v3667_v16  ;;  %v682_v51 = vmul.f32 %v676_v45, %v3669_v17  ;;  %v683_v62 = vmul.f32 %v676_v45, %v3671_v18 }
 0x1d9   : > { %v684_v20 = vmul.f32 %v676_v45, %v3673_v19  ;;  %v722_v48 = vstv %s4605_s17  ;;  %v732_v32 = vstv %s4611_s13  ;;  %v4628_v55 = vstv %s4613_s25  ;;  %s4769_s17 = sld [smem:[#allocation6 + $0x1b]]  ;;  %s4775_s13 = sld [smem:[#allocation6 + $0x1c]] }
 0x1da   : > { %v712_v27 = vadd.f32 %v711_v9, %v705_v42  ;;  %v689_v52 = vadd.f32 %v681_v61, %v671_v21  ;;  %v690_v1 = vadd.f32 %v682_v51, %v672_v37  ;;  %v691_v58 = vadd.f32 %v683_v62, %v673_v56  ;;  %s4777_s25 = sld [smem:[#allocation6 + $0x1d]] }
 0x1db   : > { %v692_v22 = vadd.f32 %v684_v20, %v674_v14  ;;  %v723_v49 = vmul.f32 %v722_v48, %v3678_v23  ;;  %v724_v44 = vmul.f32 %v722_v48, %v3680_v24  ;;  %v725_v46 = vmul.f32 %v722_v48, %v3682_v25 }
 0x1dc   : > { %v713_v57 = vadd.f32 %v712_v27, %v706_v50  ;;  %v699_v36 = vadd.f32 %v694_v40, %v689_v52  ;;  %v700_v45 = vadd.f32 %v694_v40, %v690_v1  ;;  %v701_v59 = vadd.f32 %v694_v40, %v691_v58 }
 0x1dd   : > { %v702_v2 = vadd.f32 %v694_v40, %v692_v22  ;;  %v726_v41 = vmul.f32 %v722_v48, %v3684_v26  ;;  %v733_v63 = vmul.f32 %v732_v32, %v3687_v28  ;;  %v734_v0 = vmul.f32 %v732_v32, %v3689_v29 }
 0x1de   : > { %714 = vadd.xlane.f32.xlu0 %v713_v57  ;;  %v707_v15 = vmax.f32 %v699_v36, 0.0  ;;  %v708_v54 = vmax.f32 %v700_v45, 0.0  ;;  %v709_v47 = vmax.f32 %v701_v59, 0.0  ;;  %v735_v60 = vmul.f32 %v732_v32, %v3691_v30 }
 0x1df   : > { %v710_v8 = vmax.f32 %v702_v2, 0.0  ;;  %v736_v39 = vmul.f32 %v732_v32, %v3693_v31  ;;  %v741_v53 = vadd.f32 %v733_v63, %v723_v49  ;;  %v742_v38 = vadd.f32 %v734_v0, %v724_v44 }
 0x1e0   : > { %v716_v7 = vadd.f32 %v708_v54, %v707_v15  ;;  %v743_v40 = vadd.f32 %v735_v60, %v725_v46  ;;  %v751_v42 = vmul.f32 %v4628_v55, %v3696_v33  ;;  %v752_v21 = vmul.f32 %v4628_v55, %v3698_v34 }
 0x1e1   : > { %v744_v50 = vadd.f32 %v736_v39, %v726_v41  ;;  %v753_v37 = vmul.f32 %v4628_v55, %v3700_v35  ;;  %v754_v56 = vmul.f32 %v4628_v55, %v3707_v43  ;;  %v768_v14 = vstv %s4630_s8  ;;  %s4796_s8 = sld [smem:[#allocation7 + $0x9]] }
 0x1e2   : > { %v717_v9 = vadd.f32 %v716_v7, %v709_v47  ;;  %v759_v61 = vadd.f32 %v751_v42, %v741_v53  ;;  %v760_v51 = vadd.f32 %v752_v21, %v742_v38  ;;  %v727_v62 = vmul.f32 %v722_v48, %v3644_v3 }
 0x1e3   : > { %v761_v20 = vadd.f32 %v753_v37, %v743_v40  ;;  %v762_v27 = vadd.f32 %v754_v56, %v744_v50  ;;  %v728_v52 = vmul.f32 %v722_v48, %v3646_v4  ;;  %v729_v1 = vmul.f32 %v722_v48, %v3648_v5 }
 0x1e4   : > { %v718_v58 = vadd.f32 %v717_v9, %v710_v8  ;;  %v769_v22 = vadd.f32 %v768_v14, %v759_v61  ;;  %v770_v49 = vadd.f32 %v768_v14, %v760_v51  ;;  %v730_v44 = vmul.f32 %v722_v48, %v3650_v6 }
 0x1e5   : > { %v771_v46 = vadd.f32 %v768_v14, %v761_v20  ;;  %v772_v57 = vadd.f32 %v768_v14, %v762_v27  ;;  %v737_v36 = vmul.f32 %v732_v32, %v3657_v10  ;;  %v738_v45 = vmul.f32 %v732_v32, %v3659_v11 }
 0x1e6   : > { %719 = vadd.xlane.f32.xlu1 %v718_v58  ;;  %v777_v59 = vmax.f32 %v769_v22, 0.0  ;;  %v778_v2 = vmax.f32 %v770_v49, 0.0  ;;  %v739_v41 = vmul.f32 %v732_v32, %v3661_v12  ;;  %v740_v63 = vmul.f32 %v732_v32, %v3663_v13 }
 0x1e7   : > { %v779_v0 = vmax.f32 %v771_v46, 0.0  ;;  %v780_v15 = vmax.f32 %v772_v57, 0.0  ;;  %v745_v54 = vadd.f32 %v737_v36, %v727_v62  ;;  %v746_v48 = vadd.f32 %v738_v45, %v728_v52 }
 0x1e8   : > { %v785_v47 = vadd.f32 %v778_v2, %v777_v59  ;;  %v747_v60 = vadd.f32 %v739_v41, %v729_v1  ;;  %v748_v8 = vadd.f32 %v740_v63, %v730_v44  ;;  %v755_v39 = vmul.f32 %v4628_v55, %v3667_v16 }
 0x1e9   : > { %v756_v53 = vmul.f32 %v4628_v55, %v3669_v17  ;;  %v757_v38 = vmul.f32 %v4628_v55, %v3671_v18  ;;  %v758_v32 = vmul.f32 %v4628_v55, %v3673_v19  ;;  %v796_v7 = vstv %s4649_s11  ;;  %s4825_s11 = sld [smem:[#allocation6 + $0x1e]] }
 0x1ea   : > { %v786_v40 = vadd.f32 %v785_v47, %v779_v0  ;;  %v763_v42 = vadd.f32 %v755_v39, %v745_v54  ;;  %v797_v21 = vmul.f32 %v796_v7, %v3678_v23  ;;  %v798_v50 = vmul.f32 %v796_v7, %v3680_v24 }
 0x1eb   : > { %v764_v37 = vadd.f32 %v756_v53, %v746_v48  ;;  %v765_v56 = vadd.f32 %v757_v38, %v747_v60  ;;  %v766_v9 = vadd.f32 %v758_v32, %v748_v8  ;;  %v799_v61 = vmul.f32 %v796_v7, %v3682_v25 }
 0x1ec   : > { %v787_v51 = vadd.f32 %v786_v40, %v780_v15  ;;  %v773_v62 = vadd.f32 %v768_v14, %v763_v42  ;;  %v800_v20 = vmul.f32 %v796_v7, %v3684_v26  ;;  %v806_v27 = vstv %s4655_s14  ;;  %s4835_s14 = sld [smem:[#allocation6 + $0x1f]] }
 0x1ed   : > { %v774_v55 = vadd.f32 %v768_v14, %v764_v37  ;;  %v775_v52 = vadd.f32 %v768_v14, %v765_v56  ;;  %v776_v1 = vadd.f32 %v768_v14, %v766_v9  ;;  %v807_v58 = vmul.f32 %v806_v27, %v3687_v28 }
 0x1ee   : > { %788 = vadd.xlane.f32.xlu0 %v787_v51  ;;  %v781_v22 = vmax.f32 %v773_v62, 0.0  ;;  %v808_v49 = vmul.f32 %v806_v27, %v3689_v29  ;;  %v809_v44 = vmul.f32 %v806_v27, %v3691_v30  ;;  %v810_v46 = vmul.f32 %v806_v27, %v3693_v31 }
 0x1ef   : > { %v782_v57 = vmax.f32 %v774_v55, 0.0  ;;  %v783_v36 = vmax.f32 %v775_v52, 0.0  ;;  %v784_v45 = vmax.f32 %v776_v1, 0.0  ;;  %v815_v59 = vadd.f32 %v807_v58, %v797_v21 }
 0x1f0   : > { %v816_v2 = vadd.f32 %v808_v49, %v798_v50  ;;  %v817_v41 = vadd.f32 %v809_v44, %v799_v61  ;;  %v818_v63 = vadd.f32 %v810_v46, %v800_v20  ;;  %v824_v0 = vstv %s4663_s16  ;;  %s4849_s16 = sld [smem:[#allocation6 + $0x20]] }
 0x1f1   : > { %v790_v14 = vadd.f32 %v782_v57, %v781_v22  ;;  %v825_v15 = vmul.f32 %v824_v0, %v3696_v33  ;;  %v826_v54 = vmul.f32 %v824_v0, %v3698_v34  ;;  %v827_v48 = vmul.f32 %v824_v0, %v3700_v35 }
 0x1f2   : > { %v828_v47 = vmul.f32 %v824_v0, %v3707_v43  ;;  %v842_v60 = vstv %s4674_s10  ;;  %v801_v8 = vmul.f32 %v796_v7, %v3644_v3  ;;  %v802_v39 = vmul.f32 %v796_v7, %v3646_v4  ;;  %s4862_s10 = sld [smem:[#allocation7 + $0xa]] }
 0x1f3   : > { %v791_v53 = vadd.f32 %v790_v14, %v783_v36  ;;  %v833_v38 = vadd.f32 %v825_v15, %v815_v59  ;;  %v834_v32 = vadd.f32 %v826_v54, %v816_v2  ;;  %v835_v40 = vadd.f32 %v827_v48, %v817_v41 }
 0x1f4   : > { %v836_v42 = vadd.f32 %v828_v47, %v818_v63  ;;  %v803_v21 = vmul.f32 %v796_v7, %v3648_v5  ;;  %v804_v50 = vmul.f32 %v796_v7, %v3650_v6  ;;  %v811_v37 = vmul.f32 %v806_v27, %v3657_v10 }
 0x1f5   : > { %v792_v56 = vadd.f32 %v791_v53, %v784_v45  ;;  %v843_v9 = vadd.f32 %v842_v60, %v833_v38  ;;  %v844_v61 = vadd.f32 %v842_v60, %v834_v32  ;;  %v845_v51 = vadd.f32 %v842_v60, %v835_v40 }
 0x1f6   : > { %v846_v62 = vadd.f32 %v842_v60, %v836_v42  ;;  %v812_v20 = vmul.f32 %v806_v27, %v3659_v11  ;;  %v813_v55 = vmul.f32 %v806_v27, %v3661_v12  ;;  %v814_v52 = vmul.f32 %v806_v27, %v3663_v13 }
 0x1f7   : > { %793 = vadd.xlane.f32.xlu1 %v792_v56  ;;  %v851_v1 = vmax.f32 %v843_v9, 0.0  ;;  %v852_v58 = vmax.f32 %v844_v61, 0.0  ;;  %v853_v7 = vmax.f32 %v845_v51, 0.0  ;;  %v819_v22 = vadd.f32 %v811_v37, %v801_v8 }
 0x1f8   : > { %v854_v49 = vmax.f32 %v846_v62, 0.0  ;;  %v820_v44 = vadd.f32 %v812_v20, %v802_v39  ;;  %v821_v46 = vadd.f32 %v813_v55, %v803_v21  ;;  %v822_v57 = vadd.f32 %v814_v52, %v804_v50 }
 0x1f9   : > { %v859_v36 = vadd.f32 %v852_v58, %v851_v1  ;;  %v829_v45 = vmul.f32 %v824_v0, %v3667_v16  ;;  %v830_v59 = vmul.f32 %v824_v0, %v3669_v17  ;;  %v831_v2 = vmul.f32 %v824_v0, %v3671_v18 }
 0x1fa   : > { %v832_v27 = vmul.f32 %v824_v0, %v3673_v19  ;;  %v870_v41 = vstv %s4687_s12  ;;  %v880_v63 = vstv %s4693_s1  ;;  %v4710_v14 = vstv %s4695_s23  ;;  %s4879_s12 = sld [smem:[#allocation6 + $0x21]]  ;;  %s4885_s1 = sld [smem:[#allocation6 + $0x22]] }
 0x1fb   : > { %v860_v15 = vadd.f32 %v859_v36, %v853_v7  ;;  %v837_v54 = vadd.f32 %v829_v45, %v819_v22  ;;  %v838_v48 = vadd.f32 %v830_v59, %v820_v44  ;;  %v839_v47 = vadd.f32 %v831_v2, %v821_v46  ;;  %s4887_s23 = sld [smem:[#allocation6 + $0x23]] }
 0x1fc   : > { %v840_v8 = vadd.f32 %v832_v27, %v822_v57  ;;  %v871_v39 = vmul.f32 %v870_v41, %v3678_v23  ;;  %v872_v53 = vmul.f32 %v870_v41, %v3680_v24  ;;  %v873_v38 = vmul.f32 %v870_v41, %v3682_v25 }
 0x1fd   : > { %v861_v32 = vadd.f32 %v860_v15, %v854_v49  ;;  %v847_v40 = vadd.f32 %v842_v60, %v837_v54  ;;  %v848_v0 = vadd.f32 %v842_v60, %v838_v48  ;;  %v849_v42 = vadd.f32 %v842_v60, %v839_v47 }
 0x1fe   : > { %v850_v21 = vadd.f32 %v842_v60, %v840_v8  ;;  %v874_v50 = vmul.f32 %v870_v41, %v3684_v26  ;;  %v881_v37 = vmul.f32 %v880_v63, %v3687_v28  ;;  %v882_v56 = vmul.f32 %v880_v63, %v3689_v29 }
 0x1ff   : > { %862 = vadd.xlane.f32.xlu0 %v861_v32  ;;  %v855_v9 = vmax.f32 %v847_v40, 0.0  ;;  %v856_v61 = vmax.f32 %v848_v0, 0.0  ;;  %v857_v51 = vmax.f32 %v849_v42, 0.0  ;;  %v883_v62 = vmul.f32 %v880_v63, %v3691_v30 }
 0x200   : > { %v858_v20 = vmax.f32 %v850_v21, 0.0  ;;  %v884_v55 = vmul.f32 %v880_v63, %v3693_v31  ;;  %v889_v52 = vadd.f32 %v881_v37, %v871_v39  ;;  %v890_v1 = vadd.f32 %v882_v56, %v872_v53 }
 0x201   : > { %v864_v58 = vadd.f32 %v856_v61, %v855_v9  ;;  %v891_v60 = vadd.f32 %v883_v62, %v873_v38  ;;  %v899_v7 = vmul.f32 %v4710_v14, %v3696_v33  ;;  %v900_v22 = vmul.f32 %v4710_v14, %v3698_v34 }
 0x202   : > { %v892_v49 = vadd.f32 %v884_v55, %v874_v50  ;;  %v901_v44 = vmul.f32 %v4710_v14, %v3700_v35  ;;  %v902_v46 = vmul.f32 %v4710_v14, %v3707_v43  ;;  %v916_v57 = vstv %s4712_s26  ;;  %s4912_s26 = sld [smem:[#allocation7 + $0xb]] }
 0x203   : > { %v865_v36 = vadd.f32 %v864_v58, %v857_v51  ;;  %v907_v45 = vadd.f32 %v899_v7, %v889_v52  ;;  %v908_v59 = vadd.f32 %v900_v22, %v890_v1  ;;  %v875_v2 = vmul.f32 %v870_v41, %v3644_v3 }
 0x204   : > { %v909_v27 = vadd.f32 %v901_v44, %v891_v60  ;;  %v910_v15 = vadd.f32 %v902_v46, %v892_v49  ;;  %v876_v54 = vmul.f32 %v870_v41, %v3646_v4  ;;  %v877_v48 = vmul.f32 %v870_v41, %v3648_v5 }
 0x205   : > { %v866_v47 = vadd.f32 %v865_v36, %v858_v20  ;;  %v917_v8 = vadd.f32 %v916_v57, %v907_v45  ;;  %v918_v39 = vadd.f32 %v916_v57, %v908_v59  ;;  %v878_v53 = vmul.f32 %v870_v41, %v3650_v6 }
 0x206   : > { %v919_v38 = vadd.f32 %v916_v57, %v909_v27  ;;  %v920_v32 = vadd.f32 %v916_v57, %v910_v15  ;;  %v885_v40 = vmul.f32 %v880_v63, %v3657_v10  ;;  %v886_v0 = vmul.f32 %v880_v63, %v3659_v11 }
 0x207   : > { %867 = vadd.xlane.f32.xlu1 %v866_v47  ;;  %v925_v42 = vmax.f32 %v917_v8, 0.0  ;;  %v926_v21 = vmax.f32 %v918_v39, 0.0  ;;  %v887_v50 = vmul.f32 %v880_v63, %v3661_v12  ;;  %v888_v37 = vmul.f32 %v880_v63, %v3663_v13 }
 0x208   : > { %v927_v56 = vmax.f32 %v919_v38, 0.0  ;;  %v928_v9 = vmax.f32 %v920_v32, 0.0  ;;  %v893_v61 = vadd.f32 %v885_v40, %v875_v2  ;;  %v894_v41 = vadd.f32 %v886_v0, %v876_v54 }
 0x209   : > { %v933_v51 = vadd.f32 %v926_v21, %v925_v42  ;;  %v895_v62 = vadd.f32 %v887_v50, %v877_v48  ;;  %v896_v20 = vadd.f32 %v888_v37, %v878_v53  ;;  %v903_v55 = vmul.f32 %v4710_v14, %v3667_v16 }
 0x20a   : > { %v904_v52 = vmul.f32 %v4710_v14, %v3669_v17  ;;  %v905_v1 = vmul.f32 %v4710_v14, %v3671_v18  ;;  %v906_v63 = vmul.f32 %v4710_v14, %v3673_v19  ;;  %v944_v58 = vstv %s4731_s28  ;;  %s4941_s28 = sld [smem:[#allocation6 + $0x24]] }
 0x20b   : > { %v934_v60 = vadd.f32 %v933_v51, %v927_v56  ;;  %v911_v7 = vadd.f32 %v903_v55, %v893_v61  ;;  %v945_v22 = vmul.f32 %v944_v58, %v3678_v23  ;;  %v946_v49 = vmul.f32 %v944_v58, %v3680_v24 }
 0x20c   : > { %v912_v44 = vadd.f32 %v904_v52, %v894_v41  ;;  %v913_v46 = vadd.f32 %v905_v1, %v895_v62  ;;  %v914_v36 = vadd.f32 %v906_v63, %v896_v20  ;;  %v947_v45 = vmul.f32 %v944_v58, %v3682_v25 }
 0x20d   : > { %v935_v59 = vadd.f32 %v934_v60, %v928_v9  ;;  %v921_v2 = vadd.f32 %v916_v57, %v911_v7  ;;  %v948_v27 = vmul.f32 %v944_v58, %v3684_v26  ;;  %v954_v15 = vstv %s4737_s29  ;;  %s4947_s29 = sld [smem:[#allocation6 + $0x25]] }
 0x20e   : > { %v922_v14 = vadd.f32 %v916_v57, %v912_v44  ;;  %v923_v54 = vadd.f32 %v916_v57, %v913_v46  ;;  %v924_v48 = vadd.f32 %v916_v57, %v914_v36  ;;  %v955_v47 = vmul.f32 %v954_v15, %v3687_v28 }
 0x20f   : > { %936 = vadd.xlane.f32.xlu0 %v935_v59  ;;  %v929_v8 = vmax.f32 %v921_v2, 0.0  ;;  %v956_v39 = vmul.f32 %v954_v15, %v3689_v29  ;;  %v957_v53 = vmul.f32 %v954_v15, %v3691_v30  ;;  %v958_v38 = vmul.f32 %v954_v15, %v3693_v31 }
 0x210   : > { %v930_v32 = vmax.f32 %v922_v14, 0.0  ;;  %v931_v40 = vmax.f32 %v923_v54, 0.0  ;;  %v932_v0 = vmax.f32 %v924_v48, 0.0  ;;  %v963_v42 = vadd.f32 %v955_v47, %v945_v22 }
 0x211   : > { %v964_v21 = vadd.f32 %v956_v39, %v946_v49  ;;  %v965_v50 = vadd.f32 %v957_v53, %v947_v45  ;;  %v966_v37 = vadd.f32 %v958_v38, %v948_v27  ;;  %v972_v56 = vstv %s4745_s7  ;;  %s4963_s7 = sld [smem:[#allocation6 + $0x26]] }
 0x212   : > { %v938_v57 = vadd.f32 %v930_v32, %v929_v8  ;;  %v973_v9 = vmul.f32 %v972_v56, %v3696_v33  ;;  %v974_v61 = vmul.f32 %v972_v56, %v3698_v34  ;;  %v975_v41 = vmul.f32 %v972_v56, %v3700_v35 }
 0x213   : > { %v976_v51 = vmul.f32 %v972_v56, %v3707_v43  ;;  %v990_v62 = vstv %s4756_s9  ;;  %v949_v20 = vmul.f32 %v944_v58, %v3644_v3  ;;  %v950_v55 = vmul.f32 %v944_v58, %v3646_v4  ;;  %s4974_s9 = sld [smem:[#allocation7 + $0xc]] }
 0x214   : > { %v939_v52 = vadd.f32 %v938_v57, %v931_v40  ;;  %v981_v1 = vadd.f32 %v973_v9, %v963_v42  ;;  %v982_v63 = vadd.f32 %v974_v61, %v964_v21  ;;  %v983_v60 = vadd.f32 %v975_v41, %v965_v50 }
 0x215   : > { %v984_v7 = vadd.f32 %v976_v51, %v966_v37  ;;  %v951_v22 = vmul.f32 %v944_v58, %v3648_v5  ;;  %v952_v49 = vmul.f32 %v944_v58, %v3650_v6  ;;  %v959_v44 = vmul.f32 %v954_v15, %v3657_v10 }
 0x216   : > { %v940_v46 = vadd.f32 %v939_v52, %v932_v0  ;;  %v991_v36 = vadd.f32 %v990_v62, %v981_v1  ;;  %v992_v45 = vadd.f32 %v990_v62, %v982_v63  ;;  %v993_v59 = vadd.f32 %v990_v62, %v983_v60  ;;  %v4803_v63 = vpop.xlane.xlu1 %1607 }
 0x217   : > { %v994_v2 = vadd.f32 %v990_v62, %v984_v7  ;;  %v960_v27 = vmul.f32 %v954_v15, %v3659_v11  ;;  %v961_v14 = vmul.f32 %v954_v15, %v3661_v12  ;;  %v962_v54 = vmul.f32 %v954_v15, %v3663_v13 }
 0x218   : > { %941 = vadd.xlane.f32.xlu1 %v940_v46  ;;  %v999_v48 = vmax.f32 %v991_v36, 0.0  ;;  %v1000_v47 = vmax.f32 %v992_v45, 0.0  ;;  %v1001_v58 = vmax.f32 %v993_v59, 0.0  ;;  %v967_v8 = vadd.f32 %v959_v44, %v949_v20  ;;  %v4798_v20 = vpop.xlane.xlu0 %1602 }
 0x219   : > { %v1002_v39 = vmax.f32 %v994_v2, 0.0  ;;  %v968_v53 = vadd.f32 %v960_v27, %v950_v55  ;;  %v969_v38 = vadd.f32 %v961_v14, %v951_v22  ;;  %v970_v32 = vadd.f32 %v962_v54, %v952_v49 }
 0x21a   : > { %v1007_v40 = vadd.f32 %v1000_v47, %v999_v48  ;;  %v977_v0 = vmul.f32 %v972_v56, %v3667_v16  ;;  %v978_v42 = vmul.f32 %v972_v56, %v3669_v17  ;;  %v979_v21 = vmul.f32 %v972_v56, %v3671_v18 }
 0x21b   : > { %v980_v15 = vmul.f32 %v972_v56, %v3673_v19  ;;  %v1018_v50 = vstv %s4769_s17  ;;  %v4791_v37 = vstv %s4775_s13  ;;  %v4794_v57 = vstv %s4777_s25  ;;  %s4993_s17 = sld [smem:[#allocation6 + $0x27]]  ;;  %s5001_s13 = sld [smem:[#allocation6 + $0x28]] }
 0x21c   : > { %v1008_v9 = vadd.f32 %v1007_v40, %v1001_v58  ;;  %v985_v61 = vadd.f32 %v977_v0, %v967_v8  ;;  %v986_v41 = vadd.f32 %v978_v42, %v968_v53  ;;  %v987_v51 = vadd.f32 %v979_v21, %v969_v38  ;;  %v4812_v54 = vpop.xlane.xlu0 %1676  ;;  %v4827_v21 = vpop.xlane.xlu1 %1681  ;;  %s5003_s25 = sld [smem:[#allocation6 + $0x29]] }
 0x21d   : > { %v988_v55 = vadd.f32 %v980_v15, %v970_v32  ;;  %v1019_v52 = vmul.f32 %v1018_v50, %v3678_v23  ;;  %v1020_v1 = vmul.f32 %v1018_v50, %v3680_v24  ;;  %v1021_v56 = vmul.f32 %v1018_v50, %v3682_v25 }
 0x21e   : > { %v1009_v60 = vadd.f32 %v1008_v9, %v1002_v39  ;;  %v995_v7 = vadd.f32 %v990_v62, %v985_v61  ;;  %v996_v22 = vadd.f32 %v990_v62, %v986_v41  ;;  %v997_v49 = vadd.f32 %v990_v62, %v987_v51 }
 0x21f   : > { %v998_v44 = vadd.f32 %v990_v62, %v988_v55  ;;  %v1022_v46 = vmul.f32 %v1018_v50, %v3684_v26  ;;  %v1029_v36 = vmul.f32 %v4791_v37, %v3687_v28  ;;  %v1030_v45 = vmul.f32 %v4791_v37, %v3689_v29 }
 0x220   : > { %1010 = vadd.xlane.f32.xlu0 %v1009_v60  ;;  %v1003_v59 = vmax.f32 %v995_v7, 0.0  ;;  %v1004_v2 = vmax.f32 %v996_v22, 0.0  ;;  %v1005_v27 = vmax.f32 %v997_v49, 0.0  ;;  %v1031_v14 = vmul.f32 %v4791_v37, %v3691_v30  ;;  %v4830_v51 = vpop.xlane.xlu0 %1750 }
 0x221   : > { %v1006_v48 = vmax.f32 %v998_v44, 0.0  ;;  %v1032_v62 = vmul.f32 %v4791_v37, %v3693_v31  ;;  %v1037_v47 = vadd.f32 %v1029_v36, %v1019_v52  ;;  %v1038_v58 = vadd.f32 %v1030_v45, %v1020_v1 }
 0x222   : > { %v1012_v8 = vadd.f32 %v1004_v2, %v1003_v59  ;;  %v1039_v39 = vadd.f32 %v1031_v14, %v1021_v56  ;;  %v1047_v53 = vmul.f32 %v4794_v57, %v3696_v33  ;;  %v1048_v38 = vmul.f32 %v4794_v57, %v3698_v34 }
 0x223   : > { %v1040_v32 = vadd.f32 %v1032_v62, %v1022_v46  ;;  %v1049_v40 = vmul.f32 %v4794_v57, %v3700_v35  ;;  %v1050_v0 = vmul.f32 %v4794_v57, %v3707_v43  ;;  %v1064_v42 = vstv %s4796_s8  ;;  %s5024_s8 = sld [smem:[#allocation7 + $0xd]] }
 0x224   : > { %v1013_v15 = vadd.f32 %v1012_v8, %v1005_v27  ;;  %v1055_v9 = vadd.f32 %v1047_v53, %v1037_v47  ;;  %v1056_v61 = vadd.f32 %v1048_v38, %v1038_v58  ;;  %v1023_v41 = vmul.f32 %v1018_v50, %v3644_v3  ;;  %v4845_v58 = vpop.xlane.xlu1 %1755 }
 0x225   : > { %v1057_v55 = vadd.f32 %v1049_v40, %v1039_v39  ;;  %v1058_v52 = vadd.f32 %v1050_v0, %v1040_v32  ;;  %v1024_v1 = vmul.f32 %v1018_v50, %v3646_v4  ;;  %v1025_v56 = vmul.f32 %v1018_v50, %v3648_v5  ;;  %v4851_v32 = vpop.xlane.xlu0 %1824 }
 0x226   : > { %v1014_v60 = vadd.f32 %v1013_v15, %v1006_v48  ;;  %v1065_v7 = vadd.f32 %v1064_v42, %v1055_v9  ;;  %v1066_v22 = vadd.f32 %v1064_v42, %v1056_v61  ;;  %v1026_v49 = vmul.f32 %v1018_v50, %v3650_v6 }
 0x227   : > { %v1067_v44 = vadd.f32 %v1064_v42, %v1057_v55  ;;  %v1068_v46 = vadd.f32 %v1064_v42, %v1058_v52  ;;  %v1033_v36 = vmul.f32 %v4791_v37, %v3657_v10  ;;  %v1034_v45 = vmul.f32 %v4791_v37, %v3659_v11 }
 0x228   : > { %1015 = vadd.xlane.f32.xlu1 %v1014_v60  ;;  %v1073_v59 = vmax.f32 %v1065_v7, 0.0  ;;  %v1074_v2 = vmax.f32 %v1066_v22, 0.0  ;;  %v1035_v27 = vmul.f32 %v4791_v37, %v3661_v12  ;;  %v1036_v50 = vmul.f32 %v4791_v37, %v3663_v13 }
 0x229   : > { %v1075_v14 = vmax.f32 %v1067_v44, 0.0  ;;  %v1076_v48 = vmax.f32 %v1068_v46, 0.0  ;;  %v1041_v62 = vadd.f32 %v1033_v36, %v1023_v41  ;;  %v1042_v47 = vadd.f32 %v1034_v45, %v1024_v1 }
 0x22a   : > { %v1081_v8 = vadd.f32 %v1074_v2, %v1073_v59  ;;  %v1043_v39 = vadd.f32 %v1035_v27, %v1025_v56  ;;  %v1044_v53 = vadd.f32 %v1036_v50, %v1026_v49  ;;  %v1051_v38 = vmul.f32 %v4794_v57, %v3667_v16  ;;  %v4868_v59 = vpop.xlane.xlu1 %1829 }
 0x22b   : > { %v1052_v40 = vmul.f32 %v4794_v57, %v3669_v17  ;;  %v1053_v37 = vmul.f32 %v4794_v57, %v3671_v18  ;;  %v1054_v0 = vmul.f32 %v4794_v57, %v3673_v19  ;;  %v1092_v15 = vstv %s4825_s11  ;;  %s5047_s11 = sld [smem:[#allocation6 + $0x2a]] }
 0x22c   : > { %v1082_v9 = vadd.f32 %v1081_v8, %v1075_v14  ;;  %v1059_v61 = vadd.f32 %v1051_v38, %v1041_v62  ;;  %v1093_v41 = vmul.f32 %v1092_v15, %v3678_v23  ;;  %v1094_v55 = vmul.f32 %v1092_v15, %v3680_v24 }
 0x22d   : > { %v1060_v52 = vadd.f32 %v1052_v40, %v1042_v47  ;;  %v1061_v1 = vadd.f32 %v1053_v37, %v1043_v39  ;;  %v1062_v56 = vadd.f32 %v1054_v0, %v1044_v53  ;;  %v1095_v60 = vmul.f32 %v1092_v15, %v3682_v25 }
 0x22e   : > { %v1083_v7 = vadd.f32 %v1082_v9, %v1076_v48  ;;  %v1069_v22 = vadd.f32 %v1064_v42, %v1059_v61  ;;  %v1096_v49 = vmul.f32 %v1092_v15, %v3684_v26  ;;  %v1102_v44 = vstv %s4835_s14  ;;  %v4873_v48 = vpop.xlane.xlu0 %1898  ;;  %s5057_s14 = sld [smem:[#allocation6 + $0x2b]] }
 0x22f   : > { %v1070_v57 = vadd.f32 %v1064_v42, %v1060_v52  ;;  %v1071_v46 = vadd.f32 %v1064_v42, %v1061_v1  ;;  %v1072_v36 = vadd.f32 %v1064_v42, %v1062_v56  ;;  %v1103_v45 = vmul.f32 %v1102_v44, %v3687_v28  ;;  %5354 = vst [vmem:[#allocation20_spill] sm:$0xff] %v4873_v48 }
 0x230   : > { %1084 = vadd.xlane.f32.xlu0 %v1083_v7  ;;  %v1077_v2 = vmax.f32 %v1069_v22, 0.0  ;;  %v1104_v27 = vmul.f32 %v1102_v44, %v3689_v29  ;;  %v1105_v50 = vmul.f32 %v1102_v44, %v3691_v30  ;;  %v1106_v14 = vmul.f32 %v1102_v44, %v3693_v31 }
 0x231   : > { %v1078_v62 = vmax.f32 %v1070_v57, 0.0  ;;  %v1079_v47 = vmax.f32 %v1071_v46, 0.0  ;;  %v1080_v8 = vmax.f32 %v1072_v36, 0.0  ;;  %v1111_v42 = vadd.f32 %v1103_v45, %v1093_v41 }
 0x232   : > { %v1112_v39 = vadd.f32 %v1104_v27, %v1094_v55  ;;  %v1113_v53 = vadd.f32 %v1105_v50, %v1095_v60  ;;  %v1114_v38 = vadd.f32 %v1106_v14, %v1096_v49  ;;  %v1120_v40 = vstv %s4849_s16  ;;  %v4889_v49 = vpop.xlane.xlu1 %1903  ;;  %s5067_s16 = sld [smem:[#allocation6 + $0x2c]] }
 0x233   : > { %v1086_v37 = vadd.f32 %v1078_v62, %v1077_v2  ;;  %v1121_v0 = vmul.f32 %v1120_v40, %v3696_v33  ;;  %v1122_v9 = vmul.f32 %v1120_v40, %v3698_v34  ;;  %v1123_v61 = vmul.f32 %v1120_v40, %v3700_v35  ;;  %5355 = vst [vmem:[#allocation21_spill] sm:$0xff] %v4889_v49  ;;  %v4894_v2 = vpop.xlane.xlu0 %1972 }
 0x234   : > { %v1124_v52 = vmul.f32 %v1120_v40, %v3707_v43  ;;  %v1138_v1 = vstv %s4862_s10  ;;  %v1097_v56 = vmul.f32 %v1092_v15, %v3644_v3  ;;  %v1098_v41 = vmul.f32 %v1092_v15, %v3646_v4  ;;  %5356 = vst [vmem:[#allocation22_spill] sm:$0xff] %v4894_v2  ;;  %s5080_s10 = sld [smem:[#allocation7 + $0xe]] }
 0x235   : > { %v1087_v55 = vadd.f32 %v1086_v37, %v1079_v47  ;;  %v1129_v60 = vadd.f32 %v1121_v0, %v1111_v42  ;;  %v1130_v7 = vadd.f32 %v1122_v9, %v1112_v39  ;;  %v1131_v22 = vadd.f32 %v1123_v61, %v1113_v53 }
 0x236   : > { %v1132_v57 = vadd.f32 %v1124_v52, %v1114_v38  ;;  %v1099_v46 = vmul.f32 %v1092_v15, %v3648_v5  ;;  %v1100_v36 = vmul.f32 %v1092_v15, %v3650_v6  ;;  %v1107_v45 = vmul.f32 %v1102_v44, %v3657_v10 }
 0x237   : > { %v1088_v27 = vadd.f32 %v1087_v55, %v1080_v8  ;;  %v1139_v50 = vadd.f32 %v1138_v1, %v1129_v60  ;;  %v1140_v14 = vadd.f32 %v1138_v1, %v1130_v7  ;;  %v1141_v62 = vadd.f32 %v1138_v1, %v1131_v22 }
 0x238   : > { %v1142_v48 = vadd.f32 %v1138_v1, %v1132_v57  ;;  %v1108_v47 = vmul.f32 %v1102_v44, %v3659_v11  ;;  %v1109_v42 = vmul.f32 %v1102_v44, %v3661_v12  ;;  %v1110_v39 = vmul.f32 %v1102_v44, %v3663_v13  ;;  %v4902_v44 = vpop.xlane.xlu1 %1977 }
 0x239   : > { %1089 = vadd.xlane.f32.xlu1 %v1088_v27  ;;  %v1147_v53 = vmax.f32 %v1139_v50, 0.0  ;;  %v1148_v15 = vmax.f32 %v1140_v14, 0.0  ;;  %v1149_v38 = vmax.f32 %v1141_v62, 0.0  ;;  %v1115_v37 = vadd.f32 %v1107_v45, %v1097_v56  ;;  %5357 = vst [vmem:[#allocation23_spill] sm:$0xff] %v4902_v44 }
 0x23a   : > { %v1150_v0 = vmax.f32 %v1142_v48, 0.0  ;;  %v1116_v8 = vadd.f32 %v1108_v47, %v1098_v41  ;;  %v1117_v9 = vadd.f32 %v1109_v42, %v1099_v46  ;;  %v1118_v61 = vadd.f32 %v1110_v39, %v1100_v36  ;;  %v4914_v48 = vpop.xlane.xlu0 %2046 }
 0x23b   : > { %v1155_v52 = vadd.f32 %v1148_v15, %v1147_v53  ;;  %v1125_v55 = vmul.f32 %v1120_v40, %v3667_v16  ;;  %v1126_v60 = vmul.f32 %v1120_v40, %v3669_v17  ;;  %v1127_v7 = vmul.f32 %v1120_v40, %v3671_v18  ;;  %5358 = vst [vmem:[#allocation24_spill] sm:$0xff] %v4914_v48 }
 0x23c   : > { %v1128_v22 = vmul.f32 %v1120_v40, %v3673_v19  ;;  %v1166_v57 = vstv %s4879_s12  ;;  %v4907_v27 = vstv %s4885_s1  ;;  %v4910_v50 = vstv %s4887_s23  ;;  %s5097_s12 = sld [smem:[#allocation6 + $0x2d]]  ;;  %s5103_s1 = sld [smem:[#allocation6 + $0x2e]] }
 0x23d   : > { %v1156_v56 = vadd.f32 %v1155_v52, %v1149_v38  ;;  %v1133_v41 = vadd.f32 %v1125_v55, %v1115_v37  ;;  %v1134_v46 = vadd.f32 %v1126_v60, %v1116_v8  ;;  %v1135_v36 = vadd.f32 %v1127_v7, %v1117_v9  ;;  %v4926_v52 = vpop.xlane.xlu1 %2051  ;;  %s5105_s23 = sld [smem:[#allocation6 + $0x2f]] }
 0x23e   : > { %v1136_v45 = vadd.f32 %v1128_v22, %v1118_v61  ;;  %v1167_v14 = vmul.f32 %v1166_v57, %v3678_v23  ;;  %v1168_v62 = vmul.f32 %v1166_v57, %v3680_v24  ;;  %v1169_v40 = vmul.f32 %v1166_v57, %v3682_v25  ;;  %5359 = vst [vmem:[#allocation25_spill] sm:$0xff] %v4926_v52  ;;  %v4930_v22 = vpop.xlane.xlu0 %2120 }
 0x23f   : > { %v1157_v47 = vadd.f32 %v1156_v56, %v1150_v0  ;;  %v1143_v42 = vadd.f32 %v1138_v1, %v1133_v41  ;;  %v1144_v39 = vadd.f32 %v1138_v1, %v1134_v46  ;;  %v1145_v53 = vadd.f32 %v1138_v1, %v1135_v36  ;;  %5360 = vst [vmem:[#allocation26_spill] sm:$0xff] %v4930_v22 }
 0x240   : > { %v1146_v15 = vadd.f32 %v1138_v1, %v1136_v45  ;;  %v1170_v2 = vmul.f32 %v1166_v57, %v3684_v26  ;;  %v1177_v38 = vmul.f32 %v4907_v27, %v3687_v28  ;;  %v1178_v37 = vmul.f32 %v4907_v27, %v3689_v29 }
 0x241   : > { %1158 = vadd.xlane.f32.xlu0 %v1157_v47  ;;  %v1151_v8 = vmax.f32 %v1143_v42, 0.0  ;;  %v1152_v9 = vmax.f32 %v1144_v39, 0.0  ;;  %v1153_v61 = vmax.f32 %v1145_v53, 0.0  ;;  %v1179_v0 = vmul.f32 %v4907_v27, %v3691_v30  ;;  %v4949_v22 = vpop.xlane.xlu1 %2125 }
 0x242   : > { %v1154_v55 = vmax.f32 %v1146_v15, 0.0  ;;  %v1180_v1 = vmul.f32 %v4907_v27, %v3693_v31  ;;  %v1185_v60 = vadd.f32 %v1177_v38, %v1167_v14  ;;  %v1186_v7 = vadd.f32 %v1178_v37, %v1168_v62  ;;  %5361 = vst [vmem:[#allocation27_spill] sm:$0xff] %v4949_v22 }
 0x243   : > { %v1160_v56 = vadd.f32 %v1152_v9, %v1151_v8  ;;  %v1187_v41 = vadd.f32 %v1179_v0, %v1169_v40  ;;  %v1195_v46 = vmul.f32 %v4910_v50, %v3696_v33  ;;  %v1196_v36 = vmul.f32 %v4910_v50, %v3698_v34 }
 0x244   : > { %v1188_v45 = vadd.f32 %v1180_v1, %v1170_v2  ;;  %v1197_v47 = vmul.f32 %v4910_v50, %v3700_v35  ;;  %v1198_v42 = vmul.f32 %v4910_v50, %v3707_v43  ;;  %v1212_v39 = vstv %s4912_s26  ;;  %s5130_s26 = sld [smem:[#allocation7 + $0xf]] }
 0x245   : > { %v1161_v14 = vadd.f32 %v1160_v56, %v1153_v61  ;;  %v1203_v62 = vadd.f32 %v1195_v46, %v1185_v60  ;;  %v1204_v53 = vadd.f32 %v1196_v36, %v1186_v7  ;;  %v1171_v40 = vmul.f32 %v1166_v57, %v3644_v3 }
 0x246   : > { %v1205_v15 = vadd.f32 %v1197_v47, %v1187_v41  ;;  %v1206_v38 = vadd.f32 %v1198_v42, %v1188_v45  ;;  %v1172_v37 = vmul.f32 %v1166_v57, %v3646_v4  ;;  %v1173_v2 = vmul.f32 %v1166_v57, %v3648_v5  ;;  %v4955_v41 = vpop.xlane.xlu0 %2194 }
 0x247   : > { %v1162_v8 = vadd.f32 %v1161_v14, %v1154_v55  ;;  %v1213_v9 = vadd.f32 %v1212_v39, %v1203_v62  ;;  %v1214_v0 = vadd.f32 %v1212_v39, %v1204_v53  ;;  %v1174_v1 = vmul.f32 %v1166_v57, %v3650_v6  ;;  %5362 = vst [vmem:[#allocation28_spill] sm:$0xff] %v4955_v41 }
 0x248   : > { %v1215_v61 = vadd.f32 %v1212_v39, %v1205_v15  ;;  %v1216_v60 = vadd.f32 %v1212_v39, %v1206_v38  ;;  %v1181_v7 = vmul.f32 %v4907_v27, %v3657_v10  ;;  %v1182_v56 = vmul.f32 %v4907_v27, %v3659_v11 }
 0x249   : > { %1163 = vadd.xlane.f32.xlu1 %v1162_v8  ;;  %v1221_v55 = vmax.f32 %v1213_v9, 0.0  ;;  %v1222_v46 = vmax.f32 %v1214_v0, 0.0  ;;  %v1183_v57 = vmul.f32 %v4907_v27, %v3661_v12  ;;  %v1184_v36 = vmul.f32 %v4907_v27, %v3663_v13 }
 0x24a   : > { %v1223_v45 = vmax.f32 %v1215_v61, 0.0  ;;  %v1224_v47 = vmax.f32 %v1216_v60, 0.0  ;;  %v1189_v42 = vadd.f32 %v1181_v7, %v1171_v40  ;;  %v1190_v14 = vadd.f32 %v1182_v56, %v1172_v37  ;;  %v4976_v61 = vpop.xlane.xlu1 %2199 }
 0x24b   : > { %v1229_v62 = vadd.f32 %v1222_v46, %v1221_v55  ;;  %v1191_v53 = vadd.f32 %v1183_v57, %v1173_v2  ;;  %v1192_v15 = vadd.f32 %v1184_v36, %v1174_v1  ;;  %v1199_v38 = vmul.f32 %v4910_v50, %v3667_v16  ;;  %5363 = vst [vmem:[#allocation29_spill] sm:$0xff] %v4976_v61  ;;  %v4979_v46 = vpop.xlane.xlu0 %2268 }
 0x24c   : > { %v1200_v8 = vmul.f32 %v4910_v50, %v3669_v17  ;;  %v1201_v9 = vmul.f32 %v4910_v50, %v3671_v18  ;;  %v1202_v27 = vmul.f32 %v4910_v50, %v3673_v19  ;;  %v1240_v40 = vstv %s4941_s28  ;;  %5364 = vst [vmem:[#allocation30_spill] sm:$0xff] %v4979_v46  ;;  %s3446_s28 = smov 16  }
 0x24d   : > { %v1230_v37 = vadd.f32 %v1229_v62, %v1223_v45  ;;  %v1207_v0 = vadd.f32 %v1199_v38, %v1189_v42  ;;  %v1241_v2 = vmul.f32 %v1240_v40, %v3678_v23  ;;  %v1242_v1 = vmul.f32 %v1240_v40, %v3680_v24 }
 0x24e   : > { %v1208_v60 = vadd.f32 %v1200_v8, %v1190_v14  ;;  %v1209_v7 = vadd.f32 %v1201_v9, %v1191_v53  ;;  %v1210_v56 = vadd.f32 %v1202_v27, %v1192_v15  ;;  %v1243_v55 = vmul.f32 %v1240_v40, %v3682_v25 }
 0x24f   : > { %v1231_v50 = vadd.f32 %v1230_v37, %v1224_v47  ;;  %v1217_v57 = vadd.f32 %v1212_v39, %v1207_v0  ;;  %v1244_v36 = vmul.f32 %v1240_v40, %v3684_v26  ;;  %v1250_v45 = vstv %s4947_s29  ;;  %s3034_s29 = sshll.u32 %s3617_s15, 4 }
 0x250   : > { %v1218_v42 = vadd.f32 %v1212_v39, %v1208_v60  ;;  %v1219_v62 = vadd.f32 %v1212_v39, %v1209_v7  ;;  %v1220_v38 = vadd.f32 %v1212_v39, %v1210_v56  ;;  %v1251_v22 = vmul.f32 %v1250_v45, %v3687_v28  ;;  %v4988_v39 = vpop.xlane.xlu1 %2273 }
 0x251   : > { %1232 = vadd.xlane.f32.xlu0 %v1231_v50  ;;  %v1225_v61 = vmax.f32 %v1217_v57, 0.0  ;;  %v1252_v14 = vmul.f32 %v1250_v45, %v3689_v29  ;;  %v1253_v53 = vmul.f32 %v1250_v45, %v3691_v30  ;;  %v1254_v15 = vmul.f32 %v1250_v45, %v3693_v31  ;;  %5365 = vst [vmem:[#allocation31_spill] sm:$0xff] %v4988_v39 }
 0x252   : > { %v1226_v8 = vmax.f32 %v1218_v42, 0.0  ;;  %v1227_v47 = vmax.f32 %v1219_v62, 0.0  ;;  %v1228_v9 = vmax.f32 %v1220_v38, 0.0  ;;  %v1259_v27 = vadd.f32 %v1251_v22, %v1241_v2  ;;  %v4995_v42 = vpop.xlane.xlu0 %2342 }
 0x253   : > { %v1260_v37 = vadd.f32 %v1252_v14, %v1242_v1  ;;  %v1261_v0 = vadd.f32 %v1253_v53, %v1243_v55  ;;  %v1262_v60 = vadd.f32 %v1254_v15, %v1244_v36  ;;  %v1268_v7 = vstv %s4963_s7  ;;  %5366 = vst [vmem:[#allocation32_spill] sm:$0xff] %v4995_v42  ;;  %s310_s7 = scalar_lea.vmem [#allocation11], %s3034_s29 }
 0x254   : > { %v1234_v56 = vadd.f32 %v1226_v8, %v1225_v61  ;;  %v1269_v50 = vmul.f32 %v1268_v7, %v3696_v33  ;;  %v1270_v57 = vmul.f32 %v1268_v7, %v3698_v34  ;;  %v1271_v46 = vmul.f32 %v1268_v7, %v3700_v35 }
 0x255   : > { %v1272_v62 = vmul.f32 %v1268_v7, %v3707_v43  ;;  %v1286_v22 = vstv %s4974_s9  ;;  %v1245_v2 = vmul.f32 %v1240_v40, %v3644_v3  ;;  %v1246_v1 = vmul.f32 %v1240_v40, %v3646_v4  ;;  %s2914_s9 = sshll.u32 %s310_s7, 4  ;;  %s5277_s9 = int_to_ptr.vmem [resolvable:$true] %s2914_s9 }
 0x256   : > { %v1235_v61 = vadd.f32 %v1234_v56, %v1227_v47  ;;  %v1277_v55 = vadd.f32 %v1269_v50, %v1259_v27  ;;  %v1278_v36 = vadd.f32 %v1270_v57, %v1260_v37  ;;  %v1279_v38 = vadd.f32 %v1271_v46, %v1261_v0  ;;  %v5011_v27 = vpop.xlane.xlu1 %2347  ;;  %v5013_v0 = vpop.xlane.xlu0 %2416 }
 0x257   : > { %v1280_v14 = vadd.f32 %v1272_v62, %v1262_v60  ;;  %v1247_v53 = vmul.f32 %v1240_v40, %v3648_v5  ;;  %v1248_v15 = vmul.f32 %v1240_v40, %v3650_v6  ;;  %v1255_v8 = vmul.f32 %v1250_v45, %v3657_v10  ;;  %5367 = vst [vmem:[#allocation33_spill] sm:$0xff] %v5011_v27 }
 0x258   : > { %v1236_v39 = vadd.f32 %v1235_v61, %v1228_v9  ;;  %v1287_v42 = vadd.f32 %v1286_v22, %v1277_v55  ;;  %v1288_v41 = vadd.f32 %v1286_v22, %v1278_v36  ;;  %v1289_v48 = vadd.f32 %v1286_v22, %v1279_v38  ;;  %5368 = vst [vmem:[#allocation34_spill] sm:$0xff] %v5013_v0 }
 0x259   : > { %v1290_v52 = vadd.f32 %v1286_v22, %v1280_v14  ;;  %v1256_v44 = vmul.f32 %v1250_v45, %v3659_v11  ;;  %v1257_v49 = vmul.f32 %v1250_v45, %v3661_v12  ;;  %v1258_v47 = vmul.f32 %v1250_v45, %v3663_v13 }
 0x25a   : > { %1237 = vadd.xlane.f32.xlu1 %v1236_v39  ;;  %v1295_v46 = vmax.f32 %v1287_v42, 0.0  ;;  %v1296_v40 = vmax.f32 %v1288_v41, 0.0  ;;  %v1297_v37 = vmax.f32 %v1289_v48, 0.0  ;;  %v1263_v9 = vadd.f32 %v1255_v8, %v1245_v2 }
 0x25b   : > { %v1298_v60 = vmax.f32 %v1290_v52, 0.0  ;;  %v1264_v56 = vadd.f32 %v1256_v44, %v1246_v1  ;;  %v1265_v50 = vadd.f32 %v1257_v49, %v1247_v53  ;;  %v1266_v57 = vadd.f32 %v1258_v47, %v1248_v15  ;;  %v5029_v53 = vpop.xlane.xlu1 %2421 }
 0x25c   : > { %v1303_v62 = vadd.f32 %v1296_v40, %v1295_v46  ;;  %v1273_v61 = vmul.f32 %v1268_v7, %v3667_v16  ;;  %v1274_v45 = vmul.f32 %v1268_v7, %v3669_v17  ;;  %v1275_v55 = vmul.f32 %v1268_v7, %v3671_v18  ;;  %5369 = vst [vmem:[#allocation35_spill] sm:$0xff] %v5029_v53  ;;  %v5031_v46 = vpop.xlane.xlu0 %2490 }
 0x25d   : > { %v1276_v39 = vmul.f32 %v1268_v7, %v3673_v19  ;;  %v1314_v42 = vstv %s4993_s17  ;;  %v1324_v36 = vstv %s5001_s13  ;;  %v5022_v41 = vstv %s5003_s25  ;;  %5370 = vst [vmem:[#allocation36_spill] sm:$0xff] %v5031_v46  ;;  %s3179_s25 = sshll.u32 %s3501_s22, 8  ;;  %s3447_s22 = smov [#allocation11]  }
 0x25e   : > { %v1304_v48 = vadd.f32 %v1303_v62, %v1297_v37  ;;  %v1281_v52 = vadd.f32 %v1273_v61, %v1263_v9  ;;  %v1282_v44 = vadd.f32 %v1274_v45, %v1264_v56  ;;  %v1283_v49 = vadd.f32 %v1275_v55, %v1265_v50 }
 0x25f   : > { %v1284_v2 = vadd.f32 %v1276_v39, %v1266_v57  ;;  %v1315_v1 = vmul.f32 %v1314_v42, %v3678_v23  ;;  %v1316_v38 = vmul.f32 %v1314_v42, %v3680_v24  ;;  %v1317_v14 = vmul.f32 %v1314_v42, %v3682_v25 }
 0x260   : > { %v1305_v7 = vadd.f32 %v1304_v48, %v1298_v60  ;;  %v1291_v15 = vadd.f32 %v1286_v22, %v1281_v52  ;;  %v1292_v8 = vadd.f32 %v1286_v22, %v1282_v44  ;;  %v1293_v47 = vadd.f32 %v1286_v22, %v1283_v49 }
 0x261   : > { %v1294_v40 = vadd.f32 %v1286_v22, %v1284_v2  ;;  %v1318_v37 = vmul.f32 %v1314_v42, %v3684_v26  ;;  %v1325_v9 = vmul.f32 %v1324_v36, %v3687_v28  ;;  %v1326_v56 = vmul.f32 %v1324_v36, %v3689_v29 }
 0x262   : > { %1306 = vadd.xlane.f32.xlu0 %v1305_v7  ;;  %v1299_v50 = vmax.f32 %v1291_v15, 0.0  ;;  %v1300_v57 = vmax.f32 %v1292_v8, 0.0  ;;  %v1301_v62 = vmax.f32 %v1293_v47, 0.0  ;;  %v1327_v61 = vmul.f32 %v1324_v36, %v3691_v30 }
 0x263   : > { %v1302_v60 = vmax.f32 %v1294_v40, 0.0  ;;  %v1328_v45 = vmul.f32 %v1324_v36, %v3693_v31  ;;  %v1333_v55 = vadd.f32 %v1325_v9, %v1315_v1  ;;  %v1334_v39 = vadd.f32 %v1326_v56, %v1316_v38  ;;  %v5049_v1 = vpop.xlane.xlu1 %2495  ;;  %v5052_v40 = vpop.xlane.xlu0 %2564 }
 0x264   : > { %v1308_v48 = vadd.f32 %v1300_v57, %v1299_v50  ;;  %v1335_v22 = vadd.f32 %v1327_v61, %v1317_v14  ;;  %v1343_v52 = vmul.f32 %v5022_v41, %v3696_v33  ;;  %v1344_v44 = vmul.f32 %v5022_v41, %v3698_v34  ;;  %5371 = vst [vmem:[#allocation37_spill] sm:$0xff] %v5049_v1 }
 0x265   : > { %v1336_v49 = vadd.f32 %v1328_v45, %v1318_v37  ;;  %v1345_v2 = vmul.f32 %v5022_v41, %v3700_v35  ;;  %v1346_v7 = vmul.f32 %v5022_v41, %v3707_v43  ;;  %v1360_v15 = vstv %s5024_s8  ;;  %5372 = vst [vmem:[#allocation38_spill] sm:$0xff] %v5052_v40 }
 0x266   : > { %v1309_v38 = vadd.f32 %v1308_v48, %v1301_v62  ;;  %v1351_v14 = vadd.f32 %v1343_v52, %v1333_v55  ;;  %v1352_v8 = vadd.f32 %v1344_v44, %v1334_v39  ;;  %v1319_v47 = vmul.f32 %v1314_v42, %v3644_v3 }
 0x267   : > { %v1353_v9 = vadd.f32 %v1345_v2, %v1335_v22  ;;  %v1354_v37 = vadd.f32 %v1346_v7, %v1336_v49  ;;  %v1320_v56 = vmul.f32 %v1314_v42, %v3646_v4  ;;  %v1321_v50 = vmul.f32 %v1314_v42, %v3648_v5 }
 0x268   : > { %v1310_v57 = vadd.f32 %v1309_v38, %v1302_v60  ;;  %v1361_v61 = vadd.f32 %v1360_v15, %v1351_v14  ;;  %v1362_v45 = vadd.f32 %v1360_v15, %v1352_v8  ;;  %v1322_v53 = vmul.f32 %v1314_v42, %v3650_v6  ;;  %v5063_v38 = vpop.xlane.xlu1 %2569 }
 0x269   : > { %v1363_v62 = vadd.f32 %v1360_v15, %v1353_v9  ;;  %v1364_v55 = vadd.f32 %v1360_v15, %v1354_v37  ;;  %v1329_v39 = vmul.f32 %v1324_v36, %v3657_v10  ;;  %v1330_v48 = vmul.f32 %v1324_v36, %v3659_v11  ;;  %5373 = vst [vmem:[#allocation39_spill] sm:$0xff] %v5063_v38 }
 0x26a   : > { %1311 = vadd.xlane.f32.xlu1 %v1310_v57  ;;  %v1369_v22 = vmax.f32 %v1361_v61, 0.0  ;;  %v1370_v52 = vmax.f32 %v1362_v45, 0.0  ;;  %v1331_v44 = vmul.f32 %v1324_v36, %v3661_v12  ;;  %v1332_v60 = vmul.f32 %v1324_v36, %v3663_v13  ;;  %v5069_v57 = vpop.xlane.xlu0 %2638 }
 0x26b   : > { %v1371_v49 = vmax.f32 %v1363_v62, 0.0  ;;  %v1372_v2 = vmax.f32 %v1364_v55, 0.0  ;;  %v1337_v7 = vadd.f32 %v1329_v39, %v1319_v47  ;;  %v1338_v42 = vadd.f32 %v1330_v48, %v1320_v56  ;;  %5374 = vst [vmem:[#allocation40_spill] sm:$0xff] %v5069_v57 }
 0x26c   : > { %v1377_v14 = vadd.f32 %v1370_v52, %v1369_v22  ;;  %v1339_v8 = vadd.f32 %v1331_v44, %v1321_v50  ;;  %v1340_v9 = vadd.f32 %v1332_v60, %v1322_v53  ;;  %v1347_v37 = vmul.f32 %v5022_v41, %v3667_v16 }
 0x26d   : > { %v1348_v61 = vmul.f32 %v5022_v41, %v3669_v17  ;;  %v1349_v36 = vmul.f32 %v5022_v41, %v3671_v18  ;;  %v1350_v47 = vmul.f32 %v5022_v41, %v3673_v19  ;;  %v1388_v56 = vstv %s5047_s11 }
 0x26e   : > { %v1378_v50 = vadd.f32 %v1377_v14, %v1371_v49  ;;  %v1355_v53 = vadd.f32 %v1347_v37, %v1337_v7  ;;  %v1389_v45 = vmul.f32 %v1388_v56, %v3678_v23  ;;  %v1390_v62 = vmul.f32 %v1388_v56, %v3680_v24  ;;  %v5086_v14 = vpop.xlane.xlu1 %2643 }
 0x26f   : > { %v1356_v55 = vadd.f32 %v1348_v61, %v1338_v42  ;;  %v1357_v39 = vadd.f32 %v1349_v36, %v1339_v8  ;;  %v1358_v48 = vadd.f32 %v1350_v47, %v1340_v9  ;;  %v1391_v22 = vmul.f32 %v1388_v56, %v3682_v25  ;;  %5375 = vst [vmem:[#allocation41_spill] sm:$0xff] %v5086_v14  ;;  %v5091_v9 = vpop.xlane.xlu0 %2712 }
 0x270   : > { %v1379_v52 = vadd.f32 %v1378_v50, %v1372_v2  ;;  %v1365_v44 = vadd.f32 %v1360_v15, %v1355_v53  ;;  %v1392_v60 = vmul.f32 %v1388_v56, %v3684_v26  ;;  %v1398_v38 = vstv %s5057_s14  ;;  %5376 = vst [vmem:[#allocation42_spill] sm:$0xff] %v5091_v9  ;;  %s5282_s14 = scalar_lea.hbm %s5331_s5, %s3179_s25 }
 0x271   : > { %v1366_v41 = vadd.f32 %v1360_v15, %v1356_v55  ;;  %v1367_v1 = vadd.f32 %v1360_v15, %v1357_v39  ;;  %v1368_v49 = vadd.f32 %v1360_v15, %v1358_v48  ;;  %v1399_v7 = vmul.f32 %v1398_v38, %v3687_v28 }
 0x272   : > { %1380 = vadd.xlane.f32.xlu0 %v1379_v52  ;;  %v1373_v37 = vmax.f32 %v1365_v44, 0.0  ;;  %v1400_v42 = vmul.f32 %v1398_v38, %v3689_v29  ;;  %v1401_v8 = vmul.f32 %v1398_v38, %v3691_v30  ;;  %v1402_v2 = vmul.f32 %v1398_v38, %v3693_v31 }
 0x273   : > { %v1374_v61 = vmax.f32 %v1366_v41, 0.0  ;;  %v1375_v36 = vmax.f32 %v1367_v1, 0.0  ;;  %v1376_v47 = vmax.f32 %v1368_v49, 0.0  ;;  %v1407_v15 = vadd.f32 %v1399_v7, %v1389_v45  ;;  %v5109_v7 = vpop.xlane.xlu1 %2717 }
 0x274   : > { %v1408_v50 = vadd.f32 %v1400_v42, %v1390_v62  ;;  %v1409_v53 = vadd.f32 %v1401_v8, %v1391_v22  ;;  %v1410_v55 = vadd.f32 %v1402_v2, %v1392_v60  ;;  %v1416_v39 = vstv %s5067_s16  ;;  %v5107_v62 = vpop.xlane.xlu0 %418  ;;  %5378 = vst [vmem:[#allocation44_spill] sm:$0xff] %v5109_v7  ;;  %s2901_s16 = scalar_lea.sflag [#allocation4], %s3617_s15 }
 0x275   : > { %v1382_v48 = vadd.f32 %v1374_v61, %v1373_v37  ;;  %v1417_v52 = vmul.f32 %v1416_v39, %v3696_v33  ;;  %v1418_v44 = vmul.f32 %v1416_v39, %v3698_v34  ;;  %v1419_v14 = vmul.f32 %v1416_v39, %v3700_v35  ;;  %5377 = vst [vmem:[#allocation43_spill] sm:$0xff] %v5107_v62 }
 0x276   : > { %v1420_v57 = vmul.f32 %v1416_v39, %v3707_v43  ;;  %v1434_v9 = vstv %s5080_s10  ;;  %v1393_v1 = vmul.f32 %v1388_v56, %v3644_v3  ;;  %v1394_v45 = vmul.f32 %v1388_v56, %v3646_v4  ;;  %s3355_s10 = scalar_lea.vmem %s5277_s9, 256 }
 0x277   : > { %v1383_v22 = vadd.f32 %v1382_v48, %v1375_v36  ;;  %v1425_v60 = vadd.f32 %v1417_v52, %v1407_v15  ;;  %v1426_v41 = vadd.f32 %v1418_v44, %v1408_v50  ;;  %v1427_v49 = vadd.f32 %v1419_v14, %v1409_v53  ;;  %v5117_v53 = vpop.xlane.xlu1 %492  ;;  %p3356_p10 = scmp.ne.s32.totalorder %s5277_s9, %s3355_s10 }
 0x278   : > { %v1428_v37 = vadd.f32 %v1420_v57, %v1410_v55  ;;  %v1395_v42 = vmul.f32 %v1388_v56, %v3648_v5  ;;  %v1396_v8 = vmul.f32 %v1388_v56, %v3650_v6  ;;  %v1403_v2 = vmul.f32 %v1398_v38, %v3657_v10  ;;  %v5119_v44 = vpop.xlane.xlu0 %423 }
 0x279   : > { %v1384_v61 = vadd.f32 %v1383_v22, %v1376_v47  ;;  %v1435_v27 = vadd.f32 %v1434_v9, %v1425_v60  ;;  %v1436_v40 = vadd.f32 %v1434_v9, %v1426_v41  ;;  %v1437_v46 = vadd.f32 %v1434_v9, %v1427_v49  ;;  %p3357_p2 = pnand %p3356_p10, %p5404_p1 }
 0x27a   : > { %v1438_v0 = vadd.f32 %v1434_v9, %v1428_v37  ;;  %v1404_v62 = vmul.f32 %v1398_v38, %v3659_v11  ;;  %v1405_v36 = vmul.f32 %v1398_v38, %v3661_v12  ;;  %v1406_v14 = vmul.f32 %v1398_v38, %v3663_v13 }
 0x27b   : > { %1385 = vadd.xlane.f32.xlu1 %v1384_v61  ;;  %v1443_v57 = vmax.f32 %v1435_v27, 0.0  ;;  %v1444_v15 = vmax.f32 %v1436_v40, 0.0  ;;  %v1445_v56 = vmax.f32 %v1437_v46, 0.0  ;;  %v1411_v50 = vadd.f32 %v1403_v2, %v1393_v1  ;;  %p3358_p7 = pneg %p3357_p2 }
 0x27c   : > { %v1446_v47 = vmax.f32 %v1438_v0, 0.0  ;;  %v1412_v55 = vadd.f32 %v1404_v62, %v1394_v45  ;;  %v1413_v48 = vadd.f32 %v1405_v36, %v1395_v42  ;;  %v1414_v52 = vadd.f32 %v1406_v14, %v1396_v8 }
 0x27d   : > { %v1451_v22 = vadd.f32 %v1444_v15, %v1443_v57  ;;  %v1421_v60 = vmul.f32 %v1416_v39, %v3667_v16  ;;  %v1422_v38 = vmul.f32 %v1416_v39, %v3669_v17  ;;  %v1423_v27 = vmul.f32 %v1416_v39, %v3671_v18  ;;  %v5135_v57 = vpop.xlane.xlu1 %497 }
 0x27e   : > { %v1424_v40 = vmul.f32 %v1416_v39, %v3673_v19  ;;  %v1462_v41 = vstv %s5097_s12  ;;  %v1472_v46 = vstv %s5103_s1  ;;  %v5128_v1 = vstv %s5105_s23  ;;  %s3359_s12 = sshll.u32 %s3447_s22, 4  ;;  %s3360_s12 = int_to_ptr.vmem [resolvable:$false] %s3359_s12 }
 0x27f   : > { %v1452_v0 = vadd.f32 %v1451_v22, %v1445_v56  ;;  %v1429_v45 = vadd.f32 %v1421_v60, %v1411_v50  ;;  %v1430_v62 = vadd.f32 %v1422_v38, %v1412_v55  ;;  %v1431_v49 = vadd.f32 %v1423_v27, %v1413_v48  ;;  %v5140_v55 = vpop.xlane.xlu0 %566  ;;  %s3361_s1 = scalar_lea.vmem %s3360_s12, 512  ;;  %p3362_p3 = scmp.lt.s32.totalorder %s5277_s9, %s3360_s12 }
 0x280   : > { %v1432_v37 = vadd.f32 %v1424_v40, %v1414_v52  ;;  %v1463_v42 = vmul.f32 %v1462_v41, %v3678_v23  ;;  %v1464_v8 = vmul.f32 %v1462_v41, %v3680_v24  ;;  %v1465_v2 = vmul.f32 %v1462_v41, %v3682_v25  ;;  %p3363_p0 = scmp.lt.s32.totalorder %s3361_s1, %s3355_s10 }
 0x281   : > { %v1453_v61 = vadd.f32 %v1452_v0, %v1446_v47  ;;  %v1439_v36 = vadd.f32 %v1434_v9, %v1429_v45  ;;  %v1440_v39 = vadd.f32 %v1434_v9, %v1430_v62  ;;  %v1441_v14 = vadd.f32 %v1434_v9, %v1431_v49  ;;  %v5154_v49 = vpop.xlane.xlu1 %571 }
 0x282   : > { %v1442_v15 = vadd.f32 %v1434_v9, %v1432_v37  ;;  %v1466_v7 = vmul.f32 %v1462_v41, %v3684_v26  ;;  %v1473_v56 = vmul.f32 %v1472_v46, %v3687_v28  ;;  %v1474_v50 = vmul.f32 %v1472_v46, %v3689_v29  ;;  %p3364_p11 = por %p3363_p0, %p3362_p3 }
 0x283   : > { %1454 = vadd.xlane.f32.xlu0 %v1453_v61  ;;  %v1447_v23 = vmax.f32 %v1439_v36, 0.0  ;;  %v1448_v24 = vmax.f32 %v1440_v39, 0.0  ;;  %v1449_v25 = vmax.f32 %v1441_v14, 0.0  ;;  %v1475_v47 = vmul.f32 %v1472_v46, %v3691_v30 }
 0x284   : > { %v1450_v48 = vmax.f32 %v1442_v15, 0.0  ;;  %v1476_v52 = vmul.f32 %v1472_v46, %v3693_v31  ;;  %v1481_v22 = vadd.f32 %v1473_v56, %v1463_v42  ;;  %v1482_v9 = vadd.f32 %v1474_v50, %v1464_v8  ;;  %p3365_p5 = pnand %p3364_p11, %p3358_p7 }
 0x285   : > { %v1456_v60 = vadd.f32 %v1448_v24, %v1447_v23  ;;  %v1483_v26 = vadd.f32 %v1475_v47, %v1465_v2  ;;  %v1491_v28 = vmul.f32 %v5128_v1, %v3696_v33  ;;  %v1492_v29 = vmul.f32 %v5128_v1, %v3698_v34 }
 0x286   : > { %v1484_v38 = vadd.f32 %v1476_v52, %v1466_v7  ;;  %v1493_v27 = vmul.f32 %v5128_v1, %v3700_v35  ;;  %v1494_v30 = vmul.f32 %v5128_v1, %v3707_v43  ;;  %v1508_v40 = vstv %s5130_s26  ;;  %v5158_v7 = vpop.xlane.xlu0 %640 }
 0x287   : > { %v1457_v0 = vadd.f32 %v1456_v60, %v1449_v25  ;;  %v1499_v31 = vadd.f32 %v1491_v28, %v1481_v22  ;;  %v1500_v45 = vadd.f32 %v1492_v29, %v1482_v9  ;;  %v1467_v62 = vmul.f32 %v1462_v41, %v3644_v3 }
 0x288   : > { %v1501_v37 = vadd.f32 %v1493_v27, %v1483_v26  ;;  %v1502_v33 = vadd.f32 %v1494_v30, %v1484_v38  ;;  %v1468_v42 = vmul.f32 %v1462_v41, %v3646_v4  ;;  %v1469_v34 = vmul.f32 %v1462_v41, %v3648_v5 }
 0x289   : > { %v1458_v35 = vadd.f32 %v1457_v0, %v1450_v48  ;;  %v1509_v8 = vadd.f32 %v1508_v40, %v1499_v31  ;;  %v1510_v2 = vadd.f32 %v1508_v40, %v1500_v45  ;;  %v1470_v43 = vmul.f32 %v1462_v41, %v3650_v6 }
 0x28a   : > { %v1511_v61 = vadd.f32 %v1508_v40, %v1501_v37  ;;  %v1512_v36 = vadd.f32 %v1508_v40, %v1502_v33  ;;  %v1477_v39 = vmul.f32 %v1472_v46, %v3657_v10  ;;  %v1478_v3 = vmul.f32 %v1472_v46, %v3659_v11  ;;  %v646_v10 = vpop.xlane.xlu1 %645 }
 0x28b   : > { %1459 = vadd.xlane.f32.xlu1 %v1458_v35  ;;  %v1517_v14 = vmax.f32 %v1509_v8, 0.0  ;;  %v1518_v15 = vmax.f32 %v1510_v2, 0.0  ;;  %v1479_v4 = vmul.f32 %v1472_v46, %v3661_v12  ;;  %v1480_v5 = vmul.f32 %v1472_v46, %v3663_v13  ;;  %v715_v13 = vpop.xlane.xlu0 %714  ;;  %v5381_v8 = vld [vmem:[#allocation23_spill] sm:$0xff]  ;;  %v5382_v2 = vld [vmem:[#allocation22_spill] sm:$0xff] }
 0x28c   : > { %v1519_v56 = vmax.f32 %v1511_v61, 0.0  ;;  %v1520_v50 = vmax.f32 %v1512_v36, 0.0  ;;  %v1485_v23 = vadd.f32 %v1477_v39, %v1467_v62  ;;  %v1486_v24 = vadd.f32 %v1478_v3, %v1468_v42  ;;  %v5384_v61 = vld [vmem:[#allocation25_spill] sm:$0xff] }
 0x28d   : > { %v1525_v25 = vadd.f32 %v1518_v15, %v1517_v14  ;;  %v1487_v47 = vadd.f32 %v1479_v4, %v1469_v34  ;;  %v1488_v6 = vadd.f32 %v1480_v5, %v1470_v43  ;;  %v1495_v41 = vmul.f32 %v5128_v1, %v3667_v16  ;;  %v5379_v34 = vld [vmem:[#allocation21_spill] sm:$0xff]  ;;  %v5385_v14 = vld [vmem:[#allocation24_spill] sm:$0xff]  ;;  %v5386_v5 = vld [vmem:[#allocation26_spill] sm:$0xff] }
 0x28e   : > { %v1496_v11 = vmul.f32 %v5128_v1, %v3669_v17  ;;  %v1497_v48 = vmul.f32 %v5128_v1, %v3671_v18  ;;  %v1498_v12 = vmul.f32 %v5128_v1, %v3673_v19  ;;  %v720_v17 = vpop.xlane.xlu1 %719  ;;  %vm2722_vm1 = vcmask 15360  }
 0x28f   : > { %v1526_v46 = vadd.f32 %v1525_v25, %v1519_v56  ;;  %v1503_v52 = vadd.f32 %v1495_v41, %v1485_v23  ;;  %v789_v18 = vpop.xlane.xlu0 %788  ;;  %vm2725_vm2 = vcmask 23552   ;;  %v2765_v31 = vsel %vm2719_vm0, %v4803_v63, %v4827_v21  ;;  %v5388_v25 = vld [vmem:[#allocation30_spill] sm:$0xff] }
 0x290   : > { %v1504_v22 = vadd.f32 %v1496_v11, %v1486_v24  ;;  %v1505_v9 = vadd.f32 %v1497_v48, %v1487_v47  ;;  %v1506_v60 = vadd.f32 %v1498_v12, %v1488_v6  ;;  %v2764_v45 = vsel %vm2719_vm0, %v4798_v20, %v4812_v54  ;;  %v5380_v54 = vld [vmem:[#allocation20_spill] sm:$0xff] }
 0x291   : > { %v1527_v26 = vadd.f32 %v1526_v46, %v1520_v50  ;;  %v1513_v28 = vadd.f32 %v1508_v40, %v1503_v52  ;;  %vm2728_vm3 = vcmask 31744   ;;  %v2767_v62 = vsel %vm2722_vm1, %v2765_v31, %v4845_v58  ;;  %v5391_v52 = vld [vmem:[#allocation34_spill] sm:$0xff] }
 0x292   : > { %v1514_v29 = vadd.f32 %v1508_v40, %v1504_v22  ;;  %v1515_v16 = vadd.f32 %v1508_v40, %v1505_v9  ;;  %v1516_v38 = vadd.f32 %v1508_v40, %v1506_v60  ;;  %v2766_v37 = vsel %vm2722_vm1, %v2764_v45, %v4830_v51  ;;  %v794_v63 = vpop.xlane.xlu1 %793  ;;  %v5392_v9 = vld [vmem:[#allocation29_spill] sm:$0xff]  ;;  %v5399_v45 = vld [vmem:[#allocation42_spill] sm:$0xff] }
 0x293   : > { %1528 = vadd.xlane.f32.xlu0 %v1527_v26  ;;  %v1521_v27 = vmax.f32 %v1513_v28, 0.0  ;;  %vm2731_vm4 = vcmask 39936   ;;  %v2769_v33 = vsel %vm2725_vm2, %v2767_v62, %v4868_v59  ;;  %v2768_v42 = vsel %vm2725_vm2, %v2766_v37, %v4851_v32  ;;  %v863_v58 = vpop.xlane.xlu0 %862  ;;  %v5383_v59 = vld [vmem:[#allocation43_spill] sm:$0xff]  ;;  %v5393_v26 = vld [vmem:[#allocation36_spill] sm:$0xff]  ;;  %v5400_v37 = vld [vmem:[#allocation37_spill] sm:$0xff] }
 0x294   : > { %v1522_v30 = vmax.f32 %v1514_v29, 0.0  ;;  %v1523_v0 = vmax.f32 %v1515_v16, 0.0  ;;  %v1524_v19 = vmax.f32 %v1516_v38, 0.0  ;;  %vm2734_vm5 = vcmask 48128   ;;  %v5394_v29 = vld [vmem:[#allocation31_spill] sm:$0xff]  ;;  %v5395_v38 = vld [vmem:[#allocation38_spill] sm:$0xff] }
 0x295   : > { %v2771_v20 = vsel %vm2728_vm3, %v2769_v33, %v5379_v34  ;;  %v2770_v35 = vsel %vm2728_vm3, %v2768_v42, %v5380_v54  ;;  %vm2737_vm6 = vcmask 56320   ;;  %v2720_v32 = vsel %vm2719_vm0, %v5383_v59, %v5117_v53  ;;  %v5401_v42 = vld [vmem:[#allocation39_spill] sm:$0xff] }
 0x296   : > { %v1530_v1 = vadd.f32 %v1522_v30, %v1521_v27  ;;  %v2773_v51 = vsel %vm2731_vm4, %v2771_v20, %v5381_v8  ;;  %v2772_v43 = vsel %vm2731_vm4, %v2770_v35, %v5382_v2  ;;  %vm2740_vm7 = vcmask 64512   ;;  %v5403_v20 = vld [vmem:[#allocation44_spill] sm:$0xff]  ;;  %v2807_v8 = vld [vmem:[#allocation9 + $0x10] sm:$0xff]  ;;  %v2808_v2 = vld [vmem:[#allocation9 + $0x18] sm:$0xff] }
 0x297   : > { %v2775_v36 = vsel %vm2734_vm5, %v2773_v51, %v5384_v61  ;;  %v2721_v39 = vsel %vm2719_vm0, %v5119_v44, %v5135_v57  ;;  %v2723_v3 = vsel %vm2722_vm1, %v2720_v32, %v5140_v55  ;;  %v2774_v15 = vsel %vm2734_vm5, %v2772_v43, %v5385_v14  ;;  %v5387_v57 = vld [vmem:[#allocation28_spill] sm:$0xff] }
 0x298   : > { %v1531_v40 = vadd.f32 %v1530_v1, %v1523_v0  ;;  %vm2743_vm8 = vcmask 72704   ;;  %v2724_v4 = vsel %vm2722_vm1, %v2721_v39, %v5154_v49  ;;  %v2726_v53 = vsel %vm2725_vm2, %v2723_v3, %v5158_v7  ;;  %v868_v49 = vpop.xlane.xlu1 %867  ;;  %v5397_v0 = vld [vmem:[#allocation40_spill] sm:$0xff]  ;;  %v5398_v1 = vld [vmem:[#allocation35_spill] sm:$0xff] }
 0x299   : > { %v2776_v56 = vsel %vm2737_vm6, %v2774_v15, %v5386_v5  ;;  %vm2746_vm9 = vcmask 80896   ;;  %v2727_v50 = vsel %vm2725_vm2, %v2724_v4, %v646_v10  ;;  %v2729_v44 = vsel %vm2728_vm3, %v2726_v53, %v715_v13  ;;  %v5389_v10 = vld [vmem:[#allocation32_spill] sm:$0xff]  ;;  %v5390_v13 = vld [vmem:[#allocation27_spill] sm:$0xff] }
 0x29a   : > { %v1532_v21 = vadd.f32 %v1531_v40, %v1524_v19  ;;  %v2778_v55 = vsel %vm2740_vm7, %v2776_v56, %v5387_v57  ;;  %vm2749_vm10 = vcmask 89088   ;;  %v2730_v23 = vsel %vm2728_vm3, %v2727_v50, %v720_v17  ;;  %v5396_v17 = vld [vmem:[#allocation33_spill] sm:$0xff]  ;;  %v2805_v35 = vld [vmem:[#allocation9] sm:$0xff] }
 0x29b   : > { %v2732_v24 = vsel %vm2731_vm4, %v2729_v44, %v789_v18  ;;  %v2780_v7 = vsel %vm2743_vm8, %v2778_v55, %v5388_v25  ;;  %vm2752_vm11 = vcmask 97280   ;;  %v2733_v47 = vsel %vm2731_vm4, %v2730_v23, %v794_v63 }
 0x29c   : > { %1533 = vadd.xlane.f32.xlu1 %v1532_v21  ;;  %v2735_v6 = vsel %vm2734_vm5, %v2732_v24, %v863_v58  ;;  %v937_v41 = vpop.xlane.xlu0 %936  ;;  %v2782_v11 = vsel %vm2746_vm9, %v2780_v7, %v5389_v10  ;;  %vm2755_vm12 = vcmask 105472   ;;  %v2736_v48 = vsel %vm2734_vm5, %v2733_v47, %v868_v49  ;;  %v5402_v21 = vld [vmem:[#allocation41_spill] sm:$0xff] }
 0x29d   : > { %v2738_v12 = vsel %vm2737_vm6, %v2735_v6, %v937_v41  ;;  %v2777_v46 = vsel %vm2737_vm6, %v2775_v36, %v5390_v13  ;;  %v2784_v22 = vsel %vm2749_vm10, %v2782_v11, %v5391_v52  ;;  %vm2758_vm13 = vcmask 113664   ;;  %v2806_v58 = vld [vmem:[#allocation9 + $0x8] sm:$0xff] }
 0x29e   : > { %v2779_v60 = vsel %vm2740_vm7, %v2777_v46, %v5392_v9  ;;  %v2786_v28 = vsel %vm2752_vm11, %v2784_v22, %v5393_v26  ;;  %vm2761_vm14 = vcmask 121856   ;;  %v3197_v51 = vpack.c.bf16 %v2806_v58, %v2805_v35 }
 0x29f   : > { %v2781_v16 = vsel %vm2743_vm8, %v2779_v60, %v5394_v29  ;;  %v2788_v27 = vsel %vm2755_vm12, %v2786_v28, %v5395_v38  ;;  %v3201_v43 = vpack.c.bf16 %v2808_v2, %v2807_v8  ;;  %vm2802_vm15 = vcmask 130048   ;;  %v3169_v29 = vld [vmem:[%s5330_s4] ss:$0 sm:$0xff] }
 0x2a0   : > { %v2783_v30 = vsel %vm2746_vm9, %v2781_v16, %v5396_v17  ;;  %v2790_v18 = vsel %vm2758_vm13, %v2788_v27, %v5397_v0  ;;  %3198 = vmatprep.subr.bf16.mxu0 %v3197_v51  ;;  %vm2816_vm0 = vcmask 261120  }
 0x2a1   : > { %v2785_v31 = vsel %vm2749_vm10, %v2783_v30, %v5398_v1  ;;  %v2792_v40 = vsel %vm2761_vm14, %v2790_v18, %v5399_v45  ;;  %3200 = vmatpush3.bf16.msra.mxu0 %v3197_v51 }
 0x2a2   : > { %v2787_v33 = vsel %vm2752_vm11, %v2785_v31, %v5400_v37  ;;  %3202 = vmatprep.subr.bf16.mxu0 %v3201_v43 }
 0x2a3   : > { %v2789_v63 = vsel %vm2755_vm12, %v2787_v33, %v5401_v42 }
 0x2a4   : > { %v2791_v34 = vsel %vm2758_vm13, %v2789_v63, %v5402_v21 }
 0x2a5   : > { %v942_v19 = vpop.xlane.xlu1 %941  ;;  %v2793_v54 = vsel %vm2761_vm14, %v2791_v34, %v5403_v20  ;;  %3204 = vmatpush3.bf16.msra.mxu0 %v3201_v43 }
 0x2a6   : > { %v2739_v62 = vsel %vm2737_vm6, %v2736_v48, %v942_v19 }
 0x2a9   : > { %2796 = vrot.lane.b32.xlu0 %v2792_v40, %s3446_s28 }
 0x2ad   : > { %2798 = vrot.lane.b32.xlu1 %v2793_v54, %s3446_s28  ;;  %v1011_v59 = vpop.xlane.xlu0 %1010 }
 0x2ae   : > { %v2741_v32 = vsel %vm2740_vm7, %v2738_v12, %v1011_v59 }
 0x2b5   : > { %v1016_v61 = vpop.xlane.xlu1 %1015 }
 0x2b6   : > { %v2742_v36 = vsel %vm2740_vm7, %v2739_v62, %v1016_v61 }
 0x2bd   : > { %v1085_v39 = vpop.xlane.xlu0 %1084 }
 0x2be   : > { %v2744_v3 = vsel %vm2743_vm8, %v2741_v32, %v1085_v39 }
 0x2c6   : > { %v1090_v14 = vpop.xlane.xlu1 %1089 }
 0x2c7   : > { %v2745_v15 = vsel %vm2743_vm8, %v2742_v36, %v1090_v14 }
 0x2ce   : > { %v1159_v4 = vpop.xlane.xlu0 %1158 }
 0x2cf   : > { %v2747_v53 = vsel %vm2746_vm9, %v2744_v3, %v1159_v4 }
 0x2d6   : > { %v1164_v5 = vpop.xlane.xlu1 %1163 }
 0x2d7   : > { %v2748_v56 = vsel %vm2746_vm9, %v2745_v15, %v1164_v5 }
 0x2de   : > { %v1233_v50 = vpop.xlane.xlu0 %1232 }
 0x2df   : > { %v2750_v24 = vsel %vm2749_vm10, %v2747_v53, %v1233_v50 }
 0x2e7   : > { %v1238_v57 = vpop.xlane.xlu1 %1237 }
 0x2e8   : > { %v2751_v41 = vsel %vm2749_vm10, %v2748_v56, %v1238_v57 }
 0x2ef   : > { %v1307_v44 = vpop.xlane.xlu0 %1306 }
 0x2f0   : > { %v2753_v25 = vsel %vm2752_vm11, %v2750_v24, %v1307_v44 }
 0x2f7   : > { %v1312_v23 = vpop.xlane.xlu1 %1311 }
 0x2f8   : > { %v2754_v48 = vsel %vm2752_vm11, %v2751_v41, %v1312_v23 }
 0x2ff   : > { %v1381_v55 = vpop.xlane.xlu0 %1380 }
 0x300   : > { %v2756_v47 = vsel %vm2755_vm12, %v2753_v25, %v1381_v55 }
 0x308   : > { %v1386_v7 = vpop.xlane.xlu1 %1385 }
 0x309   : > { %v2757_v52 = vsel %vm2755_vm12, %v2754_v48, %v1386_v7 }
 0x310   : > { %v1455_v49 = vpop.xlane.xlu0 %1454 }
 0x311   : > { %v2759_v10 = vsel %vm2758_vm13, %v2756_v47, %v1455_v49 }
 0x318   : > { %v1460_v11 = vpop.xlane.xlu1 %1459 }
 0x319   : > { %v2760_v9 = vsel %vm2758_vm13, %v2757_v52, %v1460_v11 }
 0x320   : > { %v1529_v6 = vpop.xlane.xlu0 %1528 }
 0x321   : > { %v2762_v12 = vsel %vm2761_vm14, %v2759_v10, %v1529_v6 }
 0x324   : > { %v2797_v13 = vpop.permute.xlu0 %2796 }
 0x325   : > { %v2803_v46 = vsel %vm2802_vm15, %v2762_v12, %v2797_v13 }
 0x326   : > { %3194 = vmatprep.mubr.msk.f32.mxu0 %vm2816_vm0, %v2803_v46 }
 0x329   : > { %v1534_v22 = vpop.xlane.xlu1 %1533 }
 0x32a   : > { %v2763_v60 = vsel %vm2761_vm14, %v2760_v9, %v1534_v22 }
 0x32d   : > { %v2799_v26 = vpop.permute.xlu1 %2798 }
 0x32e   : > { %v2804_v28 = vsel %vm2802_vm15, %v2763_v60, %v2799_v26 }
 0x32f   : > { %3195 = vmatmul.mubr.msk.f32.vlgmr.msra.gmra.mrb[0].mxu0 %vm2816_vm0, %v2804_v28 }
 0x402   : > { %v3196_v16 = vpop.f32.mrb[0].mxu0 }
 0x403   : > { %v2895_v38 = vadd.f32 %v3196_v16, %v3169_v29  ;;  %v2889_v27 = vpop.f32.mrb[1].mxu0 }
 0x404   : > { %v2890_v17 = vadd.f32 %v3169_v29, %v2889_v27 }
 0x405   : > { %2899 = vst [vmem:[%s310_s7 + $0x8] sm:$0xff] %v2895_v38 }
 0x406   : > { %2898 = vst [vmem:[%s310_s7] sm:$0xff] %v2890_v17 }
 0x407   : > { %3368 = shalt.err (!%p3365_p5)
}
 0x408   : > { %s3369_s23 = scalar_lea.hbm %s5282_s14, 256  ;;  %s3373_s29 = scalar_lea.hbm %s5331_s5, 512 }
 0x409   : > { %p3370_p6 = scmp.ne.s32.totalorder %s5282_s14, %s3369_s23  ;;  %p3374_p8 = scmp.lt.u32.totalorder %s5282_s14, %s5331_s5 }
 0x40a   : > { %p3375_p9 = scmp.lt.u32.totalorder %s3373_s29, %s3369_s23  ;;  %p3377_p2 = scmp.lt.u32.totalorder %s3369_s23, %s5282_s14 }
 0x40b   : > { %p3371_p12 = pnand %p3370_p6, %p5404_p1 }
 0x40c   : > { %p3376_p10 = por %p3375_p9, %p3374_p8 }
 0x40d   : > { %p3372_p13 = pneg %p3371_p12 }
 0x40e   : > { %p3378_p7 = por %p3377_p2, %p3376_p10 }
 0x410   : > { %p3379_p3 = pnand %p3378_p7, %p3372_p13 }
 0x412   : > { %3382 = shalt.err (!%p3379_p3)
}
 0x413   : > { %s3448_s13 = smov 128   ;;  %s3449_s25 = smov 8  }
 0x414   : > { %3228 = dma.vmem_to_hbm [thread:$0]  (%p5404_p1), %s5277_s9, 256, %s5282_s14, %s2901_s16, %s3448_s13, %s3448_s13, %s3449_s25  }
 0x415 PF: > { %s2929_s8 = sand.u32 1, %s3421_s18   ;;  %p5405_p0 = scmp.ne.s32.totalorder %s5341_s6, 0 }
 0x416   : > { %s2930_s11 = scalar_lea.sflag [#allocation4], %s2929_s8 }
 0x417   : > { %p3241_p11 = pnand %p3024_p4, %p5405_p0 }
 0x419   : > { %3416 = dma.done.wait (!%p3241_p11), %s2930_s11, 256  }
 0x41a   : > { %3418 = vsyncadd (!%p3241_p11), %s2930_s11, 4294967040  ;;  %p21_p5 = scmp.ge.s32.totalorder %s3505_s24, 4   ;;  %s5406_s18 = smov %s3425_s19 }
 0x41b   : > { %s5407_s19 = smov %s3429_s20  ;;  %s5408_s20 = smov %s3517_s27 }
 0x41c   : > { %s5409_s21 = smov %s3505_s24  ;;  %23 = sbr.rel (!%p21_p5) target bundleno = 10 (0xa), region = 105 }
 0x423   :  { %2935 = vsyncpa [#allocation3], 1 }
 0x424   :  { %2937 = vsyncpa [#allocation3 + $0x1], 1 }
 0x425   :  { %2938 = vsyncpa [#allocation10], 1 }
 0x426   :  { %2939 = vsyncpa [#allocation4], 1 }
 0x427   :  { %2941 = vsyncpa [#allocation4 + $0x1], 1 }
 0x428   :  { %2942 = vsyncpa [#allocation5], 1 }
 0x429   :  { %2944 = vsyncpa [#allocation5 + $0x1], 1 }
 0x42a   :  { %2945 = vsyncpa [#allocation8], 1 }

</bundles_post_ra>
